<compile_context>
chip_gen: v5e
topology: v5e:2x2
jax: 0.10.0
libtpu: 0.0.40
codegen_flags: <defaults>
</compile_context>

<pallas_src>
import functools

import jax
import jax.numpy as jnp
from jax import lax
from jax.experimental import pallas as pl
from jax.experimental.pallas import tpu as pltpu

EXPANSION = 4
EPS = 1e-5


# ----------------------------- Pallas kernels ------------------------------ #

def _stage1_kernel(x_ref, s1_ref, b1_ref, w1_ref, b2_ref, act1_ref):
    """act1 = relu(relu(x*s1+b1) @ w1s + b2)  (bn1+relu+conv1+bn2+relu fused)."""
    pre = jnp.maximum(x_ref[...] * s1_ref[...] + b1_ref[...], 0.0)
    a = jnp.dot(pre.astype(jnp.bfloat16), w1_ref[...],
                preferred_element_type=jnp.float32)
    act1_ref[...] = jnp.maximum(a + b2_ref[...], 0.0).astype(act1_ref.dtype)


def _stage1_shortcut_kernel(x_ref, s1_ref, b1_ref, w1_ref, b2_ref, wsc_ref,
                            act1_ref, sc_ref):
    """Same as _stage1_kernel plus the fused 1x1 projection shortcut (stride == 1)."""
    pre = jnp.maximum(x_ref[...] * s1_ref[...] + b1_ref[...], 0.0)
    pre_b = pre.astype(jnp.bfloat16)
    a = jnp.dot(pre_b, w1_ref[...], preferred_element_type=jnp.float32)
    act1_ref[...] = jnp.maximum(a + b2_ref[...], 0.0).astype(act1_ref.dtype)
    sc_ref[...] = jnp.dot(pre_b, wsc_ref[...], preferred_element_type=jnp.float32)


def _shortcut_proj_kernel(x_ref, s1_ref, b1_ref, wsc_ref, sc_ref):
    """Projection shortcut for stride != 1: relu(bn1(x_strided)) @ w_sc."""
    pre = jnp.maximum(x_ref[...] * s1_ref[...] + b1_ref[...], 0.0)
    sc_ref[...] = jnp.dot(pre.astype(jnp.bfloat16), wsc_ref[...],
                          preferred_element_type=jnp.float32)


def _conv2_conv3_kernel(xp_ref, w2_ref, b3_ref, w3_ref, sc_ref, o_ref, *,
                        stride, ho, wo):
    """out = relu(conv3x3(act1)*s3 + b3) @ w3 + shortcut, for one image.

    xp_ref : (1, H+2, W+2, Cmid) bf16, spatially zero-padded act1 block
    w2_ref : (9*Cmid, Cmid) bf16, tap-major rows with BN3 scale folded in
    """
    c = xp_ref.shape[-1]
    taps = []
    for kh in range(3):
        for kw in range(3):
            if stride == 1:
                win = xp_ref[0, pl.ds(kh, ho), pl.ds(kw, wo), :]
            else:
                win = xp_ref[0, pl.ds(kh, ho, stride), pl.ds(kw, wo, stride), :]
            taps.append(win.reshape(ho * wo, c))
    cols = jnp.concatenate(taps, axis=-1)                     # (ho*wo, 9*Cmid) bf16
    acc = jnp.dot(cols, w2_ref[...], preferred_element_type=jnp.float32)
    act2 = jnp.maximum(acc + b3_ref[...], 0.0)                # f32 epilogue
    out = jnp.dot(act2.astype(jnp.bfloat16), w3_ref[...],
                  preferred_element_type=jnp.float32)
    o_ref[...] = out + sc_ref[...]


# ------------------------------ spec helpers -------------------------------- #

def _pick_tile(m, cap=1024):
    """Largest power-of-two row tile (<= cap) that divides m; else whole extent."""
    for t in (1024, 512, 256, 128, 64, 32, 16, 8):
        if t <= cap and m % t == 0:
            return t
    return m


def _pinned(shape):
    """Block pinned at the origin (weights / per-channel scale & bias)."""
    return pl.BlockSpec(shape, lambda i, _s=len(shape): (0,) * _s)


# ------------------------------ forward pass -------------------------------- #

@functools.partial(jax.jit, static_argnames=("stride", "has_shortcut"))
def preact_bottleneck_forward(x_nchw, params, *, stride, has_shortcut):
    x = jnp.transpose(x_nchw, (0, 2, 3, 1)).astype(jnp.float32)   # NCHW -> NHWC
    n, h, w, cin = x.shape
    planes = params["w1s"].shape[1]
    cout = EXPANSION * planes
    ho = (h + 2 - 3) // stride + 1
    wo = (w + 2 - 3) // stride + 1

    m = n * h * w
    x_flat = x.reshape(m, cin)
    tm = _pick_tile(m)
    parallel = pltpu.CompilerParams(dimension_semantics=("parallel",))

    s1, b1, b2, b3 = params["s1"], params["b1"], params["b2"], params["b3"]

    # ---- stage 1: bn1+relu+conv1(1x1)+bn2+relu  [+ fused projection shortcut] ----
    fuse_shortcut = has_shortcut and stride == 1
    if fuse_shortcut:
        act1, shortcut = pl.pallas_call(
            _stage1_shortcut_kernel,
            out_shape=(jax.ShapeDtypeStruct((m, planes), jnp.bfloat16),
                       jax.ShapeDtypeStruct((m, cout), jnp.float32)),
            grid=(m // tm,),
            in_specs=[
                pl.BlockSpec((tm, cin), lambda i: (i, 0)),
                _pinned((1, cin)), _pinned((1, cin)),
                _pinned((cin, planes)), _pinned((1, planes)),
                _pinned((cin, cout)),
            ],
            out_specs=(pl.BlockSpec((tm, planes), lambda i: (i, 0)),
                       pl.BlockSpec((tm, cout), lambda i: (i, 0))),
            compiler_params=parallel,
        )(x_flat, s1, b1, params["w1s"], b2, params["w_sc"])
    else:
        act1 = pl.pallas_call(
            _stage1_kernel,
            out_shape=jax.ShapeDtypeStruct((m, planes), jnp.bfloat16),
            grid=(m // tm,),
            in_specs=[
                pl.BlockSpec((tm, cin), lambda i: (i, 0)),
                _pinned((1, cin)), _pinned((1, cin)),
                _pinned((cin, planes)), _pinned((1, planes)),
            ],
            out_specs=pl.BlockSpec((tm, planes), lambda i: (i, 0)),
            compiler_params=parallel,
        )(x_flat, s1, b1, params["w1s"], b2)
        if has_shortcut:
            # stride != 1: projection shortcut over the spatially-subsampled input.
            # TODO(synk): express this stride-subsample via the BlockSpec index_map
            #             instead of an XLA-level strided slice (one small HBM copy).
            x_s = x[:, ::stride, ::stride, :].reshape(n * ho * wo, cin)
            ms = n * ho * wo
            tms = _pick_tile(ms)
            shortcut = pl.pallas_call(
                _shortcut_proj_kernel,
                out_shape=jax.ShapeDtypeStruct((ms, cout), jnp.float32),
                grid=(ms // tms,),
                in_specs=[
                    pl.BlockSpec((tms, cin), lambda i: (i, 0)),
                    _pinned((1, cin)), _pinned((1, cin)),
                    _pinned((cin, cout)),
                ],
                out_specs=pl.BlockSpec((tms, cout), lambda i: (i, 0)),
                compiler_params=parallel,
            )(x_s, s1, b1, params["w_sc"])
        else:
            # identity shortcut: PyTorch adds the *unactivated* input x.
            assert stride == 1 and cin == cout, \
                "identity shortcut requires stride == 1 and in_planes == expansion*planes"
            shortcut = x_flat

    # ---- stage 2: conv2(3x3, stride, pad=1) + bn3 + relu + conv3(1x1) + residual ----
    # Spatial zero-pad of the bf16 act1 (one cheap copy) replaces the old 9x im2col.
    act1_p = jnp.pad(act1.reshape(n, h, w, planes),
                     ((0, 0), (1, 1), (1, 1), (0, 0)))
    out = pl.pallas_call(
        functools.partial(_conv2_conv3_kernel, stride=stride, ho=ho, wo=wo),
        out_shape=jax.ShapeDtypeStruct((n * ho * wo, cout), jnp.float32),
        grid=(n,),
        in_specs=[
            pl.BlockSpec((1, h + 2, w + 2, planes), lambda i: (i, 0, 0, 0)),
            _pinned((9 * planes, planes)),
            _pinned((1, planes)),
            _pinned((planes, cout)),
            pl.BlockSpec((ho * wo, cout), lambda i: (i, 0)),
        ],
        out_specs=pl.BlockSpec((ho * wo, cout), lambda i: (i, 0)),
        compiler_params=parallel,
    )(act1_p, params["w2s"], b3, params["w3"], shortcut)
    # TODO(synk): for very large H*W per image, additionally tile the H axis with a 1-row
    #             halo and set vmem_limit_bytes to respect v7x's 64 MiB VMEM.

    out = out.reshape(n, ho, wo, cout)
    return jnp.transpose(out, (0, 3, 1, 2))   # NHWC -> NCHW


# -------------------------- parameter construction ------------------------- #

def _fold_bn(gamma, beta, mean, var):
    scale = gamma / jnp.sqrt(var + EPS)
    bias = beta - mean * scale
    return scale.astype(jnp.float32), bias.astype(jnp.float32)


def prepare_kernel_params(tp):
    """Fold inference-mode BN into (scale, bias); fold scales into the conv weights;
    cast all MXU operands to bf16 (epilogue bias/scale stay f32)."""
    planes = tp["w1"].shape[0]
    s1, b1 = _fold_bn(*tp["bn1"])
    s2, b2 = _fold_bn(*tp["bn2"])
    s3, b3 = _fold_bn(*tp["bn3"])

    w1 = jnp.transpose(tp["w1"][:, :, 0, 0])                              # (cin, planes)
    w2 = jnp.transpose(tp["w2"], (2, 3, 1, 0)).reshape(9 * planes, planes)  # tap-major
    w3 = jnp.transpose(tp["w3"][:, :, 0, 0])                              # (planes, 4*planes)

    kp = {
        "s1": s1.reshape(1, -1), "b1": b1.reshape(1, -1),
        "b2": b2.reshape(1, -1), "b3": b3.reshape(1, -1),
        "w1s": (w1 * s2[None, :]).astype(jnp.bfloat16),   # BN2 scale folded into conv1
        "w2s": (w2 * s3[None, :]).astype(jnp.bfloat16),   # BN3 scale folded into conv2
        "w3": w3.astype(jnp.bfloat16),
    }
    if "w_sc" in tp:
        kp["w_sc"] = jnp.transpose(tp["w_sc"][:, :, 0, 0]).astype(jnp.bfloat16)
    return kp


def init_torch_params(key, in_planes, planes, has_shortcut):
    cout = EXPANSION * planes
    ks = jax.random.split(key, 16)

    def bn(k0, k1, k2, k3, c):
        gamma = 1.0 + 0.1 * jax.random.normal(k0, (c,), jnp.float32)
        beta = 0.1 * jax.random.normal(k1, (c,), jnp.float32)
        mean = 0.1 * jax.random.normal(k2, (c,), jnp.float32)
        var = jax.random.uniform(k3, (c,), jnp.float32, 0.5, 1.5)
        return gamma, beta, mean, var

    p = {
        "bn1": bn(ks[0], ks[1], ks[2], ks[3], in_planes),
        "bn2": bn(ks[4], ks[5], ks[6], ks[7], planes),
        "bn3": bn(ks[8], ks[9], ks[10], ks[11], planes),
        "w1": 0.1 * jax.random.normal(ks[12], (planes, in_planes, 1, 1), jnp.float32),
        "w2": 0.1 * jax.random.normal(ks[13], (planes, planes, 3, 3), jnp.float32),
        "w3": 0.1 * jax.random.normal(ks[14], (cout, planes, 1, 1), jnp.float32),
    }
    if has_shortcut:
        p["w_sc"] = 0.1 * jax.random.normal(ks[15], (cout, in_planes, 1, 1), jnp.float32)
    return p


# ------------------------------- reference --------------------------------- #

def reference_forward(x, p, stride, has_shortcut):
    dn = ("NCHW", "OIHW", "NCHW")
    hp = lax.Precision.HIGHEST

    def bn(t, prm):
        g, b, m, v = prm
        return ((t - m[None, :, None, None]) / jnp.sqrt(v[None, :, None, None] + EPS)
                * g[None, :, None, None] + b[None, :, None, None])

    out = jax.nn.relu(bn(x, p["bn1"]))
    if has_shortcut:
        shortcut = lax.conv_general_dilated(out, p["w_sc"], (stride, stride), "VALID",
                                            dimension_numbers=dn, precision=hp)
    else:
        shortcut = x
    out = lax.conv_general_dilated(out, p["w1"], (1, 1), "VALID",
                                   dimension_numbers=dn, precision=hp)
    out = jax.nn.relu(bn(out, p["bn2"]))
    out = lax.conv_general_dilated(out, p["w2"], (stride, stride), ((1, 1), (1, 1)),
                                   dimension_numbers=dn, precision=hp)
    out = jax.nn.relu(bn(out, p["bn3"]))
    out = lax.conv_general_dilated(out, p["w3"], (1, 1), "VALID",
                                   dimension_numbers=dn, precision=hp)
    return out + shortcut


# ---------------------------------- main ------------------------------------ #

if __name__ == "__main__":
    in_planes, planes, stride = 4, 4, 1
    has_shortcut = (stride != 1) or (in_planes != EXPANSION * planes)

    key = jax.random.PRNGKey(0)
    kx, kp = jax.random.split(key)
    x = jax.random.normal(kx, (2, in_planes, 16, 16), jnp.float32)   # NCHW, like PyTorch

    torch_params = init_torch_params(kp, in_planes, planes, has_shortcut)
    kernel_params = prepare_kernel_params(torch_params)

    out = preact_bottleneck_forward(x, kernel_params,
                                    stride=stride, has_shortcut=has_shortcut)
    out = jax.block_until_ready(out)

    ref = jax.block_until_ready(reference_forward(x, torch_params, stride, has_shortcut))

    assert out.shape == (2, EXPANSION * planes, 16, 16), out.shape
    err = float(jnp.max(jnp.abs(out - ref)))
    # bf16 MXU operands vs. an f32 HIGHEST-precision reference: allow a few bf16 ulps
    # of O(1)-magnitude activations.
    if err > 5e-2:
        raise AssertionError(f"mismatch vs reference: max abs err = {err}")

    print("KERNEL_OK")
</pallas_src>

<mosaic_0001>
module attributes {stable_mosaic.version = 11 : i64} {
  func.func @_stage1_shortcut_kernel(%arg0: i32, %arg1: memref<512x4xf32, #tpu.memory_space<vmem>>, %arg2: memref<1x4xf32, #tpu.memory_space<vmem>>, %arg3: memref<1x4xf32, #tpu.memory_space<vmem>>, %arg4: memref<4x4xbf16, #tpu.memory_space<vmem>>, %arg5: memref<1x4xf32, #tpu.memory_space<vmem>>, %arg6: memref<4x16xbf16, #tpu.memory_space<vmem>>, %arg7: memref<512x4xbf16, #tpu.memory_space<vmem>>, %arg8: memref<512x16xf32, #tpu.memory_space<vmem>>) attributes {dimension_semantics = [#tpu.dimension_semantics<parallel>], iteration_bounds = array<i64: 1>, scalar_prefetch = 0 : i64, scratch_operands = 0 : i64, tpu.core_type = #tpu.core_type<tc>, window_params = [{transform_indices = @transform_0, window_bounds = array<i64: 512, 4>}, {pipeline_mode = #tpu.pipeline_mode<synchronous>, transform_indices = @transform_1, window_bounds = array<i64: 1, 4>}, {pipeline_mode = #tpu.pipeline_mode<synchronous>, transform_indices = @transform_2, window_bounds = array<i64: 1, 4>}, {pipeline_mode = #tpu.pipeline_mode<synchronous>, transform_indices = @transform_3, window_bounds = array<i64: 4, 4>}, {pipeline_mode = #tpu.pipeline_mode<synchronous>, transform_indices = @transform_4, window_bounds = array<i64: 1, 4>}, {pipeline_mode = #tpu.pipeline_mode<synchronous>, transform_indices = @transform_5, window_bounds = array<i64: 4, 16>}, {transform_indices = @transform_6, window_bounds = array<i64: 512, 4>}, {transform_indices = @transform_7, window_bounds = array<i64: 512, 16>}]} {
    %c0 = arith.constant 0 : index
    %c0_0 = arith.constant 0 : index
    %0 = vector.load %arg1[%c0, %c0_0] : memref<512x4xf32, #tpu.memory_space<vmem>>, vector<512x4xf32>
    %c0_1 = arith.constant 0 : index
    %c0_2 = arith.constant 0 : index
    %1 = vector.load %arg2[%c0_1, %c0_2] : memref<1x4xf32, #tpu.memory_space<vmem>>, vector<1x4xf32>
    %2 = vector.broadcast %1 : vector<1x4xf32> to vector<512x4xf32>
    %3 = arith.mulf %0, %2 : vector<512x4xf32>
    %c0_3 = arith.constant 0 : index
    %c0_4 = arith.constant 0 : index
    %4 = vector.load %arg3[%c0_3, %c0_4] : memref<1x4xf32, #tpu.memory_space<vmem>>, vector<1x4xf32>
    %5 = vector.broadcast %4 : vector<1x4xf32> to vector<512x4xf32>
    %6 = arith.addf %3, %5 : vector<512x4xf32>
    %cst = arith.constant 0.000000e+00 : f32
    %7 = vector.broadcast %cst : f32 to vector<512x4xf32>
    %8 = arith.maximumf %6, %7 : vector<512x4xf32>
    %9 = arith.truncf %8 : vector<512x4xf32> to vector<512x4xbf16>
    %c0_5 = arith.constant 0 : index
    %c0_6 = arith.constant 0 : index
    %10 = vector.load %arg4[%c0_5, %c0_6] : memref<4x4xbf16, #tpu.memory_space<vmem>>, vector<4x4xbf16>
    %cst_7 = arith.constant dense<0.000000e+00> : vector<512x4xf32>
    %11 = tpu.matmul %9, %10, %cst_7 {dimension_numbers = #tpu.dot_dimension_numbers<[1], [0], [0], [1], [0, 0, 1, 1], [], []>} : vector<512x4xbf16>, vector<4x4xbf16>, vector<512x4xf32> -> vector<512x4xf32>
    %c0_8 = arith.constant 0 : index
    %c0_9 = arith.constant 0 : index
    %12 = vector.load %arg5[%c0_8, %c0_9] : memref<1x4xf32, #tpu.memory_space<vmem>>, vector<1x4xf32>
    %13 = vector.broadcast %12 : vector<1x4xf32> to vector<512x4xf32>
    %14 = arith.addf %11, %13 : vector<512x4xf32>
    %cst_10 = arith.constant 0.000000e+00 : f32
    %15 = vector.broadcast %cst_10 : f32 to vector<512x4xf32>
    %16 = arith.maximumf %14, %15 : vector<512x4xf32>
    %17 = arith.truncf %16 : vector<512x4xf32> to vector<512x4xbf16>
    %c0_11 = arith.constant 0 : index
    %c0_12 = arith.constant 0 : index
    %18 = vector.load %arg7[%c0_11, %c0_12] : memref<512x4xbf16, #tpu.memory_space<vmem>>, vector<512x4xbf16>
    tpu.vector_store %arg7[%c0_11, %c0_12], %17 {strides = array<i32>} : memref<512x4xbf16, #tpu.memory_space<vmem>>, vector<512x4xbf16>,
    %c0_13 = arith.constant 0 : index
    %c0_14 = arith.constant 0 : index
    %19 = vector.load %arg6[%c0_13, %c0_14] : memref<4x16xbf16, #tpu.memory_space<vmem>>, vector<4x16xbf16>
    %cst_15 = arith.constant dense<0.000000e+00> : vector<512x16xf32>
    %20 = tpu.matmul %9, %19, %cst_15 {dimension_numbers = #tpu.dot_dimension_numbers<[1], [0], [0], [1], [0, 0, 1, 1], [], []>} : vector<512x4xbf16>, vector<4x16xbf16>, vector<512x16xf32> -> vector<512x16xf32>
    %c0_16 = arith.constant 0 : index
    %c0_17 = arith.constant 0 : index
    %21 = vector.load %arg8[%c0_16, %c0_17] : memref<512x16xf32, #tpu.memory_space<vmem>>, vector<512x16xf32>
    tpu.vector_store %arg8[%c0_16, %c0_17], %20 {strides = array<i32>} : memref<512x16xf32, #tpu.memory_space<vmem>>, vector<512x16xf32>,
    return
  }
  func.func @transform_0(%arg0: i32) -> (i32, i32) {
    %c0_i32 = arith.constant 0 : i32
    %c0_i32_0 = arith.constant 0 : i32
    return %arg0, %c0_i32 : i32, i32
  }
  func.func @transform_1(%arg0: i32) -> (i32, i32) {
    %c0_i32 = arith.constant 0 : i32
    %c0_i32_0 = arith.constant 0 : i32
    %c0_i32_1 = arith.constant 0 : i32
    return %c0_i32, %c0_i32_0 : i32, i32
  }
  func.func @transform_2(%arg0: i32) -> (i32, i32) {
    %c0_i32 = arith.constant 0 : i32
    %c0_i32_0 = arith.constant 0 : i32
    %c0_i32_1 = arith.constant 0 : i32
    return %c0_i32, %c0_i32_0 : i32, i32
  }
  func.func @transform_3(%arg0: i32) -> (i32, i32) {
    %c0_i32 = arith.constant 0 : i32
    %c0_i32_0 = arith.constant 0 : i32
    %c0_i32_1 = arith.constant 0 : i32
    return %c0_i32, %c0_i32_0 : i32, i32
  }
  func.func @transform_4(%arg0: i32) -> (i32, i32) {
    %c0_i32 = arith.constant 0 : i32
    %c0_i32_0 = arith.constant 0 : i32
    %c0_i32_1 = arith.constant 0 : i32
    return %c0_i32, %c0_i32_0 : i32, i32
  }
  func.func @transform_5(%arg0: i32) -> (i32, i32) {
    %c0_i32 = arith.constant 0 : i32
    %c0_i32_0 = arith.constant 0 : i32
    %c0_i32_1 = arith.constant 0 : i32
    return %c0_i32, %c0_i32_0 : i32, i32
  }
  func.func @transform_6(%arg0: i32) -> (i32, i32) {
    %c0_i32 = arith.constant 0 : i32
    %c0_i32_0 = arith.constant 0 : i32
    return %arg0, %c0_i32 : i32, i32
  }
  func.func @transform_7(%arg0: i32) -> (i32, i32) {
    %c0_i32 = arith.constant 0 : i32
    %c0_i32_0 = arith.constant 0 : i32
    return %arg0, %c0_i32 : i32, i32
  }
}

module attributes {stable_mosaic.version = 11 : i64} {
  func.func @_conv2_conv3_kernel(%arg0: i32, %arg1: memref<1x18x18x4xbf16, #tpu.memory_space<vmem>>, %arg2: memref<36x4xbf16, #tpu.memory_space<vmem>>, %arg3: memref<1x4xf32, #tpu.memory_space<vmem>>, %arg4: memref<4x16xbf16, #tpu.memory_space<vmem>>, %arg5: memref<256x16xf32, #tpu.memory_space<vmem>>, %arg6: memref<256x16xf32, #tpu.memory_space<vmem>>) attributes {dimension_semantics = [#tpu.dimension_semantics<parallel>], iteration_bounds = array<i64: 2>, scalar_prefetch = 0 : i64, scratch_operands = 0 : i64, tpu.core_type = #tpu.core_type<tc>, window_params = [{transform_indices = @transform_0, window_bounds = array<i64: 1, 18, 18, 4>}, {pipeline_mode = #tpu.pipeline_mode<synchronous>, transform_indices = @transform_1, window_bounds = array<i64: 36, 4>}, {pipeline_mode = #tpu.pipeline_mode<synchronous>, transform_indices = @transform_2, window_bounds = array<i64: 1, 4>}, {pipeline_mode = #tpu.pipeline_mode<synchronous>, transform_indices = @transform_3, window_bounds = array<i64: 4, 16>}, {transform_indices = @transform_4, window_bounds = array<i64: 256, 16>}, {transform_indices = @transform_5, window_bounds = array<i64: 256, 16>}]} {
    %c0 = arith.constant 0 : index
    %c0_0 = arith.constant 0 : index
    %c0_1 = arith.constant 0 : index
    %c0_2 = arith.constant 0 : index
    %0 = vector.load %arg1[%c0, %c0_0, %c0_1, %c0_2] : memref<1x18x18x4xbf16, #tpu.memory_space<vmem>>, vector<1x16x16x4xbf16>
    %1 = vector.shape_cast %0 : vector<1x16x16x4xbf16> to vector<16x16x4xbf16>
    %2 = vector.shape_cast %1 : vector<16x16x4xbf16> to vector<256x4xbf16>
    %c0_3 = arith.constant 0 : index
    %c0_4 = arith.constant 0 : index
    %c1 = arith.constant 1 : index
    %c0_5 = arith.constant 0 : index
    %3 = vector.load %arg1[%c0_3, %c0_4, %c1, %c0_5] : memref<1x18x18x4xbf16, #tpu.memory_space<vmem>>, vector<1x16x16x4xbf16>
    %4 = vector.shape_cast %3 : vector<1x16x16x4xbf16> to vector<16x16x4xbf16>
    %5 = vector.shape_cast %4 : vector<16x16x4xbf16> to vector<256x4xbf16>
    %c0_6 = arith.constant 0 : index
    %c0_7 = arith.constant 0 : index
    %c2 = arith.constant 2 : index
    %c0_8 = arith.constant 0 : index
    %6 = vector.load %arg1[%c0_6, %c0_7, %c2, %c0_8] : memref<1x18x18x4xbf16, #tpu.memory_space<vmem>>, vector<1x16x16x4xbf16>
    %7 = vector.shape_cast %6 : vector<1x16x16x4xbf16> to vector<16x16x4xbf16>
    %8 = vector.shape_cast %7 : vector<16x16x4xbf16> to vector<256x4xbf16>
    %c0_9 = arith.constant 0 : index
    %c1_10 = arith.constant 1 : index
    %c0_11 = arith.constant 0 : index
    %c0_12 = arith.constant 0 : index
    %9 = vector.load %arg1[%c0_9, %c1_10, %c0_11, %c0_12] : memref<1x18x18x4xbf16, #tpu.memory_space<vmem>>, vector<1x16x16x4xbf16>
    %10 = vector.shape_cast %9 : vector<1x16x16x4xbf16> to vector<16x16x4xbf16>
    %11 = vector.shape_cast %10 : vector<16x16x4xbf16> to vector<256x4xbf16>
    %c0_13 = arith.constant 0 : index
    %c1_14 = arith.constant 1 : index
    %c1_15 = arith.constant 1 : index
    %c0_16 = arith.constant 0 : index
    %12 = vector.load %arg1[%c0_13, %c1_14, %c1_15, %c0_16] : memref<1x18x18x4xbf16, #tpu.memory_space<vmem>>, vector<1x16x16x4xbf16>
    %13 = vector.shape_cast %12 : vector<1x16x16x4xbf16> to vector<16x16x4xbf16>
    %14 = vector.shape_cast %13 : vector<16x16x4xbf16> to vector<256x4xbf16>
    %c0_17 = arith.constant 0 : index
    %c1_18 = arith.constant 1 : index
    %c2_19 = arith.constant 2 : index
    %c0_20 = arith.constant 0 : index
    %15 = vector.load %arg1[%c0_17, %c1_18, %c2_19, %c0_20] : memref<1x18x18x4xbf16, #tpu.memory_space<vmem>>, vector<1x16x16x4xbf16>
    %16 = vector.shape_cast %15 : vector<1x16x16x4xbf16> to vector<16x16x4xbf16>
    %17 = vector.shape_cast %16 : vector<16x16x4xbf16> to vector<256x4xbf16>
    %c0_21 = arith.constant 0 : index
    %c2_22 = arith.constant 2 : index
    %c0_23 = arith.constant 0 : index
    %c0_24 = arith.constant 0 : index
    %18 = vector.load %arg1[%c0_21, %c2_22, %c0_23, %c0_24] : memref<1x18x18x4xbf16, #tpu.memory_space<vmem>>, vector<1x16x16x4xbf16>
    %19 = vector.shape_cast %18 : vector<1x16x16x4xbf16> to vector<16x16x4xbf16>
    %20 = vector.shape_cast %19 : vector<16x16x4xbf16> to vector<256x4xbf16>
    %c0_25 = arith.constant 0 : index
    %c2_26 = arith.constant 2 : index
    %c1_27 = arith.constant 1 : index
    %c0_28 = arith.constant 0 : index
    %21 = vector.load %arg1[%c0_25, %c2_26, %c1_27, %c0_28] : memref<1x18x18x4xbf16, #tpu.memory_space<vmem>>, vector<1x16x16x4xbf16>
    %22 = vector.shape_cast %21 : vector<1x16x16x4xbf16> to vector<16x16x4xbf16>
    %23 = vector.shape_cast %22 : vector<16x16x4xbf16> to vector<256x4xbf16>
    %c0_29 = arith.constant 0 : index
    %c2_30 = arith.constant 2 : index
    %c2_31 = arith.constant 2 : index
    %c0_32 = arith.constant 0 : index
    %24 = vector.load %arg1[%c0_29, %c2_30, %c2_31, %c0_32] : memref<1x18x18x4xbf16, #tpu.memory_space<vmem>>, vector<1x16x16x4xbf16>
    %25 = vector.shape_cast %24 : vector<1x16x16x4xbf16> to vector<16x16x4xbf16>
    %26 = vector.shape_cast %25 : vector<16x16x4xbf16> to vector<256x4xbf16>
    %27 = tpu.concatenate %2, %5, %8, %11, %14, %17, %20, %23, %26 in 1 : vector<256x4xbf16>, vector<256x4xbf16>, vector<256x4xbf16>, vector<256x4xbf16>, vector<256x4xbf16>, vector<256x4xbf16>, vector<256x4xbf16>, vector<256x4xbf16>, vector<256x4xbf16> -> vector<256x36xbf16>
    %c0_33 = arith.constant 0 : index
    %c0_34 = arith.constant 0 : index
    %28 = vector.load %arg2[%c0_33, %c0_34] : memref<36x4xbf16, #tpu.memory_space<vmem>>, vector<36x4xbf16>
    %cst = arith.constant dense<0.000000e+00> : vector<256x4xf32>
    %29 = tpu.matmul %27, %28, %cst {dimension_numbers = #tpu.dot_dimension_numbers<[1], [0], [0], [1], [0, 0, 1, 1], [], []>} : vector<256x36xbf16>, vector<36x4xbf16>, vector<256x4xf32> -> vector<256x4xf32>
    %c0_35 = arith.constant 0 : index
    %c0_36 = arith.constant 0 : index
    %30 = vector.load %arg3[%c0_35, %c0_36] : memref<1x4xf32, #tpu.memory_space<vmem>>, vector<1x4xf32>
    %31 = vector.broadcast %30 : vector<1x4xf32> to vector<256x4xf32>
    %32 = arith.addf %29, %31 : vector<256x4xf32>
    %cst_37 = arith.constant 0.000000e+00 : f32
    %33 = vector.broadcast %cst_37 : f32 to vector<256x4xf32>
    %34 = arith.maximumf %32, %33 : vector<256x4xf32>
    %35 = arith.truncf %34 : vector<256x4xf32> to vector<256x4xbf16>
    %c0_38 = arith.constant 0 : index
    %c0_39 = arith.constant 0 : index
    %36 = vector.load %arg4[%c0_38, %c0_39] : memref<4x16xbf16, #tpu.memory_space<vmem>>, vector<4x16xbf16>
    %cst_40 = arith.constant dense<0.000000e+00> : vector<256x16xf32>
    %37 = tpu.matmul %35, %36, %cst_40 {dimension_numbers = #tpu.dot_dimension_numbers<[1], [0], [0], [1], [0, 0, 1, 1], [], []>} : vector<256x4xbf16>, vector<4x16xbf16>, vector<256x16xf32> -> vector<256x16xf32>
    %c0_41 = arith.constant 0 : index
    %c0_42 = arith.constant 0 : index
    %38 = vector.load %arg5[%c0_41, %c0_42] : memref<256x16xf32, #tpu.memory_space<vmem>>, vector<256x16xf32>
    %39 = arith.addf %37, %38 : vector<256x16xf32>
    %c0_43 = arith.constant 0 : index
    %c0_44 = arith.constant 0 : index
    %40 = vector.load %arg6[%c0_43, %c0_44] : memref<256x16xf32, #tpu.memory_space<vmem>>, vector<256x16xf32>
    tpu.vector_store %arg6[%c0_43, %c0_44], %39 {strides = array<i32>} : memref<256x16xf32, #tpu.memory_space<vmem>>, vector<256x16xf32>,
    return
  }
  func.func @transform_0(%arg0: i32) -> (i32, i32, i32, i32) {
    %c0_i32 = arith.constant 0 : i32
    %c0_i32_0 = arith.constant 0 : i32
    %c0_i32_1 = arith.constant 0 : i32
    %c0_i32_2 = arith.constant 0 : i32
    return %arg0, %c0_i32, %c0_i32_0, %c0_i32_1 : i32, i32, i32, i32
  }
  func.func @transform_1(%arg0: i32) -> (i32, i32) {
    %c0_i32 = arith.constant 0 : i32
    %c0_i32_0 = arith.constant 0 : i32
    %c0_i32_1 = arith.constant 0 : i32
    return %c0_i32, %c0_i32_0 : i32, i32
  }
  func.func @transform_2(%arg0: i32) -> (i32, i32) {
    %c0_i32 = arith.constant 0 : i32
    %c0_i32_0 = arith.constant 0 : i32
    %c0_i32_1 = arith.constant 0 : i32
    return %c0_i32, %c0_i32_0 : i32, i32
  }
  func.func @transform_3(%arg0: i32) -> (i32, i32) {
    %c0_i32 = arith.constant 0 : i32
    %c0_i32_0 = arith.constant 0 : i32
    %c0_i32_1 = arith.constant 0 : i32
    return %c0_i32, %c0_i32_0 : i32, i32
  }
  func.func @transform_4(%arg0: i32) -> (i32, i32) {
    %c0_i32 = arith.constant 0 : i32
    %c0_i32_0 = arith.constant 0 : i32
    return %arg0, %c0_i32 : i32, i32
  }
  func.func @transform_5(%arg0: i32) -> (i32, i32) {
    %c0_i32 = arith.constant 0 : i32
    %c0_i32_0 = arith.constant 0 : i32
    return %arg0, %c0_i32 : i32, i32
  }
}

</mosaic_0001>

<bundles_post_ra>
// kernel: preact_bottleneck_forward.2
= control target key start
LH: loop header
LB: loop body
LE: loop exit
PB: predicated region body
PF: predicated region fallthrough
CT: control target
= control target key end

     0   :  { %vm424_vm0 = vcmask 1041408   ;;  %vm327_vm1 = vcmask 31744   ;;  %vm963_vm2 = vcmask 130048   ;;  %vm725_vm3 = vcmask 27648   ;;  %s2134_s3 = inlined_call_operand.vmem [shape: bf16[4,4], index: 3, kind: input, shape index: {}]   ;;  %s2135_s5 = inlined_call_operand.vmem [shape: bf16[4,16], index: 5, kind: input, shape index: {}]   ;;  %s2136_s0 = inlined_call_operand.vmem [shape: f32[512,4], index: 0, kind: input, shape index: {}]   ;;  %s2137_s1 = inlined_call_operand.vmem [shape: f32[1,4], index: 1, kind: input, shape index: {}]   ;;  %s2138_s2 = inlined_call_operand.vmem [shape: f32[1,4], index: 2, kind: input, shape index: {}]   ;;  %s2139_s4 = inlined_call_operand.vmem [shape: f32[1,4], index: 4, kind: input, shape index: {}]   ;;  %s2140_s7 = inlined_call_operand.vmem [shape: f32[512,16], index: 7, kind: output, shape index: {1}]   ;;  %s2141_s6 = inlined_call_operand.vmem [shape: bf16[512,4], index: 6, kind: output, shape index: {0}]  }
   0x1   :  { %v322_v0 = vld [vmem:[%s2134_s3] sm:$0x3]  ;;  %v27_v5 = vld [vmem:[%s2136_s0 + $0x8] sm:$0xff]  ;;  %v28_v22 = vld [vmem:[%s2136_s0 + $0x10] sm:$0xff] }
   0x2   :  { %v790_v1 = vld [vmem:[%s2135_s5] sm:$0x3]  ;;  %v426_v3 = vsel %vm424_vm0, %v322_v0, 0  ;;  %v59_v9 = vld [vmem:[%s2136_s0 + $0x108] sm:$0xff]  ;;  %v29_v23 = vld [vmem:[%s2136_s0 + $0x18] sm:$0xff] }
   0x3   :  { %v26_v2 = vld [vmem:[%s2136_s0] sm:$0xff]  ;;  %v792_v4 = vsel %vm424_vm0, %v790_v1, 0  ;;  %435 = vmatpush.bf16.msra.mxu0 %v426_v3  ;;  %1100 = vmatpush.bf16.msra.mxu2 %v426_v3  ;;  %v60_v24 = vld [vmem:[%s2136_s0 + $0x110] sm:$0xff]  ;;  %v61_v25 = vld [vmem:[%s2136_s0 + $0x118] sm:$0xff] }
   0x4   :  { %v58_v6 = vld [vmem:[%s2136_s0 + $0x100] sm:$0xff]  ;;  %1101 = vmatpush.bf16.msra.mxu3 %v792_v4  ;;  %801 = vmatpush.bf16.msra.mxu1 %v792_v4  ;;  %v31_v43 = vld [vmem:[%s2136_s0 + $0x28] sm:$0xff]  ;;  %v32_v60 = vld [vmem:[%s2136_s0 + $0x30] sm:$0xff] }
   0x5   :  { %v1166_v7 = vld [vmem:[%s2137_s1] ss:$0 sm:$0xff]  ;;  %v63_v45 = vld [vmem:[%s2136_s0 + $0x128] sm:$0xff]  ;;  %v33_v61 = vld [vmem:[%s2136_s0 + $0x38] sm:$0xff] }
   0x6   :  { %v1171_v8 = vld [vmem:[%s2138_s2] ss:$0 sm:$0xff]  ;;  %v94_v10 = vmul.f32 %v1166_v7, %v26_v2  ;;  %v95_v11 = vmul.f32 %v1166_v7, %v27_v5  ;;  %v126_v12 = vmul.f32 %v1166_v7, %v58_v6  ;;  %v127_v13 = vmul.f32 %v1166_v7, %v59_v9  ;;  %v64_v62 = vld [vmem:[%s2136_s0 + $0x130] sm:$0xff]  ;;  %v65_v63 = vld [vmem:[%s2136_s0 + $0x138] sm:$0xff] }
   0x7   :  { %v96_v28 = vmul.f32 %v1166_v7, %v28_v22  ;;  %v97_v29 = vmul.f32 %v1166_v7, %v29_v23  ;;  %v128_v30 = vmul.f32 %v1166_v7, %v60_v24  ;;  %v129_v31 = vmul.f32 %v1166_v7, %v61_v25  ;;  %v30_v42 = vld [vmem:[%s2136_s0 + $0x20] sm:$0xff] }
   0x8   :  { %v162_v14 = vadd.f32 %v1171_v8, %v94_v10  ;;  %v163_v15 = vadd.f32 %v1171_v8, %v95_v11  ;;  %v194_v16 = vadd.f32 %v1171_v8, %v126_v12  ;;  %v195_v17 = vadd.f32 %v1171_v8, %v127_v13  ;;  %v62_v44 = vld [vmem:[%s2136_s0 + $0x120] sm:$0xff] }
   0x9   :  { %v164_v32 = vadd.f32 %v1171_v8, %v96_v28  ;;  %v165_v33 = vadd.f32 %v1171_v8, %v97_v29  ;;  %v196_v34 = vadd.f32 %v1171_v8, %v128_v30  ;;  %v197_v35 = vadd.f32 %v1171_v8, %v129_v31 }
   0xa   :  { %v226_v18 = vmax.f32 %v162_v14, 0.0  ;;  %v227_v19 = vmax.f32 %v163_v15, 0.0  ;;  %v258_v20 = vmax.f32 %v194_v16, 0.0  ;;  %v259_v21 = vmax.f32 %v195_v17, 0.0  ;;  %v34_v16 = vld [vmem:[%s2136_s0 + $0x40] sm:$0xff]  ;;  %v35_v17 = vld [vmem:[%s2136_s0 + $0x48] sm:$0xff] }
   0xb   :  { %v228_v36 = vmax.f32 %v164_v32, 0.0  ;;  %v229_v37 = vmax.f32 %v165_v33, 0.0  ;;  %v260_v38 = vmax.f32 %v196_v34, 0.0  ;;  %v261_v39 = vmax.f32 %v197_v35, 0.0  ;;  %v36_v34 = vld [vmem:[%s2136_s0 + $0x50] sm:$0xff]  ;;  %v37_v35 = vld [vmem:[%s2136_s0 + $0x58] sm:$0xff] }
   0xc   :  { %v290_v26 = vpack.c.bf16 %v227_v19, %v226_v18  ;;  %v306_v27 = vpack.c.bf16 %v259_v21, %v258_v20  ;;  %v98_v46 = vmul.f32 %v1166_v7, %v30_v42  ;;  %v99_v47 = vmul.f32 %v1166_v7, %v31_v43  ;;  %v66_v18 = vld [vmem:[%s2136_s0 + $0x140] sm:$0xff]  ;;  %v67_v19 = vld [vmem:[%s2136_s0 + $0x148] sm:$0xff] }
   0xd   :  { %v291_v40 = vpack.c.bf16 %v229_v37, %v228_v36  ;;  %v307_v41 = vpack.c.bf16 %v261_v39, %v260_v38  ;;  %v130_v48 = vmul.f32 %v1166_v7, %v62_v44  ;;  %v131_v49 = vmul.f32 %v1166_v7, %v63_v45  ;;  %v68_v36 = vld [vmem:[%s2136_s0 + $0x150] sm:$0xff]  ;;  %v69_v37 = vld [vmem:[%s2136_s0 + $0x158] sm:$0xff] }
   0xe   :  { %1036 = vmatmul.msk.bf16.vlgmr.msra.gmra.mxu0 %vm327_vm1, %v290_v26  ;;  %1052 = vmatmul.msk.bf16.vlgmr.msra.gmra.mxu2 %vm327_vm1, %v306_v27  ;;  %v166_v50 = vadd.f32 %v1171_v8, %v98_v46  ;;  %v167_v51 = vadd.f32 %v1171_v8, %v99_v47  ;;  %v100_v0 = vmul.f32 %v1166_v7, %v32_v60 }
   0xf   :  { %1084 = vmatmul.msk.bf16.vlgmr.msra.gmra.mxu3 %vm327_vm1, %v306_v27  ;;  %1068 = vmatmul.msk.bf16.vlgmr.msra.gmra.mxu1 %vm327_vm1, %v290_v26  ;;  %v198_v52 = vadd.f32 %v1171_v8, %v130_v48  ;;  %v199_v53 = vadd.f32 %v1171_v8, %v131_v49  ;;  %v101_v1 = vmul.f32 %v1166_v7, %v33_v61 }
  0x10   :  { %v230_v54 = vmax.f32 %v166_v50, 0.0  ;;  %v231_v55 = vmax.f32 %v167_v51, 0.0  ;;  %v132_v2 = vmul.f32 %v1166_v7, %v64_v62  ;;  %v133_v3 = vmul.f32 %v1166_v7, %v65_v63 }
  0x11   :  { %v262_v56 = vmax.f32 %v198_v52, 0.0  ;;  %v263_v57 = vmax.f32 %v199_v53, 0.0  ;;  %v168_v4 = vadd.f32 %v1171_v8, %v100_v0  ;;  %v169_v5 = vadd.f32 %v1171_v8, %v101_v1  ;;  %v38_v52 = vld [vmem:[%s2136_s0 + $0x60] sm:$0xff]  ;;  %v39_v53 = vld [vmem:[%s2136_s0 + $0x68] sm:$0xff] }
  0x12   :  { %v292_v58 = vpack.c.bf16 %v231_v55, %v230_v54  ;;  %v200_v6 = vadd.f32 %v1171_v8, %v132_v2  ;;  %v201_v9 = vadd.f32 %v1171_v8, %v133_v3  ;;  %v102_v20 = vmul.f32 %v1166_v7, %v34_v16  ;;  %v70_v54 = vld [vmem:[%s2136_s0 + $0x160] sm:$0xff]  ;;  %v71_v55 = vld [vmem:[%s2136_s0 + $0x168] sm:$0xff] }
  0x13   :  { %v308_v59 = vpack.c.bf16 %v263_v57, %v262_v56  ;;  %v232_v10 = vmax.f32 %v168_v4, 0.0  ;;  %v233_v11 = vmax.f32 %v169_v5, 0.0  ;;  %v103_v21 = vmul.f32 %v1166_v7, %v35_v17 }
  0x14   :  { %v264_v12 = vmax.f32 %v200_v6, 0.0  ;;  %v265_v13 = vmax.f32 %v201_v9, 0.0  ;;  %v134_v22 = vmul.f32 %v1166_v7, %v66_v18  ;;  %v135_v23 = vmul.f32 %v1166_v7, %v67_v19  ;;  %v40_v6 = vld [vmem:[%s2136_s0 + $0x70] sm:$0xff]  ;;  %v41_v9 = vld [vmem:[%s2136_s0 + $0x78] sm:$0xff] }
  0x15   :  { %v293_v14 = vpack.c.bf16 %v233_v11, %v232_v10  ;;  %v170_v24 = vadd.f32 %v1171_v8, %v102_v20  ;;  %v171_v25 = vadd.f32 %v1171_v8, %v103_v21  ;;  %v104_v38 = vmul.f32 %v1166_v7, %v36_v34  ;;  %v72_v10 = vld [vmem:[%s2136_s0 + $0x170] sm:$0xff]  ;;  %v73_v11 = vld [vmem:[%s2136_s0 + $0x178] sm:$0xff] }
  0x16   :  { %v309_v15 = vpack.c.bf16 %v265_v13, %v264_v12  ;;  %v202_v26 = vadd.f32 %v1171_v8, %v134_v22  ;;  %v203_v27 = vadd.f32 %v1171_v8, %v135_v23  ;;  %v105_v39 = vmul.f32 %v1166_v7, %v37_v35 }
  0x17   :  { %v234_v28 = vmax.f32 %v170_v24, 0.0  ;;  %v235_v29 = vmax.f32 %v171_v25, 0.0  ;;  %v172_v42 = vadd.f32 %v1171_v8, %v104_v38  ;;  %v106_v56 = vmul.f32 %v1166_v7, %v38_v52 }
  0x18   :  { %v266_v30 = vmax.f32 %v202_v26, 0.0  ;;  %v267_v31 = vmax.f32 %v203_v27, 0.0  ;;  %v173_v43 = vadd.f32 %v1171_v8, %v105_v39  ;;  %v107_v57 = vmul.f32 %v1166_v7, %v39_v53  ;;  %v42_v26 = vld [vmem:[%s2136_s0 + $0x80] sm:$0xff]  ;;  %v43_v27 = vld [vmem:[%s2136_s0 + $0x88] sm:$0xff] }
  0x19   :  { %v294_v32 = vpack.c.bf16 %v235_v29, %v234_v28  ;;  %v236_v46 = vmax.f32 %v172_v42, 0.0  ;;  %v174_v60 = vadd.f32 %v1171_v8, %v106_v56  ;;  %v108_v12 = vmul.f32 %v1166_v7, %v40_v6  ;;  %v74_v28 = vld [vmem:[%s2136_s0 + $0x180] sm:$0xff]  ;;  %v75_v29 = vld [vmem:[%s2136_s0 + $0x188] sm:$0xff] }
  0x1a   :  { %v310_v33 = vpack.c.bf16 %v267_v31, %v266_v30  ;;  %v237_v47 = vmax.f32 %v173_v43, 0.0  ;;  %v175_v61 = vadd.f32 %v1171_v8, %v107_v57  ;;  %v109_v13 = vmul.f32 %v1166_v7, %v41_v9  ;;  %v1379_v42 = vld [vmem:[%s2139_s4] ss:$0 sm:$0xff] }
  0x1b   :  { %v238_v0 = vmax.f32 %v174_v60, 0.0  ;;  %v176_v16 = vadd.f32 %v1171_v8, %v108_v12  ;;  %v110_v30 = vmul.f32 %v1166_v7, %v42_v26  ;;  %v111_v31 = vmul.f32 %v1166_v7, %v43_v27 }
  0x1c   :  { %v295_v50 = vpack.c.bf16 %v237_v47, %v236_v46  ;;  %v239_v1 = vmax.f32 %v175_v61, 0.0  ;;  %v177_v17 = vadd.f32 %v1171_v8, %v109_v13  ;;  %v45_v46 = vld [vmem:[%s2136_s0 + $0x98] sm:$0xff] }
  0x1d   :  { %v240_v20 = vmax.f32 %v176_v16, 0.0  ;;  %v178_v34 = vadd.f32 %v1171_v8, %v110_v30  ;;  %v179_v35 = vadd.f32 %v1171_v8, %v111_v31  ;;  %v113_v53 = vmul.f32 %v1166_v7, %v45_v46 }
  0x1e   :  { %1037 = vmatmul.msk.bf16.gmra.mxu0 %vm327_vm1, %v291_v40  ;;  %1053 = vmatmul.msk.bf16.gmra.mxu2 %vm327_vm1, %v307_v41  ;;  %v296_v4 = vpack.c.bf16 %v239_v1, %v238_v0  ;;  %v241_v21 = vmax.f32 %v177_v17, 0.0 }
  0x1f   :  { %1085 = vmatmul.msk.bf16.gmra.mxu3 %vm327_vm1, %v307_v41  ;;  %1069 = vmatmul.msk.bf16.gmra.mxu1 %vm327_vm1, %v291_v40  ;;  %v136_v40 = vmul.f32 %v1166_v7, %v68_v36  ;;  %v137_v41 = vmul.f32 %v1166_v7, %v69_v37  ;;  %v242_v38 = vmax.f32 %v178_v34, 0.0  ;;  %v243_v39 = vmax.f32 %v179_v35, 0.0 }
  0x20   :  { %v297_v24 = vpack.c.bf16 %v241_v21, %v240_v20  ;;  %v181_v60 = vadd.f32 %v1171_v8, %v113_v53  ;;  %v47_v20 = vld [vmem:[%s2136_s0 + $0xa8] sm:$0xff] }
  0x21   :  { %v204_v44 = vadd.f32 %v1171_v8, %v136_v40  ;;  %v205_v45 = vadd.f32 %v1171_v8, %v137_v41  ;;  %v298_v43 = vpack.c.bf16 %v243_v39, %v242_v38 }
  0x22   :  { %v245_v6 = vmax.f32 %v181_v60, 0.0 }
  0x23   :  { %v268_v48 = vmax.f32 %v204_v44, 0.0  ;;  %v269_v49 = vmax.f32 %v205_v45, 0.0  ;;  %v44_v45 = vld [vmem:[%s2136_s0 + $0x90] sm:$0xff] }
  0x24   :  { %v112_v52 = vmul.f32 %v1166_v7, %v44_v45 }
  0x25   :  { %v311_v51 = vpack.c.bf16 %v269_v49, %v268_v48  ;;  %v76_v48 = vld [vmem:[%s2136_s0 + $0x190] sm:$0xff]  ;;  %v77_v49 = vld [vmem:[%s2136_s0 + $0x198] sm:$0xff] }
  0x26   :  { %v145_v56 = vmul.f32 %v1166_v7, %v77_v49 }
  0x28   :  { %v213_v0 = vadd.f32 %v1171_v8, %v145_v56 }
  0x2a   :  { %v277_v12 = vmax.f32 %v213_v0, 0.0 }
  0x2e   :  { %1038 = vmatmul.msk.bf16.gmra.mxu0 %vm327_vm1, %v292_v58  ;;  %1054 = vmatmul.msk.bf16.gmra.mxu2 %vm327_vm1, %v308_v59 }
  0x2f   :  { %1086 = vmatmul.msk.bf16.gmra.mxu3 %vm327_vm1, %v308_v59  ;;  %1070 = vmatmul.msk.bf16.gmra.mxu1 %vm327_vm1, %v292_v58  ;;  %v138_v58 = vmul.f32 %v1166_v7, %v70_v54  ;;  %v139_v59 = vmul.f32 %v1166_v7, %v71_v55  ;;  %v144_v55 = vmul.f32 %v1166_v7, %v76_v48 }
  0x31   :  { %v206_v62 = vadd.f32 %v1171_v8, %v138_v58  ;;  %v207_v63 = vadd.f32 %v1171_v8, %v139_v59  ;;  %v180_v59 = vadd.f32 %v1171_v8, %v112_v52 }
  0x33   :  { %v270_v2 = vmax.f32 %v206_v62, 0.0  ;;  %v271_v3 = vmax.f32 %v207_v63, 0.0  ;;  %v212_v63 = vadd.f32 %v1171_v8, %v144_v55 }
  0x35   :  { %v312_v5 = vpack.c.bf16 %v271_v3, %v270_v2 }
  0x3e   :  { %1039 = vmatmul.msk.bf16.gmra.mxu0 %vm327_vm1, %v293_v14  ;;  %1055 = vmatmul.msk.bf16.gmra.mxu2 %vm327_vm1, %v309_v15 }
  0x3f   :  { %1087 = vmatmul.msk.bf16.gmra.mxu3 %vm327_vm1, %v309_v15  ;;  %1071 = vmatmul.msk.bf16.gmra.mxu1 %vm327_vm1, %v293_v14  ;;  %v140_v14 = vmul.f32 %v1166_v7, %v72_v10  ;;  %v141_v15 = vmul.f32 %v1166_v7, %v73_v11  ;;  %v276_v11 = vmax.f32 %v212_v63, 0.0 }
  0x41   :  { %v208_v18 = vadd.f32 %v1171_v8, %v140_v14  ;;  %v209_v19 = vadd.f32 %v1171_v8, %v141_v15 }
  0x43   :  { %v272_v22 = vmax.f32 %v208_v18, 0.0  ;;  %v273_v23 = vmax.f32 %v209_v19, 0.0  ;;  %v315_v18 = vpack.c.bf16 %v277_v12, %v276_v11  ;;  %v46_v19 = vld [vmem:[%s2136_s0 + $0xa0] sm:$0xff] }
  0x44   :  { %v114_v27 = vmul.f32 %v1166_v7, %v46_v19 }
  0x45   :  { %v313_v25 = vpack.c.bf16 %v273_v23, %v272_v22  ;;  %v78_v22 = vld [vmem:[%s2136_s0 + $0x1a0] sm:$0xff]  ;;  %v79_v23 = vld [vmem:[%s2136_s0 + $0x1a8] sm:$0xff] }
  0x46   :  { %v146_v31 = vmul.f32 %v1166_v7, %v78_v22  ;;  %v182_v35 = vadd.f32 %v1171_v8, %v114_v27 }
  0x48   :  { %v214_v39 = vadd.f32 %v1171_v8, %v146_v31  ;;  %v246_v46 = vmax.f32 %v182_v35, 0.0  ;;  %v51_v35 = vld [vmem:[%s2136_s0 + $0xc8] sm:$0xff] }
  0x4e   :  { %1040 = vmatmul.msk.bf16.gmra.mxu0 %vm327_vm1, %v294_v32  ;;  %1056 = vmatmul.msk.bf16.gmra.mxu2 %vm327_vm1, %v310_v33 }
  0x4f   :  { %1088 = vmatmul.msk.bf16.gmra.mxu3 %vm327_vm1, %v310_v33  ;;  %1072 = vmatmul.msk.bf16.gmra.mxu1 %vm327_vm1, %v294_v32  ;;  %v142_v32 = vmul.f32 %v1166_v7, %v74_v28  ;;  %v143_v33 = vmul.f32 %v1166_v7, %v75_v29  ;;  %v115_v28 = vmul.f32 %v1166_v7, %v47_v20 }
  0x51   :  { %v210_v36 = vadd.f32 %v1171_v8, %v142_v32  ;;  %v211_v37 = vadd.f32 %v1171_v8, %v143_v33  ;;  %v147_v32 = vmul.f32 %v1166_v7, %v79_v23 }
  0x53   :  { %v274_v40 = vmax.f32 %v210_v36, 0.0  ;;  %v275_v41 = vmax.f32 %v211_v37, 0.0  ;;  %v183_v36 = vadd.f32 %v1171_v8, %v115_v28 }
  0x55   :  { %v314_v44 = vpack.c.bf16 %v275_v41, %v274_v40  ;;  %v215_v40 = vadd.f32 %v1171_v8, %v147_v32 }
  0x5e   :  { %1041 = vmatmul.msk.bf16.gmra.mxu0 %vm327_vm1, %v295_v50  ;;  %1057 = vmatmul.msk.bf16.gmra.mxu2 %vm327_vm1, %v311_v51 }
  0x5f   :  { %1089 = vmatmul.msk.bf16.gmra.mxu3 %vm327_vm1, %v311_v51  ;;  %1073 = vmatmul.msk.bf16.gmra.mxu1 %vm327_vm1, %v295_v50 }
  0x6e   :  { %1042 = vmatmul.msk.bf16.gmra.mxu0 %vm327_vm1, %v296_v4  ;;  %1058 = vmatmul.msk.bf16.gmra.mxu2 %vm327_vm1, %v312_v5 }
  0x6f   :  { %1090 = vmatmul.msk.bf16.gmra.mxu3 %vm327_vm1, %v312_v5  ;;  %1074 = vmatmul.msk.bf16.gmra.mxu1 %vm327_vm1, %v296_v4  ;;  %v244_v5 = vmax.f32 %v180_v59, 0.0  ;;  %v49_v59 = vld [vmem:[%s2136_s0 + $0xb8] sm:$0xff] }
  0x71   :  { %v299_v17 = vpack.c.bf16 %v245_v6, %v244_v5 }
  0x7e   :  { %1043 = vmatmul.msk.bf16.gmra.mxu0 %vm327_vm1, %v297_v24  ;;  %1059 = vmatmul.msk.bf16.gmra.mxu2 %vm327_vm1, %v313_v25 }
  0x7f   :  { %1091 = vmatmul.msk.bf16.gmra.mxu3 %vm327_vm1, %v313_v25  ;;  %1075 = vmatmul.msk.bf16.gmra.mxu1 %vm327_vm1, %v297_v24 }
  0x8b   :  { %v437_v47 = vpop.f32.mrf.mxu0 }
  0x8c   :  { %v438_v50 = vadd.f32 %v1379_v42, %v437_v47  ;;  %v803_v51 = vpop.f32.mrf.mxu1  ;;  %v247_v47 = vmax.f32 %v183_v36, 0.0 }
  0x8d   :  { %964 = vst.msk [vmem:[%s2140_s7] sm:$0xff] %vm963_vm2, %v803_v51  ;;  %v279_v51 = vmax.f32 %v215_v40, 0.0 }
  0x8e   :  { %v597_v54 = vmax.f32 %v438_v50, 0.0  ;;  %1044 = vmatmul.msk.bf16.gmra.mxu0 %vm327_vm1, %v298_v43  ;;  %1060 = vmatmul.msk.bf16.gmra.mxu2 %vm327_vm1, %v314_v44  ;;  %v278_v50 = vmax.f32 %v214_v39, 0.0  ;;  %v300_v56 = vpack.c.bf16 %v247_v47, %v246_v46 }
  0x8f   :  { %1092 = vmatmul.msk.bf16.gmra.mxu3 %vm327_vm1, %v314_v44  ;;  %1076 = vmatmul.msk.bf16.gmra.mxu1 %vm327_vm1, %v298_v43 }
  0x90   :  { %v661_v57 = vpack.c.bf16 %v597_v54, %v597_v54 }
  0x91   :  { %v517_v58 = vpop.f32.mrf.mxu2 }
  0x92   :  { %726 = vst.msk [vmem:[%s2141_s6] sm:$0xf] %vm725_vm3, %v661_v57  ;;  %v518_v61 = vadd.f32 %v1379_v42, %v517_v58  ;;  %v883_v62 = vpop.f32.mrf.mxu3  ;;  %v316_v57 = vpack.c.bf16 %v279_v51, %v278_v50  ;;  %v48_v58 = vld [vmem:[%s2136_s0 + $0xb0] sm:$0xff] }
  0x93   :  { %996 = vst.msk [vmem:[%s2140_s7 + $0x100] sm:$0xff] %vm963_vm2, %v883_v62  ;;  %v439_v1 = vpop.f32.mrf.mxu0  ;;  %v81_v62 = vld [vmem:[%s2136_s0 + $0x1b8] sm:$0xff] }
  0x94   :  { %v629_v2 = vmax.f32 %v518_v61, 0.0  ;;  %v440_v3 = vadd.f32 %v1379_v42, %v439_v1  ;;  %v805_v4 = vpop.f32.mrf.mxu1  ;;  %v80_v61 = vld [vmem:[%s2136_s0 + $0x1b0] sm:$0xff] }
  0x95   :  { %965 = vst.msk [vmem:[%s2140_s7 + $0x8] sm:$0xff] %vm963_vm2, %v805_v4  ;;  %v148_v6 = vmul.f32 %v1166_v7, %v80_v61 }
  0x96   :  { %v693_v9 = vpack.c.bf16 %v629_v2, %v629_v2  ;;  %v598_v10 = vmax.f32 %v440_v3, 0.0  ;;  %v116_v2 = vmul.f32 %v1166_v7, %v48_v58  ;;  %v117_v3 = vmul.f32 %v1166_v7, %v49_v59 }
  0x98   :  { %758 = vst.msk [vmem:[%s2141_s6 + $0x80] sm:$0xf] %vm725_vm3, %v693_v9  ;;  %v662_v13 = vpack.c.bf16 %v598_v10, %v598_v10  ;;  %v149_v9 = vmul.f32 %v1166_v7, %v81_v62  ;;  %v184_v12 = vadd.f32 %v1171_v8, %v116_v2 }
  0x99   :  { %v519_v14 = vpop.f32.mrf.mxu2 }
  0x9a   :  { %727 = vst.msk [vmem:[%s2141_s6 + $0x4] sm:$0xf] %vm725_vm3, %v662_v13  ;;  %v520_v15 = vadd.f32 %v1379_v42, %v519_v14  ;;  %v885_v16 = vpop.f32.mrf.mxu3  ;;  %v185_v13 = vadd.f32 %v1171_v8, %v117_v3  ;;  %v248_v22 = vmax.f32 %v184_v12, 0.0  ;;  %v53_v12 = vld [vmem:[%s2136_s0 + $0xd8] sm:$0xff] }
  0x9b   :  { %997 = vst.msk [vmem:[%s2140_s7 + $0x108] sm:$0xff] %vm963_vm2, %v885_v16  ;;  %v442_v21 = vpop.f32.mrf.mxu0  ;;  %v216_v16 = vadd.f32 %v1171_v8, %v148_v6 }
  0x9c   :  { %v630_v24 = vmax.f32 %v520_v15, 0.0  ;;  %v443_v25 = vadd.f32 %v1379_v42, %v442_v21  ;;  %v808_v26 = vpop.f32.mrf.mxu1  ;;  %v249_v23 = vmax.f32 %v185_v13, 0.0 }
  0x9d   :  { %966 = vst.msk [vmem:[%s2140_s7 + $0x10] sm:$0xff] %vm963_vm2, %v808_v26  ;;  %v280_v26 = vmax.f32 %v216_v16, 0.0 }
  0x9e   :  { %v694_v29 = vpack.c.bf16 %v630_v24, %v630_v24  ;;  %v599_v30 = vmax.f32 %v443_v25, 0.0  ;;  %1045 = vmatmul.msk.bf16.gmra.mxu0 %vm327_vm1, %v299_v17  ;;  %1061 = vmatmul.msk.bf16.gmra.mxu2 %vm327_vm1, %v315_v18  ;;  %v301_v32 = vpack.c.bf16 %v249_v23, %v248_v22 }
  0x9f   :  { %1093 = vmatmul.msk.bf16.gmra.mxu3 %vm327_vm1, %v315_v18  ;;  %1077 = vmatmul.msk.bf16.gmra.mxu1 %vm327_vm1, %v299_v17  ;;  %v217_v17 = vadd.f32 %v1171_v8, %v149_v9 }
  0xa0   :  { %759 = vst.msk [vmem:[%s2141_s6 + $0x84] sm:$0xf] %vm725_vm3, %v694_v29  ;;  %v663_v33 = vpack.c.bf16 %v599_v30, %v599_v30 }
  0xa1   :  { %v522_v34 = vpop.f32.mrf.mxu2  ;;  %v281_v27 = vmax.f32 %v217_v17, 0.0 }
  0xa2   :  { %728 = vst.msk [vmem:[%s2141_s6 + $0x8] sm:$0xf] %vm725_vm3, %v663_v33  ;;  %v523_v37 = vadd.f32 %v1379_v42, %v522_v34  ;;  %v888_v38 = vpop.f32.mrf.mxu3  ;;  %v50_v34 = vld [vmem:[%s2136_s0 + $0xc0] sm:$0xff] }
  0xa3   :  { %998 = vst.msk [vmem:[%s2140_s7 + $0x110] sm:$0xff] %vm963_vm2, %v888_v38  ;;  %v444_v41 = vpop.f32.mrf.mxu0  ;;  %v317_v33 = vpack.c.bf16 %v281_v27, %v280_v26  ;;  %v83_v38 = vld [vmem:[%s2136_s0 + $0x1c8] sm:$0xff] }
  0xa4   :  { %v631_v43 = vmax.f32 %v523_v37, 0.0  ;;  %v445_v44 = vadd.f32 %v1379_v42, %v444_v41  ;;  %v810_v45 = vpop.f32.mrf.mxu1  ;;  %v82_v37 = vld [vmem:[%s2136_s0 + $0x1c0] sm:$0xff] }
  0xa5   :  { %967 = vst.msk [vmem:[%s2140_s7 + $0x18] sm:$0xff] %vm963_vm2, %v810_v45  ;;  %v150_v47 = vmul.f32 %v1166_v7, %v82_v37 }
  0xa6   :  { %v695_v48 = vpack.c.bf16 %v631_v43, %v631_v43  ;;  %v600_v49 = vmax.f32 %v445_v44, 0.0  ;;  %v118_v43 = vmul.f32 %v1166_v7, %v50_v34  ;;  %v119_v44 = vmul.f32 %v1166_v7, %v51_v35 }
  0xa8   :  { %760 = vst.msk [vmem:[%s2141_s6 + $0x88] sm:$0xf] %vm725_vm3, %v695_v48  ;;  %v664_v52 = vpack.c.bf16 %v600_v49, %v600_v49  ;;  %v151_v48 = vmul.f32 %v1166_v7, %v83_v38  ;;  %v186_v51 = vadd.f32 %v1171_v8, %v118_v43 }
  0xa9   :  { %v524_v53 = vpop.f32.mrf.mxu2 }
  0xaa   :  { %729 = vst.msk [vmem:[%s2141_s6 + $0xc] sm:$0xf] %vm725_vm3, %v664_v52  ;;  %v525_v54 = vadd.f32 %v1379_v42, %v524_v53  ;;  %v890_v55 = vpop.f32.mrf.mxu3  ;;  %v187_v52 = vadd.f32 %v1171_v8, %v119_v44  ;;  %v250_v61 = vmax.f32 %v186_v51, 0.0  ;;  %v55_v51 = vld [vmem:[%s2136_s0 + $0xe8] sm:$0xff] }
  0xab   :  { %999 = vst.msk [vmem:[%s2140_s7 + $0x118] sm:$0xff] %vm963_vm2, %v890_v55  ;;  %v447_v60 = vpop.f32.mrf.mxu0  ;;  %v218_v55 = vadd.f32 %v1171_v8, %v150_v47 }
  0xac   :  { %v632_v63 = vmax.f32 %v525_v54, 0.0  ;;  %v448_v0 = vadd.f32 %v1379_v42, %v447_v60  ;;  %v813_v1 = vpop.f32.mrf.mxu1  ;;  %v251_v62 = vmax.f32 %v187_v52, 0.0 }
  0xad   :  { %968 = vst.msk [vmem:[%s2140_s7 + $0x20] sm:$0xff] %vm963_vm2, %v813_v1  ;;  %v282_v1 = vmax.f32 %v218_v55, 0.0 }
  0xae   :  { %v696_v4 = vpack.c.bf16 %v632_v63, %v632_v63  ;;  %v601_v5 = vmax.f32 %v448_v0, 0.0  ;;  %1046 = vmatmul.msk.bf16.gmra.mxu0 %vm327_vm1, %v300_v56  ;;  %1062 = vmatmul.msk.bf16.gmra.mxu2 %vm327_vm1, %v316_v57  ;;  %v302_v9 = vpack.c.bf16 %v251_v62, %v250_v61 }
  0xaf   :  { %1094 = vmatmul.msk.bf16.gmra.mxu3 %vm327_vm1, %v316_v57  ;;  %1078 = vmatmul.msk.bf16.gmra.mxu1 %vm327_vm1, %v300_v56  ;;  %v219_v56 = vadd.f32 %v1171_v8, %v151_v48 }
  0xb0   :  { %761 = vst.msk [vmem:[%s2141_s6 + $0x8c] sm:$0xf] %vm725_vm3, %v696_v4  ;;  %v665_v10 = vpack.c.bf16 %v601_v5, %v601_v5 }
  0xb1   :  { %v527_v11 = vpop.f32.mrf.mxu2  ;;  %v283_v2 = vmax.f32 %v219_v56, 0.0 }
  0xb2   :  { %730 = vst.msk [vmem:[%s2141_s6 + $0x10] sm:$0xf] %vm725_vm3, %v665_v10  ;;  %v528_v14 = vadd.f32 %v1379_v42, %v527_v11  ;;  %v893_v15 = vpop.f32.mrf.mxu3  ;;  %v52_v11 = vld [vmem:[%s2136_s0 + $0xd0] sm:$0xff] }
  0xb3   :  { %1000 = vst.msk [vmem:[%s2140_s7 + $0x120] sm:$0xff] %vm963_vm2, %v893_v15  ;;  %v449_v18 = vpop.f32.mrf.mxu0  ;;  %v318_v10 = vpack.c.bf16 %v283_v2, %v282_v1  ;;  %v85_v15 = vld [vmem:[%s2136_s0 + $0x1d8] sm:$0xff] }
  0xb4   :  { %v633_v19 = vmax.f32 %v528_v14, 0.0  ;;  %v450_v20 = vadd.f32 %v1379_v42, %v449_v18  ;;  %v815_v21 = vpop.f32.mrf.mxu1  ;;  %v84_v14 = vld [vmem:[%s2136_s0 + $0x1d0] sm:$0xff] }
  0xb5   :  { %969 = vst.msk [vmem:[%s2140_s7 + $0x28] sm:$0xff] %vm963_vm2, %v815_v21  ;;  %v152_v23 = vmul.f32 %v1166_v7, %v84_v14 }
  0xb6   :  { %v697_v24 = vpack.c.bf16 %v633_v19, %v633_v19  ;;  %v602_v25 = vmax.f32 %v450_v20, 0.0  ;;  %v120_v19 = vmul.f32 %v1166_v7, %v52_v11  ;;  %v121_v20 = vmul.f32 %v1166_v7, %v53_v12 }
  0xb8   :  { %762 = vst.msk [vmem:[%s2141_s6 + $0x90] sm:$0xf] %vm725_vm3, %v697_v24  ;;  %v666_v28 = vpack.c.bf16 %v602_v25, %v602_v25  ;;  %v153_v24 = vmul.f32 %v1166_v7, %v85_v15  ;;  %v188_v27 = vadd.f32 %v1171_v8, %v120_v19 }
  0xb9   :  { %v529_v29 = vpop.f32.mrf.mxu2 }
  0xba   :  { %731 = vst.msk [vmem:[%s2141_s6 + $0x14] sm:$0xf] %vm725_vm3, %v666_v28  ;;  %v530_v30 = vadd.f32 %v1379_v42, %v529_v29  ;;  %v895_v31 = vpop.f32.mrf.mxu3  ;;  %v189_v28 = vadd.f32 %v1171_v8, %v121_v20  ;;  %v252_v37 = vmax.f32 %v188_v27, 0.0 }
  0xbb   :  { %1001 = vst.msk [vmem:[%s2140_s7 + $0x128] sm:$0xff] %vm963_vm2, %v895_v31  ;;  %v452_v36 = vpop.f32.mrf.mxu0  ;;  %v220_v31 = vadd.f32 %v1171_v8, %v152_v23 }
  0xbc   :  { %v634_v39 = vmax.f32 %v530_v30, 0.0  ;;  %v453_v40 = vadd.f32 %v1379_v42, %v452_v36  ;;  %v818_v41 = vpop.f32.mrf.mxu1  ;;  %v253_v38 = vmax.f32 %v189_v28, 0.0  ;;  %v88_v28 = vld [vmem:[%s2136_s0 + $0x1f0] sm:$0xff] }
  0xbd   :  { %970 = vst.msk [vmem:[%s2140_s7 + $0x30] sm:$0xff] %vm963_vm2, %v818_v41  ;;  %v284_v41 = vmax.f32 %v220_v31, 0.0 }
  0xbe   :  { %v698_v45 = vpack.c.bf16 %v634_v39, %v634_v39  ;;  %v603_v46 = vmax.f32 %v453_v40, 0.0  ;;  %1047 = vmatmul.msk.bf16.gmra.mxu0 %vm327_vm1, %v301_v32  ;;  %1063 = vmatmul.msk.bf16.gmra.mxu2 %vm327_vm1, %v317_v33  ;;  %v303_v48 = vpack.c.bf16 %v253_v38, %v252_v37  ;;  %v1105_v37 = vld [vmem:[%s2137_s1] ss:$0 sm:$0xff] }
  0xbf   :  { %1095 = vmatmul.msk.bf16.gmra.mxu3 %vm327_vm1, %v317_v33  ;;  %1079 = vmatmul.msk.bf16.gmra.mxu1 %vm327_vm1, %v301_v32  ;;  %v221_v32 = vadd.f32 %v1171_v8, %v153_v24  ;;  %v156_v38 = vmul.f32 %v1105_v37, %v88_v28 }
  0xc0   :  { %763 = vst.msk [vmem:[%s2141_s6 + $0x94] sm:$0xf] %vm725_vm3, %v698_v45  ;;  %v667_v49 = vpack.c.bf16 %v603_v46, %v603_v46 }
  0xc1   :  { %v532_v50 = vpop.f32.mrf.mxu2  ;;  %v285_v43 = vmax.f32 %v221_v32, 0.0 }
  0xc2   :  { %732 = vst.msk [vmem:[%s2141_s6 + $0x18] sm:$0xf] %vm725_vm3, %v667_v49  ;;  %v533_v53 = vadd.f32 %v1379_v42, %v532_v50  ;;  %v898_v54 = vpop.f32.mrf.mxu3  ;;  %v54_v50 = vld [vmem:[%s2136_s0 + $0xe0] sm:$0xff] }
  0xc3   :  { %1002 = vst.msk [vmem:[%s2140_s7 + $0x130] sm:$0xff] %vm963_vm2, %v898_v54  ;;  %v454_v57 = vpop.f32.mrf.mxu0  ;;  %v319_v49 = vpack.c.bf16 %v285_v43, %v284_v41  ;;  %v87_v54 = vld [vmem:[%s2136_s0 + $0x1e8] sm:$0xff]  ;;  %v1106_v41 = vld [vmem:[%s2138_s2] ss:$0 sm:$0xff] }
  0xc4   :  { %v635_v58 = vmax.f32 %v533_v53, 0.0  ;;  %v455_v59 = vadd.f32 %v1379_v42, %v454_v57  ;;  %v820_v60 = vpop.f32.mrf.mxu1  ;;  %v86_v53 = vld [vmem:[%s2136_s0 + $0x1e0] sm:$0xff] }
  0xc5   :  { %971 = vst.msk [vmem:[%s2140_s7 + $0x38] sm:$0xff] %vm963_vm2, %v820_v60  ;;  %v154_v62 = vmul.f32 %v1166_v7, %v86_v53 }
  0xc6   :  { %v699_v63 = vpack.c.bf16 %v635_v58, %v635_v58  ;;  %v604_v0 = vmax.f32 %v455_v59, 0.0  ;;  %v122_v58 = vmul.f32 %v1166_v7, %v54_v50  ;;  %v123_v59 = vmul.f32 %v1166_v7, %v55_v51 }
  0xc8   :  { %764 = vst.msk [vmem:[%s2141_s6 + $0x98] sm:$0xf] %vm725_vm3, %v699_v63  ;;  %v668_v3 = vpack.c.bf16 %v604_v0, %v604_v0  ;;  %v155_v63 = vmul.f32 %v1166_v7, %v87_v54  ;;  %v190_v2 = vadd.f32 %v1171_v8, %v122_v58 }
  0xc9   :  { %v534_v4 = vpop.f32.mrf.mxu2 }
  0xca   :  { %733 = vst.msk [vmem:[%s2141_s6 + $0x1c] sm:$0xf] %vm725_vm3, %v668_v3  ;;  %v535_v5 = vadd.f32 %v1379_v42, %v534_v4  ;;  %v900_v6 = vpop.f32.mrf.mxu3  ;;  %v191_v3 = vadd.f32 %v1171_v8, %v123_v59  ;;  %v254_v14 = vmax.f32 %v190_v2, 0.0 }
  0xcb   :  { %1003 = vst.msk [vmem:[%s2140_s7 + $0x138] sm:$0xff] %vm963_vm2, %v900_v6  ;;  %v457_v13 = vpop.f32.mrf.mxu0  ;;  %v222_v6 = vadd.f32 %v1171_v8, %v154_v62 }
  0xcc   :  { %v636_v16 = vmax.f32 %v535_v5, 0.0  ;;  %v458_v17 = vadd.f32 %v1379_v42, %v457_v13  ;;  %v823_v18 = vpop.f32.mrf.mxu1  ;;  %v255_v15 = vmax.f32 %v191_v3, 0.0 }
  0xcd   :  { %972 = vst.msk [vmem:[%s2140_s7 + $0x40] sm:$0xff] %vm963_vm2, %v823_v18 }
  0xce   :  { %v700_v21 = vpack.c.bf16 %v636_v16, %v636_v16  ;;  %v605_v22 = vmax.f32 %v458_v17, 0.0  ;;  %1048 = vmatmul.msk.bf16.gmra.mxu0 %vm327_vm1, %v302_v9  ;;  %1064 = vmatmul.msk.bf16.gmra.mxu2 %vm327_vm1, %v318_v10  ;;  %v304_v23 = vpack.c.bf16 %v255_v15, %v254_v14 }
  0xcf   :  { %1096 = vmatmul.msk.bf16.gmra.mxu3 %vm327_vm1, %v318_v10  ;;  %1080 = vmatmul.msk.bf16.gmra.mxu1 %vm327_vm1, %v302_v9  ;;  %v223_v9 = vadd.f32 %v1171_v8, %v155_v63  ;;  %v286_v8 = vmax.f32 %v222_v6, 0.0 }
  0xd0   :  { %765 = vst.msk [vmem:[%s2141_s6 + $0x9c] sm:$0xf] %vm725_vm3, %v700_v21  ;;  %v669_v25 = vpack.c.bf16 %v605_v22, %v605_v22 }
  0xd1   :  { %v537_v26 = vpop.f32.mrf.mxu2  ;;  %v287_v18 = vmax.f32 %v223_v9, 0.0 }
  0xd2   :  { %734 = vst.msk [vmem:[%s2141_s6 + $0x20] sm:$0xf] %vm725_vm3, %v669_v25  ;;  %v538_v29 = vadd.f32 %v1379_v42, %v537_v26  ;;  %v903_v30 = vpop.f32.mrf.mxu3  ;;  %v56_v25 = vld [vmem:[%s2136_s0 + $0xf0] sm:$0xff]  ;;  %v57_v26 = vld [vmem:[%s2136_s0 + $0xf8] sm:$0xff] }
  0xd3   :  { %1004 = vst.msk [vmem:[%s2140_s7 + $0x140] sm:$0xff] %vm963_vm2, %v903_v30  ;;  %v459_v33 = vpop.f32.mrf.mxu0  ;;  %v320_v24 = vpack.c.bf16 %v287_v18, %v286_v8 }
  0xd4   :  { %v637_v34 = vmax.f32 %v538_v29, 0.0  ;;  %v460_v35 = vadd.f32 %v1379_v42, %v459_v33  ;;  %v825_v36 = vpop.f32.mrf.mxu1  ;;  %v89_v29 = vld [vmem:[%s2136_s0 + $0x1f8] sm:$0xff]  ;;  %v124_v33 = vmul.f32 %v1166_v7, %v56_v25 }
  0xd5   :  { %973 = vst.msk [vmem:[%s2140_s7 + $0x48] sm:$0xff] %vm963_vm2, %v825_v36 }
  0xd6   :  { %v701_v39 = vpack.c.bf16 %v637_v34, %v637_v34  ;;  %v606_v40 = vmax.f32 %v460_v35, 0.0  ;;  %v125_v34 = vmul.f32 %v1166_v7, %v57_v26  ;;  %v192_v43 = vadd.f32 %v1106_v41, %v124_v33 }
  0xd8   :  { %766 = vst.msk [vmem:[%s2141_s6 + $0xa0] sm:$0xf] %vm725_vm3, %v701_v39  ;;  %v670_v44 = vpack.c.bf16 %v606_v40, %v606_v40  ;;  %v157_v39 = vmul.f32 %v1105_v37, %v89_v29  ;;  %v256_v53 = vmax.f32 %v192_v43, 0.0 }
  0xd9   :  { %v539_v45 = vpop.f32.mrf.mxu2 }
  0xda   :  { %735 = vst.msk [vmem:[%s2141_s6 + $0x24] sm:$0xf] %vm725_vm3, %v670_v44  ;;  %v540_v46 = vadd.f32 %v1379_v42, %v539_v45  ;;  %v905_v47 = vpop.f32.mrf.mxu3  ;;  %v193_v44 = vadd.f32 %v1106_v41, %v125_v34 }
  0xdb   :  { %1005 = vst.msk [vmem:[%s2140_s7 + $0x148] sm:$0xff] %vm963_vm2, %v905_v47  ;;  %v462_v52 = vpop.f32.mrf.mxu0  ;;  %v224_v47 = vadd.f32 %v1106_v41, %v156_v38 }
  0xdc   :  { %v638_v55 = vmax.f32 %v540_v46, 0.0  ;;  %v463_v56 = vadd.f32 %v1379_v42, %v462_v52  ;;  %v828_v57 = vpop.f32.mrf.mxu1  ;;  %v257_v54 = vmax.f32 %v193_v44, 0.0 }
  0xdd   :  { %974 = vst.msk [vmem:[%s2140_s7 + $0x50] sm:$0xff] %vm963_vm2, %v828_v57  ;;  %v288_v57 = vmax.f32 %v224_v47, 0.0 }
  0xde   :  { %v702_v60 = vpack.c.bf16 %v638_v55, %v638_v55  ;;  %v607_v61 = vmax.f32 %v463_v56, 0.0  ;;  %1049 = vmatmul.msk.bf16.gmra.mxu0 %vm327_vm1, %v303_v48  ;;  %1065 = vmatmul.msk.bf16.gmra.mxu2 %vm327_vm1, %v319_v49  ;;  %v305_v63 = vpack.c.bf16 %v257_v54, %v256_v53 }
  0xdf   :  { %1097 = vmatmul.msk.bf16.gmra.mxu3 %vm327_vm1, %v319_v49  ;;  %1081 = vmatmul.msk.bf16.gmra.mxu1 %vm327_vm1, %v303_v48  ;;  %v225_v48 = vadd.f32 %v1106_v41, %v157_v39 }
  0xe0   :  { %767 = vst.msk [vmem:[%s2141_s6 + $0xa4] sm:$0xf] %vm725_vm3, %v702_v60  ;;  %v671_v0 = vpack.c.bf16 %v607_v61, %v607_v61 }
  0xe1   :  { %v542_v1 = vpop.f32.mrf.mxu2  ;;  %v289_v58 = vmax.f32 %v225_v48, 0.0 }
  0xe2   :  { %736 = vst.msk [vmem:[%s2141_s6 + $0x28] sm:$0xf] %vm725_vm3, %v671_v0  ;;  %v543_v4 = vadd.f32 %v1379_v42, %v542_v1  ;;  %v908_v5 = vpop.f32.mrf.mxu3 }
  0xe3   :  { %1006 = vst.msk [vmem:[%s2140_s7 + $0x150] sm:$0xff] %vm963_vm2, %v908_v5  ;;  %v464_v10 = vpop.f32.mrf.mxu0  ;;  %v321_v0 = vpack.c.bf16 %v289_v58, %v288_v57 }
  0xe4   :  { %v639_v11 = vmax.f32 %v543_v4, 0.0  ;;  %v465_v12 = vadd.f32 %v1379_v42, %v464_v10  ;;  %v830_v13 = vpop.f32.mrf.mxu1 }
  0xe5   :  { %975 = vst.msk [vmem:[%s2140_s7 + $0x58] sm:$0xff] %vm963_vm2, %v830_v13 }
  0xe6   :  { %v703_v16 = vpack.c.bf16 %v639_v11, %v639_v11  ;;  %v608_v17 = vmax.f32 %v465_v12, 0.0 }
  0xe8   :  { %768 = vst.msk [vmem:[%s2141_s6 + $0xa8] sm:$0xf] %vm725_vm3, %v703_v16  ;;  %v672_v19 = vpack.c.bf16 %v608_v17, %v608_v17 }
  0xe9   :  { %v544_v20 = vpop.f32.mrf.mxu2 }
  0xea   :  { %737 = vst.msk [vmem:[%s2141_s6 + $0x2c] sm:$0xf] %vm725_vm3, %v672_v19  ;;  %v545_v21 = vadd.f32 %v1379_v42, %v544_v20  ;;  %v910_v22 = vpop.f32.mrf.mxu3 }
  0xeb   :  { %1007 = vst.msk [vmem:[%s2140_s7 + $0x158] sm:$0xff] %vm963_vm2, %v910_v22  ;;  %v467_v27 = vpop.f32.mrf.mxu0 }
  0xec   :  { %v640_v30 = vmax.f32 %v545_v21, 0.0  ;;  %v468_v31 = vadd.f32 %v1379_v42, %v467_v27  ;;  %v833_v32 = vpop.f32.mrf.mxu1 }
  0xed   :  { %976 = vst.msk [vmem:[%s2140_s7 + $0x60] sm:$0xff] %vm963_vm2, %v833_v32 }
  0xee   :  { %v704_v35 = vpack.c.bf16 %v640_v30, %v640_v30  ;;  %v609_v36 = vmax.f32 %v468_v31, 0.0  ;;  %1050 = vmatmul.msk.bf16.gmra.mxu0 %vm327_vm1, %v304_v23  ;;  %1066 = vmatmul.msk.bf16.gmra.mxu2 %vm327_vm1, %v320_v24 }
  0xef   :  { %1098 = vmatmul.msk.bf16.gmra.mxu3 %vm327_vm1, %v320_v24  ;;  %1082 = vmatmul.msk.bf16.gmra.mxu1 %vm327_vm1, %v304_v23 }
  0xf0   :  { %769 = vst.msk [vmem:[%s2141_s6 + $0xac] sm:$0xf] %vm725_vm3, %v704_v35  ;;  %v673_v7 = vpack.c.bf16 %v609_v36, %v609_v36 }
  0xf1   :  { %v547_v40 = vpop.f32.mrf.mxu2 }
  0xf2   :  { %738 = vst.msk [vmem:[%s2141_s6 + $0x30] sm:$0xf] %vm725_vm3, %v673_v7  ;;  %v548_v45 = vadd.f32 %v1379_v42, %v547_v40  ;;  %v913_v46 = vpop.f32.mrf.mxu3 }
  0xf3   :  { %1008 = vst.msk [vmem:[%s2140_s7 + $0x160] sm:$0xff] %vm963_vm2, %v913_v46  ;;  %v469_v49 = vpop.f32.mrf.mxu0 }
  0xf4   :  { %v641_v50 = vmax.f32 %v548_v45, 0.0  ;;  %v470_v51 = vadd.f32 %v1379_v42, %v469_v49  ;;  %v835_v52 = vpop.f32.mrf.mxu1 }
  0xf5   :  { %977 = vst.msk [vmem:[%s2140_s7 + $0x68] sm:$0xff] %vm963_vm2, %v835_v52 }
  0xf6   :  { %v705_v55 = vpack.c.bf16 %v641_v50, %v641_v50  ;;  %v610_v56 = vmax.f32 %v470_v51, 0.0 }
  0xf8   :  { %770 = vst.msk [vmem:[%s2141_s6 + $0xb0] sm:$0xf] %vm725_vm3, %v705_v55  ;;  %v674_v59 = vpack.c.bf16 %v610_v56, %v610_v56 }
  0xf9   :  { %v549_v60 = vpop.f32.mrf.mxu2 }
  0xfa   :  { %739 = vst.msk [vmem:[%s2141_s6 + $0x34] sm:$0xf] %vm725_vm3, %v674_v59  ;;  %v550_v61 = vadd.f32 %v1379_v42, %v549_v60  ;;  %v915_v62 = vpop.f32.mrf.mxu3 }
  0xfb   :  { %1009 = vst.msk [vmem:[%s2140_s7 + $0x168] sm:$0xff] %vm963_vm2, %v915_v62  ;;  %v472_v1 = vpop.f32.mrf.mxu0 }
  0xfc   :  { %v642_v2 = vmax.f32 %v550_v61, 0.0  ;;  %v473_v3 = vadd.f32 %v1379_v42, %v472_v1  ;;  %v838_v4 = vpop.f32.mrf.mxu1 }
  0xfd   :  { %978 = vst.msk [vmem:[%s2140_s7 + $0x70] sm:$0xff] %vm963_vm2, %v838_v4 }
  0xfe   :  { %v706_v5 = vpack.c.bf16 %v642_v2, %v642_v2  ;;  %v611_v6 = vmax.f32 %v473_v3, 0.0  ;;  %1051 = vmatmul.msk.bf16.gmra.mxu0 %vm327_vm1, %v305_v63  ;;  %1067 = vmatmul.msk.bf16.gmra.mxu2 %vm327_vm1, %v321_v0 }
  0xff   :  { %1099 = vmatmul.msk.bf16.gmra.mxu3 %vm327_vm1, %v321_v0  ;;  %1083 = vmatmul.msk.bf16.gmra.mxu1 %vm327_vm1, %v305_v63 }
 0x100   :  { %771 = vst.msk [vmem:[%s2141_s6 + $0xb4] sm:$0xf] %vm725_vm3, %v706_v5  ;;  %v675_v9 = vpack.c.bf16 %v611_v6, %v611_v6 }
 0x101   :  { %v552_v10 = vpop.f32.mrf.mxu2 }
 0x102   :  { %740 = vst.msk [vmem:[%s2141_s6 + $0x38] sm:$0xf] %vm725_vm3, %v675_v9  ;;  %v553_v11 = vadd.f32 %v1379_v42, %v552_v10  ;;  %v918_v12 = vpop.f32.mrf.mxu3 }
 0x103   :  { %1010 = vst.msk [vmem:[%s2140_s7 + $0x170] sm:$0xff] %vm963_vm2, %v918_v12  ;;  %v474_v13 = vpop.f32.mrf.mxu0 }
 0x104   :  { %v643_v14 = vmax.f32 %v553_v11, 0.0  ;;  %v475_v15 = vadd.f32 %v1379_v42, %v474_v13  ;;  %v840_v16 = vpop.f32.mrf.mxu1 }
 0x105   :  { %979 = vst.msk [vmem:[%s2140_s7 + $0x78] sm:$0xff] %vm963_vm2, %v840_v16 }
 0x106   :  { %v707_v17 = vpack.c.bf16 %v643_v14, %v643_v14  ;;  %v612_v8 = vmax.f32 %v475_v15, 0.0 }
 0x108   :  { %772 = vst.msk [vmem:[%s2141_s6 + $0xb8] sm:$0xf] %vm725_vm3, %v707_v17  ;;  %v676_v18 = vpack.c.bf16 %v612_v8, %v612_v8 }
 0x109   :  { %v554_v19 = vpop.f32.mrf.mxu2 }
 0x10a   :  { %741 = vst.msk [vmem:[%s2141_s6 + $0x3c] sm:$0xf] %vm725_vm3, %v676_v18  ;;  %v555_v20 = vadd.f32 %v1379_v42, %v554_v19  ;;  %v920_v21 = vpop.f32.mrf.mxu3 }
 0x10b   :  { %1011 = vst.msk [vmem:[%s2140_s7 + $0x178] sm:$0xff] %vm963_vm2, %v920_v21  ;;  %v477_v22 = vpop.f32.mrf.mxu0 }
 0x10c   :  { %v644_v23 = vmax.f32 %v555_v20, 0.0  ;;  %v478_v24 = vadd.f32 %v1379_v42, %v477_v22  ;;  %v843_v25 = vpop.f32.mrf.mxu1 }
 0x10d   :  { %980 = vst.msk [vmem:[%s2140_s7 + $0x80] sm:$0xff] %vm963_vm2, %v843_v25 }
 0x10e   :  { %v708_v26 = vpack.c.bf16 %v644_v23, %v644_v23  ;;  %v613_v27 = vmax.f32 %v478_v24, 0.0 }
 0x110   :  { %773 = vst.msk [vmem:[%s2141_s6 + $0xbc] sm:$0xf] %vm725_vm3, %v708_v26  ;;  %v677_v28 = vpack.c.bf16 %v613_v27, %v613_v27 }
 0x111   :  { %v557_v29 = vpop.f32.mrf.mxu2 }
 0x112   :  { %742 = vst.msk [vmem:[%s2141_s6 + $0x40] sm:$0xf] %vm725_vm3, %v677_v28  ;;  %v558_v30 = vadd.f32 %v1379_v42, %v557_v29  ;;  %v923_v31 = vpop.f32.mrf.mxu3 }
 0x113   :  { %1012 = vst.msk [vmem:[%s2140_s7 + $0x180] sm:$0xff] %vm963_vm2, %v923_v31  ;;  %v479_v32 = vpop.f32.mrf.mxu0 }
 0x114   :  { %v645_v33 = vmax.f32 %v558_v30, 0.0  ;;  %v480_v34 = vadd.f32 %v1379_v42, %v479_v32  ;;  %v845_v35 = vpop.f32.mrf.mxu1 }
 0x115   :  { %981 = vst.msk [vmem:[%s2140_s7 + $0x88] sm:$0xff] %vm963_vm2, %v845_v35 }
 0x116   :  { %v709_v36 = vpack.c.bf16 %v645_v33, %v645_v33  ;;  %v614_v37 = vmax.f32 %v480_v34, 0.0 }
 0x118   :  { %774 = vst.msk [vmem:[%s2141_s6 + $0xc0] sm:$0xf] %vm725_vm3, %v709_v36  ;;  %v678_v38 = vpack.c.bf16 %v614_v37, %v614_v37 }
 0x119   :  { %v559_v39 = vpop.f32.mrf.mxu2 }
 0x11a   :  { %743 = vst.msk [vmem:[%s2141_s6 + $0x44] sm:$0xf] %vm725_vm3, %v678_v38  ;;  %v560_v7 = vadd.f32 %v1379_v42, %v559_v39  ;;  %v925_v40 = vpop.f32.mrf.mxu3 }
 0x11b   :  { %1013 = vst.msk [vmem:[%s2140_s7 + $0x188] sm:$0xff] %vm963_vm2, %v925_v40  ;;  %v482_v41 = vpop.f32.mrf.mxu0 }
 0x11c   :  { %v646_v43 = vmax.f32 %v560_v7, 0.0  ;;  %v483_v44 = vadd.f32 %v1379_v42, %v482_v41  ;;  %v848_v45 = vpop.f32.mrf.mxu1 }
 0x11d   :  { %982 = vst.msk [vmem:[%s2140_s7 + $0x90] sm:$0xff] %vm963_vm2, %v848_v45 }
 0x11e   :  { %v710_v46 = vpack.c.bf16 %v646_v43, %v646_v43  ;;  %v615_v47 = vmax.f32 %v483_v44, 0.0 }
 0x120   :  { %775 = vst.msk [vmem:[%s2141_s6 + $0xc4] sm:$0xf] %vm725_vm3, %v710_v46  ;;  %v679_v48 = vpack.c.bf16 %v615_v47, %v615_v47 }
 0x121   :  { %v562_v49 = vpop.f32.mrf.mxu2 }
 0x122   :  { %744 = vst.msk [vmem:[%s2141_s6 + $0x48] sm:$0xf] %vm725_vm3, %v679_v48  ;;  %v563_v50 = vadd.f32 %v1379_v42, %v562_v49  ;;  %v928_v51 = vpop.f32.mrf.mxu3 }
 0x123   :  { %1014 = vst.msk [vmem:[%s2140_s7 + $0x190] sm:$0xff] %vm963_vm2, %v928_v51  ;;  %v484_v52 = vpop.f32.mrf.mxu0  ;;  %v2002_v51 = vld [vmem:[%s2139_s4] ss:$0 sm:$0xff] }
 0x124   :  { %v647_v53 = vmax.f32 %v563_v50, 0.0  ;;  %v485_v54 = vadd.f32 %v1379_v42, %v484_v52  ;;  %v850_v55 = vpop.f32.mrf.mxu1 }
 0x125   :  { %983 = vst.msk [vmem:[%s2140_s7 + $0x98] sm:$0xff] %vm963_vm2, %v850_v55 }
 0x126   :  { %v711_v56 = vpack.c.bf16 %v647_v53, %v647_v53  ;;  %v616_v57 = vmax.f32 %v485_v54, 0.0 }
 0x128   :  { %776 = vst.msk [vmem:[%s2141_s6 + $0xc8] sm:$0xf] %vm725_vm3, %v711_v56  ;;  %v680_v58 = vpack.c.bf16 %v616_v57, %v616_v57 }
 0x129   :  { %v564_v59 = vpop.f32.mrf.mxu2 }
 0x12a   :  { %745 = vst.msk [vmem:[%s2141_s6 + $0x4c] sm:$0xf] %vm725_vm3, %v680_v58  ;;  %v565_v60 = vadd.f32 %v1379_v42, %v564_v59  ;;  %v930_v61 = vpop.f32.mrf.mxu3 }
 0x12b   :  { %1015 = vst.msk [vmem:[%s2140_s7 + $0x198] sm:$0xff] %vm963_vm2, %v930_v61  ;;  %v487_v62 = vpop.f32.mrf.mxu0 }
 0x12c   :  { %v648_v63 = vmax.f32 %v565_v60, 0.0  ;;  %v488_v0 = vadd.f32 %v1379_v42, %v487_v62  ;;  %v853_v1 = vpop.f32.mrf.mxu1 }
 0x12d   :  { %984 = vst.msk [vmem:[%s2140_s7 + $0xa0] sm:$0xff] %vm963_vm2, %v853_v1 }
 0x12e   :  { %v712_v2 = vpack.c.bf16 %v648_v63, %v648_v63  ;;  %v617_v3 = vmax.f32 %v488_v0, 0.0 }
 0x130   :  { %777 = vst.msk [vmem:[%s2141_s6 + $0xcc] sm:$0xf] %vm725_vm3, %v712_v2  ;;  %v681_v4 = vpack.c.bf16 %v617_v3, %v617_v3 }
 0x131   :  { %v567_v5 = vpop.f32.mrf.mxu2 }
 0x132   :  { %746 = vst.msk [vmem:[%s2141_s6 + $0x50] sm:$0xf] %vm725_vm3, %v681_v4  ;;  %v568_v6 = vadd.f32 %v1379_v42, %v567_v5  ;;  %v933_v9 = vpop.f32.mrf.mxu3 }
 0x133   :  { %1016 = vst.msk [vmem:[%s2140_s7 + $0x1a0] sm:$0xff] %vm963_vm2, %v933_v9  ;;  %v489_v10 = vpop.f32.mrf.mxu0 }
 0x134   :  { %v649_v11 = vmax.f32 %v568_v6, 0.0  ;;  %v490_v12 = vadd.f32 %v1379_v42, %v489_v10  ;;  %v855_v13 = vpop.f32.mrf.mxu1 }
 0x135   :  { %985 = vst.msk [vmem:[%s2140_s7 + $0xa8] sm:$0xff] %vm963_vm2, %v855_v13 }
 0x136   :  { %v713_v14 = vpack.c.bf16 %v649_v11, %v649_v11  ;;  %v618_v15 = vmax.f32 %v490_v12, 0.0 }
 0x138   :  { %778 = vst.msk [vmem:[%s2141_s6 + $0xd0] sm:$0xf] %vm725_vm3, %v713_v14  ;;  %v682_v16 = vpack.c.bf16 %v618_v15, %v618_v15 }
 0x139   :  { %v569_v17 = vpop.f32.mrf.mxu2 }
 0x13a   :  { %747 = vst.msk [vmem:[%s2141_s6 + $0x54] sm:$0xf] %vm725_vm3, %v682_v16  ;;  %v570_v8 = vadd.f32 %v1379_v42, %v569_v17  ;;  %v935_v18 = vpop.f32.mrf.mxu3 }
 0x13b   :  { %1017 = vst.msk [vmem:[%s2140_s7 + $0x1a8] sm:$0xff] %vm963_vm2, %v935_v18  ;;  %v492_v19 = vpop.f32.mrf.mxu0 }
 0x13c   :  { %v650_v20 = vmax.f32 %v570_v8, 0.0  ;;  %v493_v21 = vadd.f32 %v1379_v42, %v492_v19  ;;  %v858_v22 = vpop.f32.mrf.mxu1 }
 0x13d   :  { %986 = vst.msk [vmem:[%s2140_s7 + $0xb0] sm:$0xff] %vm963_vm2, %v858_v22 }
 0x13e   :  { %v714_v23 = vpack.c.bf16 %v650_v20, %v650_v20  ;;  %v619_v24 = vmax.f32 %v493_v21, 0.0 }
 0x140   :  { %779 = vst.msk [vmem:[%s2141_s6 + $0xd4] sm:$0xf] %vm725_vm3, %v714_v23  ;;  %v683_v25 = vpack.c.bf16 %v619_v24, %v619_v24 }
 0x141   :  { %v572_v26 = vpop.f32.mrf.mxu2 }
 0x142   :  { %748 = vst.msk [vmem:[%s2141_s6 + $0x58] sm:$0xf] %vm725_vm3, %v683_v25  ;;  %v573_v27 = vadd.f32 %v1379_v42, %v572_v26  ;;  %v938_v28 = vpop.f32.mrf.mxu3 }
 0x143   :  { %1018 = vst.msk [vmem:[%s2140_s7 + $0x1b0] sm:$0xff] %vm963_vm2, %v938_v28  ;;  %v494_v29 = vpop.f32.mrf.mxu0 }
 0x144   :  { %v651_v30 = vmax.f32 %v573_v27, 0.0  ;;  %v495_v31 = vadd.f32 %v1379_v42, %v494_v29  ;;  %v860_v32 = vpop.f32.mrf.mxu1 }
 0x145   :  { %987 = vst.msk [vmem:[%s2140_s7 + $0xb8] sm:$0xff] %vm963_vm2, %v860_v32 }
 0x146   :  { %v715_v33 = vpack.c.bf16 %v651_v30, %v651_v30  ;;  %v620_v34 = vmax.f32 %v495_v31, 0.0 }
 0x148   :  { %780 = vst.msk [vmem:[%s2141_s6 + $0xd8] sm:$0xf] %vm725_vm3, %v715_v33  ;;  %v684_v35 = vpack.c.bf16 %v620_v34, %v620_v34 }
 0x149   :  { %v574_v36 = vpop.f32.mrf.mxu2 }
 0x14a   :  { %749 = vst.msk [vmem:[%s2141_s6 + $0x5c] sm:$0xf] %vm725_vm3, %v684_v35  ;;  %v575_v37 = vadd.f32 %v1379_v42, %v574_v36  ;;  %v940_v38 = vpop.f32.mrf.mxu3 }
 0x14b   :  { %1019 = vst.msk [vmem:[%s2140_s7 + $0x1b8] sm:$0xff] %vm963_vm2, %v940_v38  ;;  %v497_v39 = vpop.f32.mrf.mxu0 }
 0x14c   :  { %v652_v7 = vmax.f32 %v575_v37, 0.0  ;;  %v498_v40 = vadd.f32 %v1379_v42, %v497_v39  ;;  %v863_v41 = vpop.f32.mrf.mxu1 }
 0x14d   :  { %988 = vst.msk [vmem:[%s2140_s7 + $0xc0] sm:$0xff] %vm963_vm2, %v863_v41 }
 0x14e   :  { %v716_v43 = vpack.c.bf16 %v652_v7, %v652_v7  ;;  %v621_v44 = vmax.f32 %v498_v40, 0.0 }
 0x150   :  { %781 = vst.msk [vmem:[%s2141_s6 + $0xdc] sm:$0xf] %vm725_vm3, %v716_v43  ;;  %v685_v45 = vpack.c.bf16 %v621_v44, %v621_v44 }
 0x151   :  { %v577_v46 = vpop.f32.mrf.mxu2 }
 0x152   :  { %750 = vst.msk [vmem:[%s2141_s6 + $0x60] sm:$0xf] %vm725_vm3, %v685_v45  ;;  %v578_v47 = vadd.f32 %v1379_v42, %v577_v46  ;;  %v943_v48 = vpop.f32.mrf.mxu3 }
 0x153   :  { %1020 = vst.msk [vmem:[%s2140_s7 + $0x1c0] sm:$0xff] %vm963_vm2, %v943_v48  ;;  %v499_v49 = vpop.f32.mrf.mxu0 }
 0x154   :  { %v653_v50 = vmax.f32 %v578_v47, 0.0  ;;  %v500_v52 = vadd.f32 %v2002_v51, %v499_v49  ;;  %v865_v53 = vpop.f32.mrf.mxu1 }
 0x155   :  { %989 = vst.msk [vmem:[%s2140_s7 + $0xc8] sm:$0xff] %vm963_vm2, %v865_v53 }
 0x156   :  { %v717_v42 = vpack.c.bf16 %v653_v50, %v653_v50  ;;  %v622_v54 = vmax.f32 %v500_v52, 0.0 }
 0x158   :  { %782 = vst.msk [vmem:[%s2141_s6 + $0xe0] sm:$0xf] %vm725_vm3, %v717_v42  ;;  %v686_v55 = vpack.c.bf16 %v622_v54, %v622_v54 }
 0x159   :  { %v579_v56 = vpop.f32.mrf.mxu2 }
 0x15a   :  { %751 = vst.msk [vmem:[%s2141_s6 + $0x64] sm:$0xf] %vm725_vm3, %v686_v55  ;;  %v580_v57 = vadd.f32 %v2002_v51, %v579_v56  ;;  %v945_v58 = vpop.f32.mrf.mxu3 }
 0x15b   :  { %1021 = vst.msk [vmem:[%s2140_s7 + $0x1c8] sm:$0xff] %vm963_vm2, %v945_v58  ;;  %v502_v59 = vpop.f32.mrf.mxu0 }
 0x15c   :  { %v654_v60 = vmax.f32 %v580_v57, 0.0  ;;  %v503_v61 = vadd.f32 %v2002_v51, %v502_v59  ;;  %v868_v62 = vpop.f32.mrf.mxu1 }
 0x15d   :  { %990 = vst.msk [vmem:[%s2140_s7 + $0xd0] sm:$0xff] %vm963_vm2, %v868_v62 }
 0x15e   :  { %v718_v63 = vpack.c.bf16 %v654_v60, %v654_v60  ;;  %v623_v0 = vmax.f32 %v503_v61, 0.0 }
 0x160   :  { %783 = vst.msk [vmem:[%s2141_s6 + $0xe4] sm:$0xf] %vm725_vm3, %v718_v63  ;;  %v687_v1 = vpack.c.bf16 %v623_v0, %v623_v0 }
 0x161   :  { %v582_v2 = vpop.f32.mrf.mxu2 }
 0x162   :  { %752 = vst.msk [vmem:[%s2141_s6 + $0x68] sm:$0xf] %vm725_vm3, %v687_v1  ;;  %v583_v3 = vadd.f32 %v2002_v51, %v582_v2  ;;  %v948_v4 = vpop.f32.mrf.mxu3 }
 0x163   :  { %1022 = vst.msk [vmem:[%s2140_s7 + $0x1d0] sm:$0xff] %vm963_vm2, %v948_v4  ;;  %v504_v5 = vpop.f32.mrf.mxu0 }
 0x164   :  { %v655_v6 = vmax.f32 %v583_v3, 0.0  ;;  %v505_v9 = vadd.f32 %v2002_v51, %v504_v5  ;;  %v870_v10 = vpop.f32.mrf.mxu1 }
 0x165   :  { %991 = vst.msk [vmem:[%s2140_s7 + $0xd8] sm:$0xff] %vm963_vm2, %v870_v10 }
 0x166   :  { %v719_v11 = vpack.c.bf16 %v655_v6, %v655_v6  ;;  %v624_v12 = vmax.f32 %v505_v9, 0.0 }
 0x168   :  { %784 = vst.msk [vmem:[%s2141_s6 + $0xe8] sm:$0xf] %vm725_vm3, %v719_v11  ;;  %v688_v13 = vpack.c.bf16 %v624_v12, %v624_v12 }
 0x169   :  { %v584_v14 = vpop.f32.mrf.mxu2 }
 0x16a   :  { %753 = vst.msk [vmem:[%s2141_s6 + $0x6c] sm:$0xf] %vm725_vm3, %v688_v13  ;;  %v585_v15 = vadd.f32 %v2002_v51, %v584_v14  ;;  %v950_v16 = vpop.f32.mrf.mxu3 }
 0x16b   :  { %1023 = vst.msk [vmem:[%s2140_s7 + $0x1d8] sm:$0xff] %vm963_vm2, %v950_v16  ;;  %v507_v17 = vpop.f32.mrf.mxu0 }
 0x16c   :  { %v656_v8 = vmax.f32 %v585_v15, 0.0  ;;  %v508_v18 = vadd.f32 %v2002_v51, %v507_v17  ;;  %v873_v19 = vpop.f32.mrf.mxu1 }
 0x16d   :  { %992 = vst.msk [vmem:[%s2140_s7 + $0xe0] sm:$0xff] %vm963_vm2, %v873_v19 }
 0x16e   :  { %v720_v20 = vpack.c.bf16 %v656_v8, %v656_v8  ;;  %v625_v21 = vmax.f32 %v508_v18, 0.0 }
 0x170   :  { %785 = vst.msk [vmem:[%s2141_s6 + $0xec] sm:$0xf] %vm725_vm3, %v720_v20  ;;  %v689_v22 = vpack.c.bf16 %v625_v21, %v625_v21 }
 0x171   :  { %v587_v23 = vpop.f32.mrf.mxu2 }
 0x172   :  { %754 = vst.msk [vmem:[%s2141_s6 + $0x70] sm:$0xf] %vm725_vm3, %v689_v22  ;;  %v588_v24 = vadd.f32 %v2002_v51, %v587_v23  ;;  %v953_v25 = vpop.f32.mrf.mxu3 }
 0x173   :  { %1024 = vst.msk [vmem:[%s2140_s7 + $0x1e0] sm:$0xff] %vm963_vm2, %v953_v25  ;;  %v509_v26 = vpop.f32.mrf.mxu0 }
 0x174   :  { %v657_v27 = vmax.f32 %v588_v24, 0.0  ;;  %v510_v28 = vadd.f32 %v2002_v51, %v509_v26  ;;  %v875_v29 = vpop.f32.mrf.mxu1 }
 0x175   :  { %993 = vst.msk [vmem:[%s2140_s7 + $0xe8] sm:$0xff] %vm963_vm2, %v875_v29 }
 0x176   :  { %v721_v30 = vpack.c.bf16 %v657_v27, %v657_v27  ;;  %v626_v31 = vmax.f32 %v510_v28, 0.0 }
 0x178   :  { %786 = vst.msk [vmem:[%s2141_s6 + $0xf0] sm:$0xf] %vm725_vm3, %v721_v30  ;;  %v690_v32 = vpack.c.bf16 %v626_v31, %v626_v31 }
 0x179   :  { %v589_v33 = vpop.f32.mrf.mxu2 }
 0x17a   :  { %755 = vst.msk [vmem:[%s2141_s6 + $0x74] sm:$0xf] %vm725_vm3, %v690_v32  ;;  %v590_v34 = vadd.f32 %v2002_v51, %v589_v33  ;;  %v955_v35 = vpop.f32.mrf.mxu3 }
 0x17b   :  { %1025 = vst.msk [vmem:[%s2140_s7 + $0x1e8] sm:$0xff] %vm963_vm2, %v955_v35  ;;  %v512_v36 = vpop.f32.mrf.mxu0 }
 0x17c   :  { %v658_v37 = vmax.f32 %v590_v34, 0.0  ;;  %v513_v38 = vadd.f32 %v2002_v51, %v512_v36  ;;  %v878_v39 = vpop.f32.mrf.mxu1 }
 0x17d   :  { %994 = vst.msk [vmem:[%s2140_s7 + $0xf0] sm:$0xff] %vm963_vm2, %v878_v39 }
 0x17e   :  { %v722_v7 = vpack.c.bf16 %v658_v37, %v658_v37  ;;  %v627_v40 = vmax.f32 %v513_v38, 0.0 }
 0x180   :  { %787 = vst.msk [vmem:[%s2141_s6 + $0xf4] sm:$0xf] %vm725_vm3, %v722_v7  ;;  %v691_v41 = vpack.c.bf16 %v627_v40, %v627_v40 }
 0x181   :  { %v592_v43 = vpop.f32.mrf.mxu2 }
 0x182   :  { %756 = vst.msk [vmem:[%s2141_s6 + $0x78] sm:$0xf] %vm725_vm3, %v691_v41  ;;  %v593_v44 = vadd.f32 %v2002_v51, %v592_v43  ;;  %v958_v45 = vpop.f32.mrf.mxu3 }
 0x183   :  { %1026 = vst.msk [vmem:[%s2140_s7 + $0x1f0] sm:$0xff] %vm963_vm2, %v958_v45  ;;  %v514_v46 = vpop.f32.mrf.mxu0 }
 0x184   :  { %v659_v47 = vmax.f32 %v593_v44, 0.0  ;;  %v515_v48 = vadd.f32 %v2002_v51, %v514_v46  ;;  %v880_v49 = vpop.f32.mrf.mxu1 }
 0x185   :  { %995 = vst.msk [vmem:[%s2140_s7 + $0xf8] sm:$0xff] %vm963_vm2, %v880_v49 }
 0x186   :  { %v723_v50 = vpack.c.bf16 %v659_v47, %v659_v47  ;;  %v628_v52 = vmax.f32 %v515_v48, 0.0 }
 0x188   :  { %788 = vst.msk [vmem:[%s2141_s6 + $0xf8] sm:$0xf] %vm725_vm3, %v723_v50  ;;  %v692_v53 = vpack.c.bf16 %v628_v52, %v628_v52 }
 0x189   :  { %v594_v42 = vpop.f32.mrf.mxu2 }
 0x18a   :  { %757 = vst.msk [vmem:[%s2141_s6 + $0x7c] sm:$0xf] %vm725_vm3, %v692_v53  ;;  %v595_v54 = vadd.f32 %v2002_v51, %v594_v42  ;;  %v960_v55 = vpop.f32.mrf.mxu3 }
 0x18b   :  { %1027 = vst.msk [vmem:[%s2140_s7 + $0x1f8] sm:$0xff] %vm963_vm2, %v960_v55 }
 0x18c   :  { %v660_v56 = vmax.f32 %v595_v54, 0.0 }
 0x18e   :  { %v724_v57 = vpack.c.bf16 %v660_v56, %v660_v56 }
 0x190   :  { %789 = vst.msk [vmem:[%s2141_s6 + $0xfc] sm:$0xf] %vm725_vm3, %v724_v57 }

// kernel: preact_bottleneck_forward.3
= control target key start
LH: loop header
LB: loop body
LE: loop exit
PB: predicated region body
PF: predicated region fallthrough
CT: control target
= control target key end

     0   :  { %s4107_s18 = smov 0   ;;  %s5679_s0 = inlined_call_operand.vmem [shape: bf16[2,18,18,4], index: 0, kind: input, shape index: {}]   ;;  %s5680_s1 = inlined_call_operand.vmem [shape: bf16[36,4], index: 1, kind: input, shape index: {}]   ;;  %s5681_s2 = inlined_call_operand.vmem [shape: f32[1,4], index: 2, kind: input, shape index: {}]   ;;  %s5682_s3 = inlined_call_operand.vmem [shape: bf16[4,16], index: 3, kind: input, shape index: {}]   ;;  %s5683_s4 = inlined_call_operand.vmem [shape: f32[512,16], index: 4, kind: input, shape index: {}]   ;;  %s5684_s5 = inlined_call_operand.vmem [shape: f32[512,16], index: 5, kind: output, shape index: {}]  }
   0x1 LB: > { %s4113_s19 = sadd.s32 4294967295, %s4067_s18   ;;  %p3572_p0 = scmp.ge.s32.totalorder %s4067_s18, 1  ;;  %s4067_s18 = sphi %s4107_s18, %s15_s18  }
   0x2   : > { %p198_p1 = scmp.lt.s32.totalorder %s4067_s18, 3 }
   0x4   : > { %p199_p2 = pnand %p3572_p0, %p198_p1 }
   0x5   : > { %p231_p3 = scmp.lt.s32.totalorder (!%p199_p2), %s4113_s19, 1  ;;  %s4069_s25 = smov (!%p199_p2), 12  }
   0x6   : > { %202 = sbr.rel (%p199_p2) target bundleno = 788 (0x314), region = 40  ;;  %s4070_s26 = smov (!%p199_p2), 8  }
   0x7   : > { %s4071_s27 = smov (!%p199_p2), 24   ;;  %s4072_s28 = smov (!%p199_p2), 16  }
   0x8   : > { %s4073_s29 = smov (!%p199_p2), 4   ;;  %s4074_s30 = smov (!%p199_p2), 20  }
   0x9   : > { %s4075_s6 = smov (!%p199_p2), 28   ;;  %s4076_s7 = smov (!%p199_p2), 32  }
   0xb   : > { %s232_s20 = scalar_select %p231_p3, %s4113_s19, 1  ;;  %vm748_vm0 = vcmask 1042432   ;;  %vm749_vm1 = vcmask 1046532   ;;  %vm297_vm2 = vsmask.f32 3328  ;;  %vm2817_vm6 = vcmask 31744  }
   0xc   : > { %vm298_vm3 = vsmask.f32 7440  ;;  %vm4131_vm4 = vmor %vm748_vm0, %vm749_vm1  ;;  %vm2866_vm7 = vcmask 64512   ;;  %vm3154_vm8 = vcmask 1041408   ;;  %vm2899_vm9 = vcmask 97280  }
   0xd   : > { %s4042_s21 = smul.u32 216, %s232_s20  ;;  %vm4176_vm5 = vmor %vm297_vm2, %vm298_vm3  ;;  %vm2932_vm10 = vcmask 130048   ;;  %vm2965_vm11 = vcmask 162816   ;;  %vm2998_vm12 = vcmask 195584   ;;  %vm3031_vm13 = vcmask 228352   ;;  %s3574_s20 = sshll.u32 %s4113_s19, 5 }
   0xe   : > { %vm3064_vm14 = vcmask 261120   ;;  %vm3121_vm15 = vcmask 293888   ;;  %p237_p4 = scmp.lt.s32.totalorder %s3574_s20, 63 }
   0xf   : > { %s4122_s24 = scalar_lea.vmem %s5679_s0, %s4042_s21 }
  0x10   : > { %v4004_v0 = vld [vmem:[%s4122_s24 + $0xc] sm:$0xff]  ;;  %v250_v1 = vld [vmem:[%s4122_s24 + $0x4] sm:$0xf]  ;;  %v4127_v2 = vld [vmem:[%s4122_s24 + $0x8] sm:$0x1]  ;;  %s5690_s20 = smov (!%p237_p4, %s3574_s20), 63 }
  0x11   : > { %v320_v3 = vshll.u32 %v4127_v2, 16  ;;  %v684_v4 = vld [vmem:[%s4122_s24] sm:$0xe]  ;;  %v753_v6 = vrot.slane %v250_v1, 5  ;;  %v756_v7 = vrot.slane %v4127_v2, 5  ;;  %2369 = vrot.lane.b32.xlu1 %v4004_v0, %s4069_s25  ;;  %v314_v9 = vshrl.u32 %v250_v1, 16 }
  0x12   : > { %v3578_v8 = vrot.slane %v684_v4, 9  ;;  %v4138_v10 = vld [vmem:[%s4122_s24 + $0x64] sm:$0xf]  ;;  %v4141_v11 = vld [vmem:[%s4122_s24 + $0x68] sm:$0x1]  ;;  %v4012_v16 = vld [vmem:[%s4122_s24 + $0x6c] sm:$0xff] }
  0x13   : > { %v755_v12 = vrot.slane %v753_v6, 4  ;;  %v692_v13 = vld [vmem:[%s4122_s24 + $0x60] sm:$0xe]  ;;  %v809_v14 = vrot.slane %v4138_v10, 5  ;;  %v812_v15 = vrot.slane %v4141_v11, 5  ;;  %v310_v21 = vshll.u32 %v250_v1, 16  ;;  %2385 = vrot.lane.b32.xlu2 %v4012_v16, %s4069_s25 }
  0x14   : > { %v754_v17 = vsel %vm4131_vm4, %v3578_v8, %v753_v6  ;;  %v3586_v18 = vrot.slane %v692_v13, 9  ;;  %v3594_v19 = vld [vmem:[%s4122_s24 + $0xc] sm:$0xf]  ;;  %v4151_v20 = vld [vmem:[%s4122_s24 + $0x10] sm:$0xf]  ;;  %v4020_v24 = vld [vmem:[%s4122_s24 + $0x18] sm:$0xff] }
  0x15   : > { %v757_v22 = vsel %vm4131_vm4, %v755_v12, %v756_v7  ;;  %v2225_v23 = vunpack.c.l.b16 %v754_v17  ;;  %v811_v25 = vrot.slane %v809_v14, 4  ;;  %v913_v26 = vshrl.u32 %v3594_v19, 16  ;;  %v4160_v29 = vld [vmem:[%s4122_s24 + $0x14] sm:$0x1]  ;;  %v249_v32 = vld [vmem:[%s4122_s24] sm:$0xf] }
  0x16   : > { %v2226_v27 = vunpack.c.l.b16 %v757_v22  ;;  %v810_v28 = vsel %vm4131_vm4, %v3586_v18, %v809_v14  ;;  %v916_v30 = vshll.u32 %v3594_v19, 16  ;;  %v922_v31 = vshll.u32 %v4151_v20, 16  ;;  %v3610_v45 = vld [vmem:[%s4122_s24 + $0x6c] sm:$0xf]  ;;  %v4172_v50 = vld [vmem:[%s4122_s24 + $0x70] sm:$0xf] }
  0x17   : > { %v813_v33 = vsel %vm4131_vm4, %v811_v25, %v812_v15  ;;  %v2241_v34 = vunpack.c.l.b16 %v810_v28  ;;  %v915_v35 = vrot.slane %v913_v26, 4  ;;  %v926_v36 = vshrl.u32 %v4151_v20, 16  ;;  %v4184_v2 = vld [vmem:[%s4122_s24 + $0x74] sm:$0x1]  ;;  %v3642_v12 = vld [vmem:[%s4122_s24 + $0xc] sm:$0xe] }
  0x18   : > { %v2257_v37 = vpack.c.b16 %v2226_v27, %v2225_v23  ;;  %v2242_v38 = vunpack.c.l.b16 %v813_v33  ;;  %v918_v39 = vrot.slane %v916_v30, 5  ;;  %v924_v40 = vrot.slane %v922_v31, 5  ;;  %v3674_v22 = vld [vmem:[%s4122_s24 + $0x18] sm:$0xf]  ;;  %v4198_v27 = vld [vmem:[%s4122_s24 + $0x1c] sm:$0xf] }
  0x19   : > { %v928_v41 = vrot.slane %v926_v36, 4  ;;  %v932_v42 = vshll.u32 %v4160_v29, 16  ;;  %v301_v43 = vshrl.u32 %v249_v32, 16  ;;  %v304_v44 = vshll.u32 %v249_v32, 16  ;;  %2625 = vrot.lane.b32.xlu1 %v4020_v24, %s4071_s27  ;;  %s3575_s21 = sshll.u32 %s5690_s20, 3 }
  0x1a   : > { %2273 = vrot.lane.b32.xlu0 %v2257_v37, %s4070_s26  ;;  %v2265_v46 = vpack.c.b16 %v2242_v38, %v2241_v34  ;;  %v919_v47 = vor.u32 %v918_v39, %v915_v35  ;;  %v312_v48 = vrot.slane %v310_v21, 5  ;;  %v316_v49 = vrot.slane %v314_v9, 4  ;;  %s5501_s23 = scalar_lea.vmem %s5683_s4, %s3575_s21 }
  0x1b   : > { %v929_v52 = vor.u32 %v928_v41, %v924_v40  ;;  %v934_v53 = vrot.slane %v932_v42, 5  ;;  %v303_v54 = vrot.slane %v301_v43, 4  ;;  %v306_v55 = vrot.slane %v304_v44, 5  ;;  %v265_v41 = vld [vmem:[%s4122_s24 + $0x60] sm:$0xf] }
  0x1c   : > { %v920_v56 = vrot.slane %v919_v47, 4  ;;  %v317_v57 = vor.u32 %v316_v49, %v312_v48  ;;  %v322_v58 = vrot.slane %v320_v3, 5  ;;  %v1105_v59 = vshrl.u32 %v3610_v45, 16 }
  0x1d   : > { %v930_v60 = vrot.slane %v929_v52, 4  ;;  %v307_v61 = vor.u32 %v306_v55, %v303_v54  ;;  %v1108_v62 = vshll.u32 %v3610_v45, 16  ;;  %v1114_v63 = vshll.u32 %v4172_v50, 16 }
  0x1e   : > { %v925_v0 = vsel %vm4176_vm5, %v920_v56, %v924_v40  ;;  %v318_v1 = vrot.slane %v317_v57, 4  ;;  %v1107_v4 = vrot.slane %v1105_v59, 4  ;;  %v1118_v6 = vshrl.u32 %v4172_v50, 16  ;;  %v4208_v40 = vld [vmem:[%s4122_s24 + $0x20] sm:$0x1] }
  0x1f   : > { %v935_v7 = vsel %vm4176_vm5, %v930_v60, %v934_v53  ;;  %v2401_v3 = vunpack.c.l.b16 %v925_v0  ;;  %v308_v8 = vrot.slane %v307_v61, 4  ;;  %v1110_v9 = vrot.slane %v1108_v62, 5  ;;  %v3650_v59 = vld [vmem:[%s4122_s24 + $0x6c] sm:$0xe] }
  0x20   : > { %v2402_v13 = vunpack.c.l.b16 %v935_v7  ;;  %v323_v14 = vsel %vm4176_vm5, %v318_v1, %v322_v58  ;;  %v1116_v15 = vrot.slane %v1114_v63, 5  ;;  %v1120_v16 = vrot.slane %v1118_v6, 4 }
  0x21   : > { %v313_v17 = vsel %vm4176_vm5, %v308_v8, %v312_v48  ;;  %v2146_v18 = vunpack.c.l.b16 %v323_v14  ;;  %v1111_v19 = vor.u32 %v1110_v9, %v1107_v4  ;;  %v1124_v21 = vshll.u32 %v4184_v2, 16 }
  0x22   : > { %2289 = vrot.lane.b32.xlu0 %v2265_v46, %s4070_s26  ;;  %v2433_v23 = vpack.c.b16 %v2402_v13, %v2401_v3  ;;  %v2145_v24 = vunpack.c.l.b16 %v313_v17  ;;  %v1121_v25 = vor.u32 %v1120_v16, %v1116_v15  ;;  %v3658_v26 = vrot.slane %v3642_v12, 9  ;;  %v4231_v16 = vld [vmem:[%s4122_s24 + $0x10] sm:$0xf] }
  0x23   : > { %v1112_v28 = vrot.slane %v1111_v19, 4  ;;  %v1126_v30 = vrot.slane %v1124_v21, 5  ;;  %v1362_v31 = vrot.slane %v4151_v20, 5  ;;  %v1365_v32 = vrot.slane %v4160_v29, 5 }
  0x24   : > { %2449 = vrot.lane.b32.xlu1 %v2433_v23, %s4072_s28  ;;  %v2177_v33 = vpack.c.b16 %v2146_v18, %v2145_v24  ;;  %v1122_v34 = vrot.slane %v1121_v25, 4  ;;  %v1522_v35 = vshrl.u32 %v3674_v22, 16  ;;  %v1525_v36 = vshll.u32 %v3674_v22, 16 }
  0x25   : > { %v1117_v37 = vsel %vm4176_vm5, %v1112_v28, %v1116_v15  ;;  %v1363_v38 = vsel %vm4131_vm4, %v3658_v26, %v1362_v31  ;;  %v1364_v39 = vrot.slane %v1362_v31, 4  ;;  %v1531_v20 = vshll.u32 %v4198_v27, 16 }
  0x26   : > { %v1127_v29 = vsel %vm4176_vm5, %v1122_v34, %v1126_v30  ;;  %v2417_v42 = vunpack.c.l.b16 %v1117_v37  ;;  %v2481_v43 = vunpack.c.l.b16 %v1363_v38  ;;  %v1524_v44 = vrot.slane %v1522_v35, 4  ;;  %v4244_v34 = vld [vmem:[%s4122_s24 + $0x14] sm:$0x1]  ;;  %v4247_v35 = vld [vmem:[%s4122_s24 + $0x7c] sm:$0xf] }
  0x27   : > { %v2418_v45 = vunpack.c.l.b16 %v1127_v29  ;;  %v1366_v46 = vsel %vm4131_vm4, %v1364_v39, %v1365_v32  ;;  %v1527_v47 = vrot.slane %v1525_v36, 5  ;;  %v1533_v48 = vrot.slane %v1531_v20, 5  ;;  %v4250_v20 = vld [vmem:[%s4122_s24 + $0x80] sm:$0x1] }
  0x28   : > { %v2482_v49 = vunpack.c.l.b16 %v1366_v46  ;;  %v1535_v52 = vshrl.u32 %v4198_v27, 16  ;;  %v1541_v53 = vshll.u32 %v4208_v40, 16  ;;  %v493_v54 = vshrl.u32 %v265_v41, 16 }
  0x29   : > { %v2441_v55 = vpack.c.b16 %v2418_v45, %v2417_v42  ;;  %v1528_v56 = vor.u32 %v1527_v47, %v1524_v44  ;;  %v496_v57 = vshll.u32 %v265_v41, 16  ;;  %v502_v58 = vshll.u32 %v4138_v10, 16  ;;  %v3730_v41 = vld [vmem:[%s4122_s24 + $0x78] sm:$0xe] }
  0x2a   : > { %2193 = vrot.lane.b32.xlu0 %v2177_v33, %s4073_s29  ;;  %v2513_v60 = vpack.c.b16 %v2482_v49, %v2481_v43  ;;  %v1537_v61 = vrot.slane %v1535_v52, 4  ;;  %v1543_v62 = vrot.slane %v1541_v53, 5  ;;  %v495_v63 = vrot.slane %v493_v54, 4  ;;  %v3596_v45 = vld [vmem:[%s4122_s24 + $0x18] sm:$0xf] }
  0x2b   : > { %v1529_v0 = vrot.slane %v1528_v56, 4  ;;  %v498_v1 = vrot.slane %v496_v57, 5  ;;  %v504_v4 = vrot.slane %v502_v58, 5  ;;  %v506_v6 = vshrl.u32 %v4138_v10, 16  ;;  %v251_v10 = vld [vmem:[%s4122_s24 + $0xc] sm:$0xf] }
  0x2c   : > { %2465 = vrot.lane.b32.xlu1 %v2441_v55, %s4072_s28  ;;  %2529 = vrot.lane.b32.xlu2 %v2513_v60, %s4074_s30  ;;  %v1538_v7 = vor.u32 %v1537_v61, %v1533_v48  ;;  %v512_v3 = vshll.u32 %v4141_v11, 16  ;;  %v3666_v8 = vrot.slane %v3650_v59, 9  ;;  %v1418_v9 = vrot.slane %v4172_v50, 5  ;;  %v4263_v56 = vld [vmem:[%s4122_s24 + $0x1c] sm:$0xf] }
  0x2d   : > { %v1534_v12 = vsel %vm4176_vm5, %v1529_v0, %v1533_v48  ;;  %v499_v13 = vor.u32 %v498_v1, %v495_v63  ;;  %v508_v14 = vrot.slane %v506_v6, 4  ;;  %v1421_v15 = vrot.slane %v4184_v2, 5  ;;  %v4028_v2 = vld [vmem:[%s4122_s24 + $0x78] sm:$0xff]  ;;  %v4268_v0 = vld [vmem:[%s4122_s24 + $0x20] sm:$0x1] }
  0x2e   : > { %v1539_v17 = vrot.slane %v1538_v7, 4  ;;  %v2657_v18 = vunpack.c.l.b16 %v1534_v12  ;;  %v514_v19 = vrot.slane %v512_v3, 5  ;;  %v1419_v11 = vsel %vm4131_vm4, %v3666_v8, %v1418_v9  ;;  %v3722_v8 = vld [vmem:[%s4122_s24 + $0x18] sm:$0xe] }
  0x2f   : > { %v500_v50 = vrot.slane %v499_v13, 4  ;;  %v509_v21 = vor.u32 %v508_v14, %v504_v4  ;;  %v1420_v22 = vrot.slane %v1418_v9, 4  ;;  %v2497_v23 = vunpack.c.l.b16 %v1419_v11 }
  0x30   : > { %v1544_v24 = vsel %vm4176_vm5, %v1539_v17, %v1543_v62  ;;  %v325_v25 = vshrl.u32 %v251_v10, 16  ;;  %v328_v26 = vshll.u32 %v251_v10, 16  ;;  %v334_v28 = vshll.u32 %v4231_v16, 16 }
  0x31   : > { %v2658_v30 = vunpack.c.l.b16 %v1544_v24  ;;  %v505_v31 = vsel %vm4176_vm5, %v500_v50, %v504_v4  ;;  %v510_v32 = vrot.slane %v509_v21, 4  ;;  %v1422_v33 = vsel %vm4131_vm4, %v1420_v22, %v1421_v15  ;;  %v693_v22 = vld [vmem:[%s4122_s24 + $0x6c] sm:$0xe] }
  0x32   : > { %v2161_v36 = vunpack.c.l.b16 %v505_v31  ;;  %v2498_v37 = vunpack.c.l.b16 %v1422_v33  ;;  %v327_v38 = vrot.slane %v325_v25, 4  ;;  %v330_v39 = vrot.slane %v328_v26, 5  ;;  %v4284_v26 = vld [vmem:[%s4122_s24 + $0x70] sm:$0xf] }
  0x33   : > { %v2689_v29 = vpack.c.b16 %v2658_v30, %v2657_v18  ;;  %v515_v42 = vsel %vm4176_vm5, %v510_v32, %v514_v19  ;;  %v336_v43 = vrot.slane %v334_v28, 5  ;;  %v338_v44 = vshrl.u32 %v4231_v16, 16  ;;  %v4287_v28 = vld [vmem:[%s4122_s24 + $0x74] sm:$0x1] }
  0x34   : > { %2641 = vrot.lane.b32.xlu1 %v4028_v2, %s4071_s27  ;;  %v2162_v46 = vunpack.c.l.b16 %v515_v42  ;;  %v2521_v47 = vpack.c.b16 %v2498_v37, %v2497_v23  ;;  %v331_v48 = vor.u32 %v330_v39, %v327_v38  ;;  %v344_v49 = vshll.u32 %v4244_v34, 16 }
  0x35   : > { %2705 = vrot.lane.b32.xlu0 %v2689_v29, %s4075_s6  ;;  %v340_v52 = vrot.slane %v338_v44, 4  ;;  %v3746_v53 = vrot.slane %v3730_v41, 9  ;;  %v2027_v54 = vrot.slane %v4247_v35, 5  ;;  %v2030_v55 = vrot.slane %v4250_v20, 5 }
  0x36   : > { %v2185_v57 = vpack.c.b16 %v2162_v46, %v2161_v36  ;;  %v332_v58 = vrot.slane %v331_v48, 4  ;;  %v346_v59 = vrot.slane %v344_v49, 5  ;;  %v937_v60 = vshrl.u32 %v3596_v45, 16  ;;  %v3690_v36 = vld [vmem:[%s4122_s24 + $0x78] sm:$0xf] }
  0x37   : > { %v341_v61 = vor.u32 %v340_v52, %v336_v43  ;;  %v2028_v62 = vsel %vm4131_vm4, %v3746_v53, %v2027_v54  ;;  %v2029_v63 = vrot.slane %v2027_v54, 4  ;;  %v940_v1 = vshll.u32 %v3596_v45, 16  ;;  %v3643_v53 = vld [vmem:[%s4122_s24 + $0x18] sm:$0xe] }
  0x38   : > { %2209 = vrot.lane.b32.xlu2 %v2185_v57, %s4073_s29  ;;  %v337_v4 = vsel %vm4176_vm5, %v332_v58, %v336_v43  ;;  %v2753_v6 = vunpack.c.l.b16 %v2028_v62  ;;  %v939_v7 = vrot.slane %v937_v60, 4  ;;  %v946_v3 = vshll.u32 %v4263_v56, 16 }
  0x39   : > { %v342_v9 = vrot.slane %v341_v61, 4  ;;  %v2147_v12 = vunpack.c.l.b16 %v337_v4  ;;  %v2031_v13 = vsel %vm4131_vm4, %v2029_v63, %v2030_v55  ;;  %v942_v14 = vrot.slane %v940_v1, 5  ;;  %v3676_v63 = vld [vmem:[%s4122_s24 + $0x24] sm:$0xf] }
  0x3a   : > { %v2754_v15 = vunpack.c.l.b16 %v2031_v13  ;;  %v948_v10 = vrot.slane %v946_v3, 5  ;;  %v950_v17 = vshrl.u32 %v4263_v56, 16  ;;  %v956_v18 = vshll.u32 %v4268_v0, 16  ;;  %v4317_v13 = vld [vmem:[%s4122_s24 + $0x28] sm:$0xf] }
  0x3b   : > { %v347_v19 = vsel %vm4176_vm5, %v342_v9, %v346_v59  ;;  %v943_v11 = vor.u32 %v942_v14, %v939_v7  ;;  %v3738_v50 = vrot.slane %v3722_v8, 9  ;;  %v1971_v21 = vrot.slane %v4198_v27, 5 }
  0x3c   : > { %v2148_v23 = vunpack.c.l.b16 %v347_v19  ;;  %v2777_v24 = vpack.c.b16 %v2754_v15, %v2753_v6  ;;  %v952_v2 = vrot.slane %v950_v17, 4  ;;  %v958_v25 = vrot.slane %v956_v18, 5 }
  0x3d   : > { %2545 = vrot.lane.b32.xlu0 %v2521_v47, %s4074_s30  ;;  %v944_v30 = vrot.slane %v943_v11, 4  ;;  %v1972_v31 = vsel %vm4131_vm4, %v3738_v50, %v1971_v21  ;;  %v1973_v32 = vrot.slane %v1971_v21, 4  ;;  %v1974_v33 = vrot.slane %v4208_v40, 5 }
  0x3e   : > { %v2178_v27 = vpack.c.b16 %v2148_v23, %v2147_v12  ;;  %v953_v37 = vor.u32 %v952_v2, %v948_v10  ;;  %v2737_v38 = vunpack.c.l.b16 %v1972_v31  ;;  %v3587_v39 = vrot.slane %v693_v22, 9  ;;  %v685_v22 = vld [vmem:[%s4122_s24 + $0xc] sm:$0xe]  ;;  %v4005_v23 = vld [vmem:[%s4122_s24 + $0x18] sm:$0xff] }
  0x3f   : > { %v949_v41 = vsel %vm4176_vm5, %v944_v30, %v948_v10  ;;  %v1975_v29 = vsel %vm4131_vm4, %v1973_v32, %v1974_v33  ;;  %v816_v42 = vrot.slane %v4284_v26, 5  ;;  %v819_v43 = vrot.slane %v4287_v28, 5 }
  0x40   : > { %2195 = vrot.lane.b32.xlu1 %v2178_v27, %s4073_s29  ;;  %v954_v44 = vrot.slane %v953_v37, 4  ;;  %v2403_v40 = vunpack.c.l.b16 %v949_v41  ;;  %v2738_v45 = vunpack.c.l.b16 %v1975_v29  ;;  %v1714_v46 = vshrl.u32 %v3690_v36, 16  ;;  %v4334_v27 = vld [vmem:[%s4122_s24 + $0x7c] sm:$0xf]  ;;  %v3651_v29 = vld [vmem:[%s4122_s24 + $0x78] sm:$0xe] }
  0x41   : > { %v817_v47 = vsel %vm4131_vm4, %v3587_v39, %v816_v42  ;;  %v818_v48 = vrot.slane %v816_v42, 4  ;;  %v1717_v49 = vshll.u32 %v3690_v36, 16  ;;  %v1723_v52 = vshll.u32 %v4247_v35, 16 }
  0x42   : > { %v959_v54 = vsel %vm4176_vm5, %v954_v44, %v958_v25  ;;  %v2769_v55 = vpack.c.b16 %v2738_v45, %v2737_v38  ;;  %v2243_v57 = vunpack.c.l.b16 %v817_v47  ;;  %v1716_v58 = vrot.slane %v1714_v46, 4 }
  0x43   : > { %v2404_v59 = vunpack.c.l.b16 %v959_v54  ;;  %v820_v60 = vsel %vm4131_vm4, %v818_v48, %v819_v43  ;;  %v1719_v61 = vrot.slane %v1717_v49, 5  ;;  %v1725_v62 = vrot.slane %v1723_v52, 5 }
  0x44   : > { %2785 = vrot.lane.b32.xlu2 %v2769_v55, %s4076_s7  ;;  %v2244_v1 = vunpack.c.l.b16 %v820_v60  ;;  %v1727_v4 = vshrl.u32 %v4247_v35, 16  ;;  %v1733_v6 = vshll.u32 %v4250_v20, 16  ;;  %v3659_v7 = vrot.slane %v3643_v53, 9  ;;  %v4346_v53 = vld [vmem:[%s4122_s24 + $0x80] sm:$0x1] }
  0x45   : > { %2801 = vrot.lane.b32.xlu0 %v2777_v24, %s4076_s7  ;;  %v2434_v3 = vpack.c.b16 %v2404_v59, %v2403_v40  ;;  %v1720_v8 = vor.u32 %v1719_v61, %v1716_v58  ;;  %v1369_v9 = vrot.slane %v4263_v56, 5  ;;  %v1372_v12 = vrot.slane %v4268_v0, 5  ;;  %v4323_v0 = vld [vmem:[%s4122_s24 + $0x2c] sm:$0x1] }
  0x46   : > { %v2266_v14 = vpack.c.b16 %v2244_v1, %v2243_v57  ;;  %v1729_v15 = vrot.slane %v1727_v4, 4  ;;  %v1735_v10 = vrot.slane %v1733_v6, 5  ;;  %v1546_v35 = vshrl.u32 %v3676_v63, 16  ;;  %v267_v59 = vld [vmem:[%s4122_s24 + $0x6c] sm:$0xf] }
  0x47   : > { %v1721_v17 = vrot.slane %v1720_v8, 4  ;;  %v1370_v20 = vsel %vm4131_vm4, %v3659_v7, %v1369_v9  ;;  %v1371_v18 = vrot.slane %v1369_v9, 4  ;;  %v1549_v19 = vshll.u32 %v3676_v63, 16 }
  0x48   : > { %2451 = vrot.lane.b32.xlu1 %v2434_v3, %s4072_s28  ;;  %v1730_v56 = vor.u32 %v1729_v15, %v1725_v62  ;;  %v2483_v11 = vunpack.c.l.b16 %v1370_v20  ;;  %v1548_v50 = vrot.slane %v1546_v35, 4  ;;  %v1555_v21 = vshll.u32 %v4317_v13, 16  ;;  %v3693_v20 = vld [vmem:[%s4122_s24 + $0x88] sm:$0xf] }
  0x49   : > { %v1726_v24 = vsel %vm4176_vm5, %v1721_v17, %v1725_v62  ;;  %v1373_v2 = vsel %vm4131_vm4, %v1371_v18, %v1372_v12  ;;  %v1551_v25 = vrot.slane %v1549_v19, 5  ;;  %v1559_v30 = vshrl.u32 %v4317_v13, 16 }
  0x4a   : > { %v1731_v31 = vrot.slane %v1730_v56, 4  ;;  %v2673_v32 = vunpack.c.l.b16 %v1726_v24  ;;  %v2484_v33 = vunpack.c.l.b16 %v1373_v2  ;;  %v1557_v36 = vrot.slane %v1555_v21, 5  ;;  %v3731_v21 = vld [vmem:[%s4122_s24 + $0x84] sm:$0xe] }
  0x4b   : > { %v1552_v37 = vor.u32 %v1551_v25, %v1548_v50  ;;  %v1561_v38 = vrot.slane %v1559_v30, 4  ;;  %v1565_v39 = vshll.u32 %v4323_v0, 16  ;;  %v3579_v41 = vrot.slane %v685_v22, 9  ;;  %v3715_v50 = vld [vmem:[%s4122_s24 + $0x8c] sm:$0x1] }
  0x4c   : > { %v1736_v42 = vsel %vm4176_vm5, %v1731_v31, %v1735_v10  ;;  %v2514_v43 = vpack.c.b16 %v2484_v33, %v2483_v11  ;;  %v760_v44 = vrot.slane %v4231_v16, 5  ;;  %v763_v40 = vrot.slane %v4244_v34, 5  ;;  %v3692_v25 = vld [vmem:[%s4122_s24 + $0x84] sm:$0xf] }
  0x4d   : > { %2371 = vrot.lane.b32.xlu0 %v4005_v23, %s4069_s25  ;;  %v2674_v45 = vunpack.c.l.b16 %v1736_v42  ;;  %v1553_v46 = vrot.slane %v1552_v37, 4  ;;  %v1562_v47 = vor.u32 %v1561_v38, %v1557_v36  ;;  %v1567_v48 = vrot.slane %v1565_v39, 5  ;;  %v4013_v42 = vld [vmem:[%s4122_s24 + $0x78] sm:$0xff] }
  0x4e   : > { %v761_v49 = vsel %vm4131_vm4, %v3579_v41, %v760_v44  ;;  %v762_v52 = vrot.slane %v760_v44, 4  ;;  %v3667_v54 = vrot.slane %v3651_v29, 9  ;;  %v1425_v55 = vrot.slane %v4334_v27, 5 }
  0x4f   : > { %v2697_v57 = vpack.c.b16 %v2674_v45, %v2673_v32  ;;  %v1558_v16 = vsel %vm4176_vm5, %v1553_v46, %v1557_v36  ;;  %v1563_v34 = vrot.slane %v1562_v47, 4  ;;  %v2227_v58 = vunpack.c.l.b16 %v761_v49 }
  0x50   : > { %2291 = vrot.lane.b32.xlu1 %v2266_v14, %s4070_s26  ;;  %v2659_v60 = vunpack.c.l.b16 %v1558_v16  ;;  %v764_v61 = vsel %vm4131_vm4, %v762_v52, %v763_v40  ;;  %v1426_v62 = vsel %vm4131_vm4, %v3667_v54, %v1425_v55  ;;  %v1427_v63 = vrot.slane %v1425_v55, 4  ;;  %v3723_v14 = vld [vmem:[%s4122_s24 + $0x24] sm:$0xe] }
  0x51   : > { %2721 = vrot.lane.b32.xlu2 %v2697_v57, %s4075_s6  ;;  %v1568_v1 = vsel %vm4176_vm5, %v1563_v34, %v1567_v48  ;;  %v2228_v4 = vunpack.c.l.b16 %v764_v61  ;;  %v1428_v6 = vrot.slane %v4346_v53, 5  ;;  %v2499_v7 = vunpack.c.l.b16 %v1426_v62  ;;  %v3612_v48 = vld [vmem:[%s4122_s24 + $0x78] sm:$0xf] }
  0x52   : > { %v2660_v3 = vunpack.c.l.b16 %v1568_v1  ;;  %v517_v8 = vshrl.u32 %v267_v59, 16  ;;  %v520_v9 = vshll.u32 %v267_v59, 16  ;;  %v526_v12 = vshll.u32 %v4284_v26, 16 }
  0x53   : > { %v2258_v15 = vpack.c.b16 %v2228_v4, %v2227_v58  ;;  %v1429_v10 = vsel %vm4131_vm4, %v1427_v63, %v1428_v6  ;;  %v530_v35 = vshrl.u32 %v4284_v26, 16  ;;  %v536_v17 = vshll.u32 %v4287_v28, 16 }
  0x54   : > { %v2690_v18 = vpack.c.b16 %v2660_v3, %v2659_v60  ;;  %v2500_v19 = vunpack.c.l.b16 %v1429_v10  ;;  %v519_v56 = vrot.slane %v517_v8, 4  ;;  %v522_v11 = vrot.slane %v520_v9, 5  ;;  %v686_v3 = vld [vmem:[%s4122_s24 + $0x18] sm:$0xe] }
  0x55   : > { %2531 = vrot.lane.b32.xlu0 %v2514_v43, %s4074_s30  ;;  %v528_v22 = vrot.slane %v526_v12, 5  ;;  %v532_v23 = vrot.slane %v530_v35, 4  ;;  %v538_v24 = vrot.slane %v536_v17, 5  ;;  %v3739_v2 = vrot.slane %v3723_v14, 9 }
  0x56   : > { %v2522_v30 = vpack.c.b16 %v2500_v19, %v2499_v7  ;;  %v523_v31 = vor.u32 %v522_v11, %v519_v56  ;;  %v1978_v26 = vrot.slane %v4317_v13, 5  ;;  %v1981_v28 = vrot.slane %v4323_v0, 5  ;;  %v4392_v7 = vld [vmem:[%s4122_s24 + $0x1c] sm:$0xf]  ;;  %v4401_v19 = vld [vmem:[%s4122_s24 + $0x20] sm:$0x1] }
  0x57   : > { %v533_v32 = vor.u32 %v532_v23, %v528_v22  ;;  %v3747_v33 = vrot.slane %v3731_v21, 9  ;;  %v2034_v36 = vrot.slane %v3693_v20, 5  ;;  %v2037_v37 = vrot.slane %v3715_v50, 5 }
  0x58   : > { %2707 = vrot.lane.b32.xlu1 %v2690_v18, %s4075_s6  ;;  %v524_v38 = vrot.slane %v523_v31, 4  ;;  %v1979_v39 = vsel %vm4131_vm4, %v3739_v2, %v1978_v26  ;;  %v1980_v41 = vrot.slane %v1978_v26, 4  ;;  %v1738_v29 = vshrl.u32 %v3692_v25, 16 }
  0x59   : > { %2275 = vrot.lane.b32.xlu2 %v2258_v15, %s4070_s26  ;;  %v534_v43 = vrot.slane %v533_v32, 4  ;;  %v2739_v13 = vunpack.c.l.b16 %v1979_v39  ;;  %v2035_v0 = vsel %vm4131_vm4, %v3747_v33, %v2034_v36  ;;  %v2036_v44 = vrot.slane %v2034_v36, 4  ;;  %v4414_v33 = vld [vmem:[%s4122_s24 + $0x2c] sm:$0x1]  ;;  %v269_v36 = vld [vmem:[%s4122_s24 + $0x78] sm:$0xf] }
  0x5a   : > { %v529_v40 = vsel %vm4176_vm5, %v524_v38, %v528_v22  ;;  %v1982_v45 = vsel %vm4131_vm4, %v1980_v41, %v1981_v28  ;;  %v2755_v46 = vunpack.c.l.b16 %v2035_v0  ;;  %v1740_v47 = vrot.slane %v1738_v29, 4 }
  0x5b   : > { %v539_v49 = vsel %vm4176_vm5, %v534_v43, %v538_v24  ;;  %v2163_v52 = vunpack.c.l.b16 %v529_v40  ;;  %v2740_v54 = vunpack.c.l.b16 %v1982_v45  ;;  %v2038_v55 = vsel %vm4131_vm4, %v2036_v44, %v2037_v37  ;;  %v4021_v37 = vld [vmem:[%s4122_s24 + $0x24] sm:$0xff] }
  0x5c   : > { %v2164_v57 = vunpack.c.l.b16 %v539_v49  ;;  %v2756_v16 = vunpack.c.l.b16 %v2038_v55  ;;  %v1741_v34 = vshll.u32 %v3692_v25, 16  ;;  %v1747_v58 = vshll.u32 %v3693_v20, 16  ;;  %v253_v55 = vld [vmem:[%s4122_s24 + $0x18] sm:$0xf] }
  0x5d   : > { %2387 = vrot.lane.b32.xlu0 %v4013_v42, %s4069_s25  ;;  %v2770_v59 = vpack.c.b16 %v2740_v54, %v2739_v13  ;;  %v1751_v60 = vshrl.u32 %v3693_v20, 16  ;;  %v1757_v61 = vshll.u32 %v3715_v50, 16  ;;  %v1129_v62 = vshrl.u32 %v3612_v48, 16  ;;  %v4436_v54 = vld [vmem:[%s4122_s24 + $0x80] sm:$0x1] }
  0x5e   : > { %v2186_v63 = vpack.c.b16 %v2164_v57, %v2163_v52  ;;  %v2778_v1 = vpack.c.b16 %v2756_v16, %v2755_v46  ;;  %v1743_v4 = vrot.slane %v1741_v34, 5  ;;  %v1749_v6 = vrot.slane %v1747_v58, 5  ;;  %v4428_v46 = vld [vmem:[%s4122_s24 + $0x7c] sm:$0xf] }
  0x5f   : > { %v1753_v8 = vrot.slane %v1751_v60, 4  ;;  %v1759_v9 = vrot.slane %v1757_v61, 5  ;;  %v1131_v12 = vrot.slane %v1129_v62, 4  ;;  %v1132_v14 = vshll.u32 %v3612_v48, 16 }
  0x60   : > { %2547 = vrot.lane.b32.xlu1 %v2522_v30, %s4074_s30  ;;  %v1744_v15 = vor.u32 %v1743_v4, %v1740_v47  ;;  %v1138_v10 = vshll.u32 %v4334_v27, 16  ;;  %v1142_v35 = vshrl.u32 %v4334_v27, 16  ;;  %v1148_v17 = vshll.u32 %v4346_v53, 16  ;;  %v3644_v27 = vld [vmem:[%s4122_s24 + $0x24] sm:$0xe] }
  0x61   : > { %2211 = vrot.lane.b32.xlu2 %v2186_v63, %s4073_s29  ;;  %v1754_v20 = vor.u32 %v1753_v8, %v1749_v6  ;;  %v1134_v18 = vrot.slane %v1132_v14, 5  ;;  %v3580_v56 = vrot.slane %v686_v3, 9  ;;  %v767_v11 = vrot.slane %v4392_v7, 5  ;;  %v4408_v30 = vld [vmem:[%s4122_s24 + $0x28] sm:$0xf] }
  0x62   : > { %v1745_v50 = vrot.slane %v1744_v15, 4  ;;  %v1140_v21 = vrot.slane %v1138_v10, 5  ;;  %v1144_v22 = vrot.slane %v1142_v35, 4  ;;  %v1150_v23 = vrot.slane %v1148_v17, 5  ;;  %v4006_v3 = vld [vmem:[%s4122_s24 + $0x24] sm:$0xff] }
  0x63   : > { %v1755_v24 = vrot.slane %v1754_v20, 4  ;;  %v1135_v53 = vor.u32 %v1134_v18, %v1131_v12  ;;  %v768_v2 = vsel %vm4131_vm4, %v3580_v56, %v767_v11  ;;  %v769_v25 = vrot.slane %v767_v11, 4  ;;  %v3724_v15 = vld [vmem:[%s4122_s24 + $0x30] sm:$0xe]  ;;  %v4450_v18 = vld [vmem:[%s4122_s24 + $0x34] sm:$0xf] }
  0x64   : > { %v1750_v31 = vsel %vm4176_vm5, %v1745_v50, %v1749_v6  ;;  %v1145_v26 = vor.u32 %v1144_v22, %v1140_v21  ;;  %v770_v28 = vrot.slane %v4401_v19, 5  ;;  %v2229_v32 = vunpack.c.l.b16 %v768_v2  ;;  %v4454_v22 = vld [vmem:[%s4122_s24 + $0x38] sm:$0x1] }
  0x65   : > { %2787 = vrot.lane.b32.xlu0 %v2770_v59, %s4076_s7  ;;  %v1760_v38 = vsel %vm4176_vm5, %v1755_v24, %v1759_v9  ;;  %v2675_v39 = vunpack.c.l.b16 %v1750_v31  ;;  %v1136_v41 = vrot.slane %v1135_v53, 4  ;;  %v3660_v29 = vrot.slane %v3644_v27, 9 }
  0x66   : > { %v2676_v42 = vunpack.c.l.b16 %v1760_v38  ;;  %v1146_v43 = vrot.slane %v1145_v26, 4  ;;  %v771_v13 = vsel %vm4131_vm4, %v769_v25, %v770_v28  ;;  %v1376_v0 = vrot.slane %v4408_v30, 5 }
  0x67   : > { %v1141_v44 = vsel %vm4176_vm5, %v1136_v41, %v1140_v21  ;;  %v2230_v40 = vunpack.c.l.b16 %v771_v13  ;;  %v1379_v45 = vrot.slane %v4414_v33, 5  ;;  %v541_v47 = vshrl.u32 %v269_v36, 16 }
  0x68   : > { %2803 = vrot.lane.b32.xlu1 %v2778_v1, %s4076_s7  ;;  %v1151_v48 = vsel %vm4176_vm5, %v1146_v43, %v1150_v23  ;;  %v2419_v49 = vunpack.c.l.b16 %v1141_v44  ;;  %v1377_v52 = vsel %vm4131_vm4, %v3660_v29, %v1376_v0  ;;  %v2698_v57 = vpack.c.b16 %v2676_v42, %v2675_v39  ;;  %v3598_v23 = vld [vmem:[%s4122_s24 + $0x24] sm:$0xf] }
  0x69   : > { %2627 = vrot.lane.b32.xlu2 %v4021_v37, %s4071_s27  ;;  %v2420_v16 = vunpack.c.l.b16 %v1151_v48  ;;  %v2259_v34 = vpack.c.b16 %v2230_v40, %v2229_v32  ;;  %v1378_v58 = vrot.slane %v1376_v0, 4  ;;  %v543_v59 = vrot.slane %v541_v47, 4  ;;  %v4029_v47 = vld [vmem:[%s4122_s24 + $0x84] sm:$0xff] }
  0x6a   : > { %v544_v60 = vshll.u32 %v269_v36, 16  ;;  %v550_v61 = vshll.u32 %v4428_v46, 16  ;;  %v554_v62 = vshrl.u32 %v4428_v46, 16  ;;  %v2485_v1 = vunpack.c.l.b16 %v1377_v52 }
  0x6b   : > { %v1380_v63 = vsel %vm4131_vm4, %v1378_v58, %v1379_v45  ;;  %v560_v4 = vshll.u32 %v4436_v54, 16  ;;  %v349_v6 = vshrl.u32 %v253_v55, 16  ;;  %v2442_v8 = vpack.c.b16 %v2420_v16, %v2419_v49 }
  0x6c   : > { %v546_v9 = vrot.slane %v544_v60, 5  ;;  %v552_v12 = vrot.slane %v550_v61, 5  ;;  %v556_v14 = vrot.slane %v554_v62, 4  ;;  %v2486_v10 = vunpack.c.l.b16 %v1380_v63 }
  0x6d   : > { %2723 = vrot.lane.b32.xlu0 %v2698_v57, %s4075_s6  ;;  %v351_v35 = vrot.slane %v349_v6, 4  ;;  %v352_v17 = vshll.u32 %v253_v55, 16  ;;  %v358_v20 = vshll.u32 %v4392_v7, 16  ;;  %v562_v50 = vrot.slane %v560_v4, 5  ;;  %v3614_v55 = vld [vmem:[%s4122_s24 + $0x84] sm:$0xf] }
  0x6e   : > { %v547_v56 = vor.u32 %v546_v9, %v543_v59  ;;  %v557_v11 = vor.u32 %v556_v14, %v552_v12  ;;  %v362_v21 = vshrl.u32 %v4392_v7, 16  ;;  %v368_v53 = vshll.u32 %v4401_v19, 16  ;;  %v4484_v59 = vld [vmem:[%s4122_s24 + $0x88] sm:$0xf]  ;;  %v4491_v6 = vld [vmem:[%s4122_s24 + $0x8c] sm:$0x1] }
  0x6f   : > { %v354_v27 = vrot.slane %v352_v17, 5  ;;  %v360_v24 = vrot.slane %v358_v20, 5  ;;  %v3740_v2 = vrot.slane %v3724_v15, 9  ;;  %v1985_v28 = vrot.slane %v4450_v18, 5  ;;  %v3694_v9 = vld [vmem:[%s4122_s24 + $0x90] sm:$0xf] }
  0x70   : > { %2373 = vrot.lane.b32.xlu1 %v4006_v3, %s4069_s25  ;;  %v548_v25 = vrot.slane %v547_v56, 4  ;;  %v558_v31 = vrot.slane %v557_v11, 4  ;;  %v364_v26 = vrot.slane %v362_v21, 4  ;;  %v370_v36 = vrot.slane %v368_v53, 5 }
  0x71   : > { %2467 = vrot.lane.b32.xlu2 %v2442_v8, %s4072_s28  ;;  %v355_v32 = vor.u32 %v354_v27, %v351_v35  ;;  %v1988_v7 = vrot.slane %v4454_v22, 5  ;;  %v961_v37 = vshrl.u32 %v3598_v23, 16  ;;  %v4468_v41 = vsel %vm4131_vm4, %v3740_v2, %v1985_v28  ;;  %v4505_v2 = vld [vmem:[%s4122_s24 + $0x98] sm:$0x1] }
  0x72   : > { %v553_v38 = vsel %vm4176_vm5, %v548_v25, %v552_v12  ;;  %v563_v19 = vsel %vm4176_vm5, %v558_v31, %v562_v50  ;;  %v365_v39 = vor.u32 %v364_v26, %v360_v24  ;;  %v1987_v13 = vrot.slane %v1985_v28, 4  ;;  %v4499_v50 = vld [vmem:[%s4122_s24 + $0x94] sm:$0xf] }
  0x73   : > { %v2165_v29 = vunpack.c.l.b16 %v553_v38  ;;  %v2166_v42 = vunpack.c.l.b16 %v563_v19  ;;  %v356_v43 = vrot.slane %v355_v32, 4  ;;  %v2515_v0 = vpack.c.b16 %v2486_v10, %v2485_v1 }
  0x74   : > { %v366_v44 = vrot.slane %v365_v39, 4  ;;  %v963_v40 = vrot.slane %v961_v37, 4  ;;  %v964_v45 = vshll.u32 %v3598_v23, 16  ;;  %v4476_v49 = vsel %vm4131_vm4, %v1987_v13, %v1988_v7  ;;  %v4014_v23 = vld [vmem:[%s4122_s24 + $0x84] sm:$0xff]  ;;  %v4509_v7 = vpop.permute.xlu2 %2385 }
  0x75   : > { %2277 = vrot.lane.b32.xlu0 %v2259_v34, %s4070_s26  ;;  %v361_v48 = vsel %vm4176_vm5, %v356_v43, %v360_v24  ;;  %v970_v52 = vshll.u32 %v4408_v30, 16  ;;  %v2187_v57 = vpack.c.b16 %v2166_v42, %v2165_v29  ;;  %v2741_v58 = vunpack.c.l.b16 %v4468_v41 }
  0x76   : > { %v371_v16 = vsel %vm4176_vm5, %v366_v44, %v370_v36  ;;  %v966_v34 = vrot.slane %v964_v45, 5  ;;  %v2149_v60 = vunpack.c.l.b16 %v361_v48  ;;  %v974_v62 = vshrl.u32 %v4408_v30, 16  ;;  %v694_v36 = vld [vmem:[%s4122_s24 + $0x78] sm:$0xe]  ;;  %v4022_v45 = vld [vmem:[%s4122_s24 + $0x30] sm:$0xff] }
  0x77   : > { %v972_v61 = vrot.slane %v970_v52, 5  ;;  %v980_v63 = vshll.u32 %v4414_v33, 16  ;;  %v2742_v1 = vunpack.c.l.b16 %v4476_v49  ;;  %v1153_v3 = vshrl.u32 %v3614_v55, 16 }
  0x78   : > { %2533 = vrot.lane.b32.xlu1 %v2515_v0, %s4074_s30  ;;  %v967_v4 = vor.u32 %v966_v34, %v963_v40  ;;  %v1156_v8 = vshll.u32 %v3614_v55, 16  ;;  %v2150_v12 = vunpack.c.l.b16 %v371_v16  ;;  %v976_v14 = vrot.slane %v974_v62, 4  ;;  %v687_v55 = vld [vmem:[%s4122_s24 + $0x24] sm:$0xe] }
  0x79   : > { %2643 = vrot.lane.b32.xlu2 %v4029_v47, %s4071_s27  ;;  %v982_v30 = vrot.slane %v980_v63, 5  ;;  %v1162_v33 = vshll.u32 %v4484_v59, 16  ;;  %v1155_v10 = vrot.slane %v1153_v3, 4  ;;  %v1166_v17 = vshrl.u32 %v4484_v59, 16  ;;  %v256_v3 = vld [vmem:[%s4122_s24 + $0x28] sm:$0xf] }
  0x7a   : > { %v968_v15 = vrot.slane %v967_v4, 4  ;;  %v1158_v35 = vrot.slane %v1156_v8, 5  ;;  %v977_v20 = vor.u32 %v976_v14, %v972_v61  ;;  %v1172_v11 = vshll.u32 %v4491_v6, 16  ;;  %v4528_v8 = vld [vmem:[%s4122_s24 + $0x2c] sm:$0x1] }
  0x7b   : > { %v1164_v56 = vrot.slane %v1162_v33, 5  ;;  %v1762_v21 = vshrl.u32 %v3694_v9, 16  ;;  %v1168_v53 = vrot.slane %v1166_v17, 4  ;;  %v1765_v25 = vshll.u32 %v3694_v9, 16 }
  0x7c   : > { %v973_v27 = vsel %vm4176_vm5, %v968_v15, %v972_v61  ;;  %v1159_v24 = vor.u32 %v1158_v35, %v1155_v10  ;;  %v2179_v31 = vpack.c.b16 %v2150_v12, %v2149_v60  ;;  %v978_v26 = vrot.slane %v977_v20, 4 }
  0x7d   : > { %2213 = vrot.lane.b32.xlu0 %v2187_v57, %s4073_s29  ;;  %v1174_v28 = vrot.slane %v1172_v11, 5  ;;  %v1764_v32 = vrot.slane %v1762_v21, 4  ;;  %v1169_v38 = vor.u32 %v1168_v53, %v1164_v56  ;;  %v1767_v19 = vrot.slane %v1765_v25, 5 }
  0x7e   : > { %v1160_v37 = vrot.slane %v1159_v24, 4  ;;  %v1771_v39 = vshll.u32 %v4499_v50, 16  ;;  %v983_v41 = vsel %vm4176_vm5, %v978_v26, %v982_v30  ;;  %v2405_v29 = vunpack.c.l.b16 %v973_v27  ;;  %v3678_v30 = vld [vmem:[%s4122_s24 + $0x30] sm:$0xf]  ;;  %v255_v26 = vld [vmem:[%s4122_s24 + $0x24] sm:$0xf] }
  0x7f   : > { %v1775_v42 = vshrl.u32 %v4499_v50, 16  ;;  %v1781_v43 = vshll.u32 %v4505_v2, 16  ;;  %v1170_v0 = vrot.slane %v1169_v38, 4  ;;  %v1768_v44 = vor.u32 %v1767_v19, %v1764_v32 }
  0x80   : > { %2389 = vrot.lane.b32.xlu1 %v4014_v23, %s4069_s25  ;;  %v1165_v13 = vsel %vm4176_vm5, %v1160_v37, %v1164_v56  ;;  %v3588_v40 = vrot.slane %v694_v36, 9  ;;  %v2406_v47 = vunpack.c.l.b16 %v983_v41  ;;  %v1773_v49 = vrot.slane %v1771_v39, 5 }
  0x81   : > { %2197 = vrot.lane.b32.xlu2 %v2179_v31, %s4073_s29  ;;  %v2421_v48 = vunpack.c.l.b16 %v1165_v13  ;;  %v1777_v52 = vrot.slane %v1775_v42, 4  ;;  %v2771_v57 = vpack.c.b16 %v2742_v1, %v2741_v58  ;;  %v1175_v16 = vsel %vm4176_vm5, %v1170_v0, %v1174_v28 }
  0x82   : > { %v1769_v34 = vrot.slane %v1768_v44, 4  ;;  %v823_v60 = vrot.slane %v4428_v46, 5  ;;  %v2422_v61 = vunpack.c.l.b16 %v1175_v16  ;;  %v1783_v63 = vrot.slane %v1781_v43, 5 }
  0x83   : > { %v1778_v62 = vor.u32 %v1777_v52, %v1773_v49  ;;  %v826_v4 = vrot.slane %v4436_v54, 5  ;;  %v4530_v9 = vpop.permute.xlu1 %2369  ;;  %v3581_v14 = vrot.slane %v687_v55, 9  ;;  %v2435_v46 = vpack.c.b16 %v2406_v47, %v2405_v29 }
  0x84   : > { %v1774_v12 = vsel %vm4176_vm5, %v1769_v34, %v1773_v49  ;;  %v824_v58 = vsel %vm4131_vm4, %v3588_v40, %v823_v60  ;;  %v825_v1 = vrot.slane %v823_v60, 4  ;;  %v2443_v33 = vpack.c.b16 %v2422_v61, %v2421_v48  ;;  %v3101_v49 = vld [vmem:[%s5680_s1 + $0x10] sm:$0x3]  ;;  %v271_v61 = vld [vmem:[%s4122_s24 + $0x84] sm:$0xf] }
  0x85   : > { %2629 = vrot.lane.b32.xlu0 %v4022_v45, %s4071_s27  ;;  %v1779_v15 = vrot.slane %v1778_v62, 4  ;;  %v2245_v54 = vunpack.c.l.b16 %v824_v58  ;;  %v2677_v10 = vunpack.c.l.b16 %v1774_v12  ;;  %v774_v17 = vrot.slane %v256_v3, 5  ;;  %v3996_v62 = vld [vmem:[%s4122_s24 + $0x60] sm:$0xff]  ;;  %v4569_v12 = vld [vmem:[%s4122_s24 + $0x88] sm:$0xf] }
  0x86   : > { %v827_v35 = vsel %vm4131_vm4, %v825_v1, %v826_v4  ;;  %v777_v20 = vrot.slane %v4528_v8, 5  ;;  %v1570_v21 = vshrl.u32 %v3678_v30, 16  ;;  %v1573_v23 = vshll.u32 %v3678_v30, 16  ;;  %v4544_v27 = vpop.permute.xlu2 %2529 }
  0x87   : > { %v1784_v56 = vsel %vm4176_vm5, %v1779_v15, %v1783_v63  ;;  %v2246_v11 = vunpack.c.l.b16 %v827_v35  ;;  %v775_v53 = vsel %vm4131_vm4, %v3581_v14, %v774_v17  ;;  %v776_v25 = vrot.slane %v774_v17, 4 }
  0x88   : > { %2789 = vrot.lane.b32.xlu1 %v2771_v57, %s4076_s7  ;;  %v2678_v24 = vunpack.c.l.b16 %v1784_v56  ;;  %v1579_v31 = vshll.u32 %v4450_v18, 16  ;;  %v2231_v32 = vunpack.c.l.b16 %v775_v53  ;;  %v1572_v36 = vrot.slane %v1570_v21, 4 }
  0x89   : > { %2453 = vrot.lane.b32.xlu2 %v2435_v46, %s4072_s28  ;;  %v2267_v28 = vpack.c.b16 %v2246_v11, %v2245_v54  ;;  %v1575_v37 = vrot.slane %v1573_v23, 5  ;;  %v778_v19 = vsel %vm4131_vm4, %v776_v25, %v777_v20  ;;  %v1583_v41 = vshrl.u32 %v4450_v18, 16  ;;  %v4030_v46 = vld [vmem:[%s4122_s24 + $0x90] sm:$0xff] }
  0x8a   : > { %v2699_v38 = vpack.c.b16 %v2678_v24, %v2677_v10  ;;  %v1581_v39 = vrot.slane %v1579_v31, 5  ;;  %v2232_v29 = vunpack.c.l.b16 %v778_v19  ;;  %v1589_v43 = vshll.u32 %v4454_v22, 16  ;;  %v4580_v24 = vld [vmem:[%s4122_s24 + $0x8c] sm:$0x1] }
  0x8b   : > { %v1576_v42 = vor.u32 %v1575_v37, %v1572_v36  ;;  %v373_v13 = vshrl.u32 %v255_v26, 16  ;;  %v4557_v44 = vpop.permute.xlu1 %2625  ;;  %v1585_v40 = vrot.slane %v1583_v41, 4  ;;  %v376_v45 = vshll.u32 %v255_v26, 16  ;;  %v3652_v36 = vld [vmem:[%s4122_s24 + $0x84] sm:$0xe]  ;;  %v4037_v37 = vld [vmem:[%s5680_s1 + $0x8] sm:$0xff] }
  0x8c   : > { %v4555_v0 = vpop.permute.xlu0 %2273  ;;  %v382_v47 = vshll.u32 %v256_v3, 16  ;;  %v386_v48 = vshrl.u32 %v256_v3, 16  ;;  %v2260_v18 = vpack.c.b16 %v2232_v29, %v2231_v32  ;;  %v1591_v52 = vrot.slane %v1589_v43, 5  ;;  %v3600_v29 = vld [vmem:[%s4122_s24 + $0x30] sm:$0xf] }
  0x8d   : > { %2469 = vrot.lane.b32.xlu0 %v2443_v33, %s4072_s28  ;;  %v1577_v22 = vrot.slane %v1576_v42, 4  ;;  %v375_v55 = vrot.slane %v373_v13, 4  ;;  %v1586_v57 = vor.u32 %v1585_v40, %v1581_v39  ;;  %v378_v16 = vrot.slane %v376_v45, 5  ;;  %v4596_v45 = vld [vmem:[%s4122_s24 + $0x34] sm:$0xf] }
  0x8e   : > { %v384_v34 = vrot.slane %v382_v47, 5  ;;  %v388_v60 = vrot.slane %v386_v48, 4  ;;  %v392_v4 = vshll.u32 %v4528_v8, 16  ;;  %v3115_v3 = vunpack.c.l.b16 %v3101_v49 }
  0x8f   : > { %v1582_v63 = vsel %vm4176_vm5, %v1577_v22, %v1581_v39  ;;  %v1587_v58 = vrot.slane %v1586_v57, 4  ;;  %v379_v14 = vor.u32 %v378_v16, %v375_v55  ;;  %v565_v54 = vshrl.u32 %v271_v61, 16  ;;  %v4036_v16 = vld [vmem:[%s5680_s1] sm:$0xff] }
  0x90   : > { %2725 = vrot.lane.b32.xlu1 %v2699_v38, %s4075_s6  ;;  %v2661_v1 = vunpack.c.l.b16 %v1582_v63  ;;  %v389_v30 = vor.u32 %v388_v60, %v384_v34  ;;  %v394_v33 = vrot.slane %v392_v4, 5  ;;  %v3118_v15 = vpack.c.b16 %v3115_v3, %v3115_v3  ;;  %v4614_v3 = vld [vmem:[%s4122_s24 + $0x38] sm:$0x1] }
  0x91   : > { %2293 = vrot.lane.b32.xlu2 %v2267_v28, %s4070_s26  ;;  %v568_v10 = vshll.u32 %v271_v61, 16  ;;  %v1592_v8 = vsel %vm4176_vm5, %v1587_v58, %v1591_v52  ;;  %v380_v17 = vrot.slane %v379_v14, 4  ;;  %v574_v56 = vshll.u32 %v4569_v12, 16 }
  0x92   : > { %v2210_v35 = vpop.permute.xlu2 %2209  ;;  %v390_v20 = vrot.slane %v389_v30, 4  ;;  %v2662_v21 = vunpack.c.l.b16 %v1592_v8  ;;  %v3156_v23 = vsel %vm3154_vm8, %v3118_v15, 0  ;;  %v567_v53 = vrot.slane %v565_v54, 4 }
  0x93   : > { %v2844_v11 = vsel %vm2817_vm6, %v3996_v62, %v2210_v35  ;;  %v385_v31 = vsel %vm4176_vm5, %v380_v17, %v384_v34  ;;  %3163 = vmatpush.bf16.msra.mxu0 %v3156_v23  ;;  %v570_v28 = vrot.slane %v568_v10, 5  ;;  %v576_v32 = vrot.slane %v574_v56, 5  ;;  %4038 = vmatpush.bf16.msra.mxu2 %v3156_v23  ;;  %v3988_v34 = vld [vmem:[%s4122_s24] sm:$0xff] }
  0x94   : > { %v2290_v25 = vpop.permute.xlu0 %2289  ;;  %v395_v26 = vsel %vm4176_vm5, %v390_v20, %v394_v33  ;;  %v2691_v19 = vpack.c.b16 %v2662_v21, %v2661_v1  ;;  %v2151_v39 = vunpack.c.l.b16 %v385_v31  ;;  %v578_v13 = vshrl.u32 %v4569_v12, 16 }
  0x95   : > { %2645 = vrot.lane.b32.xlu0 %v4030_v46, %s4071_s27  ;;  %v2884_v38 = vsel %vm2866_vm7, %v2844_v11, %v2290_v25  ;;  %v2152_v41 = vunpack.c.l.b16 %v395_v26  ;;  %v571_v43 = vor.u32 %v570_v28, %v567_v53  ;;  %v584_v40 = vshll.u32 %v4580_v24, 16  ;;  %v3732_v26 = vld [vmem:[%s4122_s24 + $0x90] sm:$0xe] }
  0x96   : > { %v2450_v42 = vpop.permute.xlu1 %2449  ;;  %v2917_v48 = vsel %vm2899_vm9, %v2884_v38, %v4509_v7  ;;  %v3668_v49 = vrot.slane %v3652_v36, 9  ;;  %v580_v52 = vrot.slane %v578_v13, 4  ;;  %v1432_v57 = vrot.slane %v4484_v59, 5 }
  0x97   : > { %v2180_v47 = vpack.c.b16 %v2152_v41, %v2151_v39  ;;  %v572_v22 = vrot.slane %v571_v43, 4  ;;  %v586_v55 = vrot.slane %v584_v40, 5  ;;  %3164 = vmatpush.bf16.msra.mxu0 %v4037_v37  ;;  %v1435_v60 = vrot.slane %v4491_v6, 5  ;;  %4039 = vmatpush.bf16.msra.mxu2 %v4037_v37 }
  0x98   : > { %2279 = vrot.lane.b32.xlu1 %v2260_v18, %s4070_s26  ;;  %v985_v7 = vshrl.u32 %v3600_v29, 16  ;;  %v988_v61 = vshll.u32 %v3600_v29, 16  ;;  %v994_v18 = vshll.u32 %v4596_v45, 16  ;;  %v581_v63 = vor.u32 %v580_v52, %v576_v32 }
  0x99   : > { %2709 = vrot.lane.b32.xlu2 %v2691_v19, %s4075_s6  ;;  %v577_v62 = vsel %vm4176_vm5, %v572_v22, %v576_v32  ;;  %v1433_v59 = vsel %vm4131_vm4, %v3668_v49, %v1432_v57  ;;  %v1434_v4 = vrot.slane %v1432_v57, 4  ;;  %v998_v54 = vshrl.u32 %v4596_v45, 16 }
  0x9a   : > { %v2167_v58 = vunpack.c.l.b16 %v577_v62  ;;  %v2501_v1 = vunpack.c.l.b16 %v1433_v59  ;;  %v987_v14 = vrot.slane %v985_v7, 4  ;;  %v990_v30 = vrot.slane %v988_v61, 5  ;;  %v4023_v7 = vld [vmem:[%s4122_s24 + $0x3c] sm:$0xff]  ;;  %v4660_v62 = vld [vmem:[%s4122_s24 + $0x98] sm:$0x1] }
  0x9b   : > { %v582_v6 = vrot.slane %v581_v63, 4  ;;  %v1436_v33 = vsel %vm4131_vm4, %v1434_v4, %v1435_v60  ;;  %v996_v15 = vrot.slane %v994_v18, 5  ;;  %3165 = vmatpush.bf16.msra.mxu0 %v4036_v16  ;;  %v1004_v17 = vshll.u32 %v4614_v3, 16  ;;  %4040 = vmatpush.bf16.msra.mxu2 %v4036_v16  ;;  %v4654_v16 = vld [vmem:[%s4122_s24 + $0x94] sm:$0xf] }
  0x9c   : > { %v2194_v46 = vpop.permute.xlu0 %2193  ;;  %v2502_v35 = vunpack.c.l.b16 %v1436_v33  ;;  %v991_v8 = vor.u32 %v990_v30, %v987_v14  ;;  %v1000_v21 = vrot.slane %v998_v54, 4  ;;  %v3748_v43 = vrot.slane %v3732_v26, 9 }
  0x9d   : > { %2199 = vrot.lane.b32.xlu0 %v2180_v47, %s4073_s29  ;;  %v2820_v10 = vsel %vm2817_vm6, %v3988_v34, %v2194_v46  ;;  %v587_v20 = vsel %vm4176_vm5, %v582_v6, %v586_v55  ;;  %v1006_v36 = vrot.slane %v1004_v17, 5  ;;  %v2041_v13 = vrot.slane %v4499_v50, 5 }
  0x9e   : > { %v2868_v56 = vsel %vm2866_vm7, %v2820_v10, %v4555_v0  ;;  %v2466_v11 = vpop.permute.xlu1 %2465  ;;  %v2168_v23 = vunpack.c.l.b16 %v587_v20  ;;  %v2523_v31 = vpack.c.b16 %v2502_v35, %v2501_v1  ;;  %v992_v28 = vrot.slane %v991_v8, 4  ;;  %v2786_v0 = vpop.permute.xlu2 %2785  ;;  %v4676_v8 = vld [vmem:[%s4122_s24 + $0x44] sm:$0x1] }
  0x9f   : > { %v2901_v53 = vsel %vm2899_vm9, %v2868_v56, %v4530_v9  ;;  %v4629_v25 = vsel %vm2932_vm10, %v2917_v48, %v2466_v11  ;;  %v1001_v32 = vor.u32 %v1000_v21, %v996_v15  ;;  %v695_v9 = vld [vmem:[%s4122_s24 + $0x84] sm:$0xe]  ;;  %v2044_v40 = vrot.slane %v4505_v2, 5 }
  0xa0   : > { %v2934_v37 = vsel %vm2932_vm10, %v2901_v53, %v2450_v42  ;;  %v2188_v38 = vpack.c.b16 %v2168_v23, %v2167_v58  ;;  %v997_v39 = vsel %vm4176_vm5, %v992_v28, %v996_v15  ;;  %v3589_v48 = vrot.slane %v695_v9, 9  ;;  %v4670_v15 = vld [vmem:[%s4122_s24 + $0x40] sm:$0xf]  ;;  %v3645_v53 = vld [vmem:[%s4122_s24 + $0x30] sm:$0xe] }
  0xa1   : > { %2549 = vrot.lane.b32.xlu2 %v2523_v31, %s4074_s30  ;;  %v2967_v19 = vsel %vm2965_vm11, %v2934_v37, %v4544_v27  ;;  %v1002_v41 = vrot.slane %v1001_v32, 4  ;;  %v2407_v42 = vunpack.c.l.b16 %v997_v39  ;;  %v3616_v27 = vld [vmem:[%s4122_s24 + $0x90] sm:$0xf]  ;;  %v2042_v22 = vsel %vm4131_vm4, %v3748_v43, %v2041_v13 }
  0xa2   : > { %v3000_v29 = vsel %vm2998_vm12, %v2967_v19, %v4557_v44  ;;  %2215 = vrot.lane.b32.xlu1 %v2188_v38, %s4073_s29  ;;  %v830_v44 = vrot.slane %v4569_v12, 5  ;;  %v2043_v52 = vrot.slane %v2041_v13, 4  ;;  %v833_v50 = vrot.slane %v4580_v24, 5  ;;  %v3680_v24 = vld [vmem:[%s4122_s24 + $0x3c] sm:$0xf] }
  0xa3   : > { %v1007_v47 = vsel %vm4176_vm5, %v1002_v41, %v1006_v36  ;;  %v2757_v2 = vunpack.c.l.b16 %v2042_v22  ;;  %v1177_v34 = vshrl.u32 %v3616_v27, 16  ;;  %v1180_v63 = vshll.u32 %v3616_v27, 16 }
  0xa4   : > { %v2408_v49 = vunpack.c.l.b16 %v1007_v47  ;;  %v831_v55 = vsel %vm4131_vm4, %v3589_v48, %v830_v44  ;;  %v832_v57 = vrot.slane %v830_v44, 4  ;;  %v2045_v12 = vsel %vm4131_vm4, %v2043_v52, %v2044_v40 }
  0xa5   : > { %v2247_v18 = vunpack.c.l.b16 %v831_v55  ;;  %v2758_v4 = vunpack.c.l.b16 %v2045_v12  ;;  %v1179_v14 = vrot.slane %v1177_v34, 4  ;;  %v1182_v46 = vrot.slane %v1180_v63, 5  ;;  %v3653_v55 = vld [vmem:[%s4122_s24 + $0x90] sm:$0xe] }
  0xa6   : > { %v2436_v60 = vpack.c.b16 %v2408_v49, %v2407_v42  ;;  %v2642_v58 = vpop.permute.xlu1 %2641  ;;  %v834_v1 = vsel %vm4131_vm4, %v832_v57, %v833_v50  ;;  %v1186_v33 = vshll.u32 %v4654_v16, 16  ;;  %v1190_v10 = vshrl.u32 %v4654_v16, 16  ;;  %v3989_v42 = vld [vmem:[%s4122_s24 + $0xc] sm:$0xff] }
  0xa7   : > { %v2706_v61 = vpop.permute.xlu0 %2705  ;;  %v2248_v6 = vunpack.c.l.b16 %v834_v1  ;;  %v2779_v54 = vpack.c.b16 %v2758_v4, %v2757_v2  ;;  %v1196_v35 = vshll.u32 %v4660_v62, 16  ;;  %v1594_v17 = vshrl.u32 %v3680_v24, 16  ;;  %v4007_v49 = vld [vmem:[%s4122_s24 + $0x30] sm:$0xff] }
  0xa8   : > { %v3033_v59 = vsel %vm3031_vm13, %v3000_v29, %v2706_v61  ;;  %2455 = vrot.lane.b32.xlu0 %v2436_v60, %s4072_s28  ;;  %v1183_v11 = vor.u32 %v1182_v46, %v1179_v14  ;;  %v1188_v21 = vrot.slane %v1186_v33, 5  ;;  %v1597_v23 = vshll.u32 %v3680_v24, 16  ;;  %v4711_v14 = vld [vmem:[%s4122_s24 + $0x34] sm:$0xf] }
  0xa9   : > { %v3066_v30 = vsel %vm3064_vm14, %v3033_v59, %v2786_v0  ;;  %v2268_v56 = vpack.c.b16 %v2248_v6, %v2247_v18  ;;  %2805 = vrot.lane.b32.xlu2 %v2779_v54, %s4076_s7  ;;  %v1192_v31 = vrot.slane %v1190_v10, 4  ;;  %v1198_v26 = vrot.slane %v1196_v35, 5  ;;  %v257_v59 = vld [vmem:[%s4122_s24 + $0x30] sm:$0xf]  ;;  %v4718_v35 = vld [vmem:[%s4122_s24 + $0x38] sm:$0x1] }
  0xaa   : > { %3954 = vmatmul.msk.bf16.vlgmr.msra.gmra.mxu0 %vm3121_vm15, %v3066_v30  ;;  %2631 = vrot.lane.b32.xlu1 %v4023_v7, %s4071_s27  ;;  %v1596_v28 = vrot.slane %v1594_v17, 4  ;;  %v1603_v32 = vshll.u32 %v4670_v15, 16  ;;  %v1184_v36 = vrot.slane %v1183_v11, 4  ;;  %v1599_v37 = vrot.slane %v1597_v23, 5 }
  0xab   : > { %v2722_v20 = vpop.permute.xlu2 %2721  ;;  %v1607_v38 = vshrl.u32 %v4670_v15, 16  ;;  %v1613_v0 = vshll.u32 %v4676_v8, 16  ;;  %v1193_v19 = vor.u32 %v1192_v31, %v1188_v21  ;;  %v3661_v39 = vrot.slane %v3645_v53, 9  ;;  %v4725_v53 = vld [vmem:[%s4122_s24 + $0xa0] sm:$0xf] }
  0xac   : > { %v1605_v9 = vrot.slane %v1603_v32, 5  ;;  %v1383_v41 = vrot.slane %v4596_v45, 5  ;;  %v1189_v29 = vsel %vm4176_vm5, %v1184_v36, %v1188_v21  ;;  %v1600_v13 = vor.u32 %v1599_v37, %v1596_v28  ;;  %v3733_v31 = vld [vmem:[%s4122_s24 + $0x9c] sm:$0xe]  ;;  %v3997_v28 = vld [vmem:[%s4122_s24 + $0x6c] sm:$0xff] }
  0xad   : > { %v1609_v40 = vrot.slane %v1607_v38, 4  ;;  %v1615_v27 = vrot.slane %v1613_v0, 5  ;;  %v1194_v47 = vrot.slane %v1193_v19, 4  ;;  %v2423_v48 = vunpack.c.l.b16 %v1189_v29  ;;  %v4731_v37 = vld [vmem:[%s4122_s24 + $0xa4] sm:$0x1] }
  0xae   : > { %v1384_v22 = vsel %vm4131_vm4, %v3661_v39, %v1383_v41  ;;  %v1601_v52 = vrot.slane %v1600_v13, 4  ;;  %v1385_v2 = vrot.slane %v1383_v41, 4  ;;  %v3669_v1 = vrot.slane %v3653_v55, 9  ;;  %v3602_v38 = vld [vmem:[%s4122_s24 + $0x3c] sm:$0xf] }
  0xaf   : > { %v2546_v43 = vpop.permute.xlu0 %2545  ;;  %v1610_v50 = vor.u32 %v1609_v40, %v1605_v9  ;;  %v1199_v57 = vsel %vm4176_vm5, %v1194_v47, %v1198_v26  ;;  %v2487_v60 = vunpack.c.l.b16 %v1384_v22  ;;  %v1439_v33 = vrot.slane %v4654_v16, 5  ;;  %v4031_v40 = vld [vmem:[%s4122_s24 + $0x9c] sm:$0xff]  ;;  %v4751_v55 = vld [vmem:[%s4122_s24 + $0x44] sm:$0x1] }
  0xb0   : > { %v2983_v44 = vsel %vm2965_vm11, %v4629_v25, %v2546_v43  ;;  %2295 = vrot.lane.b32.xlu0 %v2268_v56, %s4070_s26  ;;  %v1386_v25 = vrot.slane %v4614_v3, 5  ;;  %v2424_v61 = vunpack.c.l.b16 %v1199_v57  ;;  %v1606_v63 = vsel %vm4176_vm5, %v1601_v52, %v1605_v9 }
  0xb1   : > { %v3016_v45 = vsel %vm2998_vm12, %v2983_v44, %v2642_v58  ;;  %v1611_v24 = vrot.slane %v1610_v50, 4  ;;  %2375 = vrot.lane.b32.xlu2 %v4007_v49, %s4069_s25  ;;  %v2663_v58 = vunpack.c.l.b16 %v1606_v63  ;;  %v1442_v10 = vrot.slane %v4660_v62, 5  ;;  %v4744_v49 = vld [vmem:[%s4122_s24 + $0x40] sm:$0xf] }
  0xb2   : > { %v2196_v34 = vpop.permute.xlu1 %2195  ;;  %v3049_v7 = vsel %vm3031_vm13, %v3016_v45, %v2722_v20  ;;  %v1387_v3 = vsel %vm4131_vm4, %v1385_v2, %v1386_v25  ;;  %v2444_v30 = vpack.c.b16 %v2424_v61, %v2423_v48  ;;  %v397_v17 = vshrl.u32 %v257_v59, 16 }
  0xb3   : > { %v2823_v12 = vsel %vm2817_vm6, %v3989_v42, %v2196_v34  ;;  %v2276_v18 = vpop.permute.xlu2 %2275  ;;  %v1616_v6 = vsel %vm4176_vm5, %v1611_v24, %v1615_v27  ;;  %v2488_v46 = vunpack.c.l.b16 %v1387_v3  ;;  %v400_v20 = vshll.u32 %v257_v59, 16 }
  0xb4   : > { %v4706_v4 = vsel %vm2866_vm7, %v2823_v12, %v2276_v18  ;;  %v2664_v54 = vunpack.c.l.b16 %v1616_v6  ;;  %2471 = vrot.lane.b32.xlu1 %v2444_v30, %s4072_s28  ;;  %v1440_v21 = vsel %vm4131_vm4, %v3669_v1, %v1439_v33  ;;  %v1441_v23 = vrot.slane %v1439_v33, 4  ;;  %v4015_v6 = vld [vmem:[%s4122_s24 + $0x90] sm:$0xff] }
  0xb5   : > { %v2516_v11 = vpack.c.b16 %v2488_v46, %v2487_v60  ;;  %v406_v16 = vshll.u32 %v4711_v14, 16  ;;  %v2503_v32 = vunpack.c.l.b16 %v1440_v21  ;;  %v399_v36 = vrot.slane %v397_v17, 4 }
  0xb6   : > { %v2692_v62 = vpack.c.b16 %v2664_v54, %v2663_v58  ;;  %v1443_v0 = vsel %vm4131_vm4, %v1441_v23, %v1442_v10  ;;  %v402_v19 = vrot.slane %v400_v20, 5  ;;  %v410_v39 = vshrl.u32 %v4711_v14, 16  ;;  %v3725_v54 = vld [vmem:[%s4122_s24 + $0x3c] sm:$0xe] }
  0xb7   : > { %v2802_v56 = vpop.permute.xlu0 %2801  ;;  %v408_v9 = vrot.slane %v406_v16, 5  ;;  %v2504_v29 = vunpack.c.l.b16 %v1443_v0  ;;  %v416_v43 = vshll.u32 %v4718_v35, 16  ;;  %v3749_v42 = vrot.slane %v3733_v31, 9  ;;  %v4778_v0 = vld [vmem:[%s4122_s24 + $0x98] sm:$0x1] }
  0xb8   : > { %v3082_v26 = vsel %vm3064_vm14, %v3049_v7, %v2802_v56  ;;  %2711 = vrot.lane.b32.xlu0 %v2692_v62, %s4075_s6  ;;  %v2048_v13 = vrot.slane %v4725_v53, 5  ;;  %v403_v47 = vor.u32 %v402_v19, %v399_v36  ;;  %v412_v48 = vrot.slane %v410_v39, 4  ;;  %v4771_v62 = vld [vmem:[%s4122_s24 + $0x94] sm:$0xf]  ;;  %v3696_v19 = vld [vmem:[%s4122_s24 + $0x9c] sm:$0xf] }
  0xb9   : > { %3962 = vmatmul.msk.bf16.vlgmr.msra.gmra.mxu2 %vm3121_vm15, %v3082_v26  ;;  %v2051_v44 = vrot.slane %v4731_v37, 5  ;;  %v1009_v22 = vshrl.u32 %v3602_v38, 16  ;;  %2535 = vrot.lane.b32.xlu2 %v2516_v11, %s4074_s30  ;;  %v2524_v52 = vpack.c.b16 %v2504_v29, %v2503_v32  ;;  %v418_v50 = vrot.slane %v416_v43, 5  ;;  %v696_v11 = vld [vmem:[%s4122_s24 + $0x90] sm:$0xe] }
  0xba   : > { %v2452_v41 = vpop.permute.xlu1 %2451  ;;  %v2049_v2 = vsel %vm4131_vm4, %v3749_v42, %v2048_v13  ;;  %v404_v57 = vrot.slane %v403_v47, 4  ;;  %v413_v34 = vor.u32 %v412_v48, %v408_v9  ;;  %v2050_v25 = vrot.slane %v2048_v13, 4 }
  0xbb   : > { %v2212_v27 = vpop.permute.xlu2 %2211  ;;  %v2759_v60 = vunpack.c.l.b16 %v2049_v2  ;;  %v1011_v7 = vrot.slane %v1009_v22, 4  ;;  %v1012_v61 = vshll.u32 %v3602_v38, 16  ;;  %v1018_v12 = vshll.u32 %v4744_v49, 16 }
  0xbc   : > { %v2847_v45 = vsel %vm2817_vm6, %v3997_v28, %v2212_v27  ;;  %v1022_v18 = vshrl.u32 %v4744_v49, 16  ;;  %2647 = vrot.lane.b32.xlu1 %v4031_v40, %s4071_s27  ;;  %v409_v63 = vsel %vm4176_vm5, %v404_v57, %v408_v9  ;;  %v414_v24 = vrot.slane %v413_v34, 4 }
  0xbd   : > { %v2052_v58 = vsel %vm4131_vm4, %v2050_v25, %v2051_v44  ;;  %v1028_v3 = vshll.u32 %v4751_v55, 16  ;;  %v2153_v1 = vunpack.c.l.b16 %v409_v63  ;;  %v1014_v33 = vrot.slane %v1012_v61, 5 }
  0xbe   : > { %v2760_v46 = vunpack.c.l.b16 %v2052_v58  ;;  %v419_v10 = vsel %vm4176_vm5, %v414_v24, %v418_v50  ;;  %v1020_v17 = vrot.slane %v1018_v12, 5  ;;  %v1024_v20 = vrot.slane %v1022_v18, 4  ;;  %v3646_v12 = vld [vmem:[%s4122_s24 + $0x3c] sm:$0xe] }
  0xbf   : > { %v2372_v59 = vpop.permute.xlu0 %2371  ;;  %v1030_v56 = vrot.slane %v1028_v3, 5  ;;  %v2154_v21 = vunpack.c.l.b16 %v419_v10  ;;  %v3741_v36 = vrot.slane %v3725_v54, 9  ;;  %v1992_v38 = vrot.slane %v4670_v15, 5 }
  0xc0   : > { %v2903_v30 = vsel %vm2899_vm9, %v4706_v4, %v2372_v59  ;;  %2551 = vrot.lane.b32.xlu0 %v2524_v52, %s4074_s30  ;;  %v2780_v16 = vpack.c.b16 %v2760_v46, %v2759_v60  ;;  %v1015_v4 = vor.u32 %v1014_v33, %v1011_v7  ;;  %v1025_v32 = vor.u32 %v1024_v20, %v1020_v17  ;;  %v3682_v33 = vld [vmem:[%s4122_s24 + $0x48] sm:$0xf] }
  0xc1   : > { %v2936_v31 = vsel %vm2932_vm10, %v2903_v30, %v2452_v41  ;;  %v2181_v9 = vpack.c.b16 %v2154_v21, %v2153_v1  ;;  %2391 = vrot.lane.b32.xlu2 %v4015_v6, %s4069_s25  ;;  %v1995_v29 = vrot.slane %v4676_v8, 5  ;;  %v3590_v41 = vrot.slane %v696_v11, 9 }
  0xc2   : > { %v2292_v23 = vpop.permute.xlu1 %2291  ;;  %v1016_v39 = vrot.slane %v1015_v4, 4  ;;  %v1026_v43 = vrot.slane %v1025_v32, 4  ;;  %v1993_v42 = vsel %vm4131_vm4, %v3741_v36, %v1992_v38  ;;  %v1994_v13 = vrot.slane %v1992_v38, 4  ;;  %v4008_v4 = vld [vmem:[%s4122_s24 + $0x3c] sm:$0xff] }
  0xc3   : > { %v4774_v26 = vsel %vm2866_vm7, %v2847_v45, %v2292_v23  ;;  %v2628_v28 = vpop.permute.xlu2 %2627  ;;  %v837_v40 = vrot.slane %v4771_v62, 5  ;;  %v2743_v27 = vunpack.c.l.b16 %v1993_v42  ;;  %v840_v47 = vrot.slane %v4778_v0, 5 }
  0xc4   : > { %v1021_v15 = vsel %vm4176_vm5, %v1016_v39, %v1020_v17  ;;  %v1786_v48 = vshrl.u32 %v3696_v19, 16  ;;  %2201 = vrot.lane.b32.xlu1 %v2181_v9, %s4073_s29  ;;  %v1031_v8 = vsel %vm4176_vm5, %v1026_v43, %v1030_v56  ;;  %v1996_v45 = vsel %vm4131_vm4, %v1994_v13, %v1995_v29  ;;  %v4824_v39 = vld [vmem:[%s4122_s24 + $0x50] sm:$0x1] }
  0xc5   : > { %v2409_v44 = vunpack.c.l.b16 %v1021_v15  ;;  %v838_v52 = vsel %vm4131_vm4, %v3590_v41, %v837_v40  ;;  %v2410_v50 = vunpack.c.l.b16 %v1031_v8  ;;  %v2744_v57 = vunpack.c.l.b16 %v1996_v45  ;;  %v688_v8 = vld [vmem:[%s4122_s24 + $0x30] sm:$0xe] }
  0xc6   : > { %v839_v34 = vrot.slane %v837_v40, 4  ;;  %v2249_v60 = vunpack.c.l.b16 %v838_v52  ;;  %v1788_v7 = vrot.slane %v1786_v48, 4  ;;  %v1789_v61 = vshll.u32 %v3696_v19, 16 }
  0xc7   : > { %v2532_v22 = vpop.permute.xlu0 %2531  ;;  %v2437_v18 = vpack.c.b16 %v2410_v50, %v2409_v44  ;;  %v2772_v63 = vpack.c.b16 %v2744_v57, %v2743_v27  ;;  %v1795_v58 = vshll.u32 %v4725_v53, 16  ;;  %v1799_v46 = vshrl.u32 %v4725_v53, 16 }
  0xc8   : > { %v2969_v2 = vsel %vm2965_vm11, %v2936_v31, %v2532_v22  ;;  %2807 = vrot.lane.b32.xlu0 %v2780_v16, %s4076_s7  ;;  %v841_v59 = vsel %vm4131_vm4, %v839_v34, %v840_v47  ;;  %v1791_v6 = vrot.slane %v1789_v61, 5  ;;  %v1805_v10 = vshll.u32 %v4731_v37, 16  ;;  %v4813_v16 = vld [vmem:[%s4122_s24 + $0x4c] sm:$0xf]  ;;  %v4845_v61 = vld [vmem:[%s4122_s24 + $0xa4] sm:$0x1] }
  0xc9   : > { %v3002_v25 = vsel %vm2998_vm12, %v2969_v2, %v2628_v28  ;;  %v2250_v30 = vunpack.c.l.b16 %v841_v59  ;;  %2791 = vrot.lane.b32.xlu2 %v2772_v63, %s4076_s7  ;;  %v1797_v54 = vrot.slane %v1795_v58, 5  ;;  %v3662_v17 = vrot.slane %v3646_v12, 9  ;;  %v3654_v2 = vld [vmem:[%s4122_s24 + $0x9c] sm:$0xe] }
  0xca   : > { %v2708_v24 = vpop.permute.xlu1 %2707  ;;  %v1390_v20 = vrot.slane %v4744_v49, 5  ;;  %v1792_v11 = vor.u32 %v1791_v6, %v1788_v7  ;;  %v1801_v21 = vrot.slane %v1799_v46, 4  ;;  %v1393_v23 = vrot.slane %v4751_v55, 5  ;;  %v4842_v7 = vld [vmem:[%s4122_s24 + $0xa0] sm:$0xf] }
  0xcb   : > { %v4804_v3 = vsel %vm3031_vm13, %v3002_v25, %v2708_v24  ;;  %v2468_v1 = vpop.permute.xlu2 %2467  ;;  %v2269_v56 = vpack.c.b16 %v2250_v30, %v2249_v60  ;;  %v1807_v31 = vrot.slane %v1805_v10, 5  ;;  %v1618_v32 = vshrl.u32 %v3682_v33, 16 }
  0xcc   : > { %v1391_v53 = vsel %vm4131_vm4, %v3662_v17, %v1390_v20  ;;  %v1392_v28 = vrot.slane %v1390_v20, 4  ;;  %2457 = vrot.lane.b32.xlu1 %v2437_v18, %s4072_s28  ;;  %v1793_v36 = vrot.slane %v1792_v11, 4  ;;  %v1802_v49 = vor.u32 %v1801_v21, %v1797_v54  ;;  %v273_v17 = vld [vmem:[%s4122_s24 + $0x90] sm:$0xf]  ;;  %v3990_v11 = vld [vmem:[%s4122_s24 + $0x18] sm:$0xff] }
  0xcd   : > { %v2489_v38 = vunpack.c.l.b16 %v1391_v53  ;;  %v1621_v19 = vshll.u32 %v3682_v33, 16  ;;  %v1620_v29 = vrot.slane %v1618_v32, 4  ;;  %v1627_v41 = vshll.u32 %v4813_v16, 16 }
  0xce   : > { %v1394_v9 = vsel %vm4131_vm4, %v1392_v28, %v1393_v23  ;;  %v1798_v43 = vsel %vm4176_vm5, %v1793_v36, %v1797_v54  ;;  %v1803_v42 = vrot.slane %v1802_v49, 4  ;;  %v1631_v48 = vshrl.u32 %v4813_v16, 16 }
  0xcf   : > { %v2388_v37 = vpop.permute.xlu0 %2387  ;;  %v2490_v40 = vunpack.c.l.b16 %v1394_v9  ;;  %v2679_v15 = vunpack.c.l.b16 %v1798_v43  ;;  %v1623_v27 = vrot.slane %v1621_v19, 5  ;;  %v1629_v47 = vrot.slane %v1627_v41, 5  ;;  %v3726_v9 = vld [vmem:[%s4122_s24 + $0x48] sm:$0xe] }
  0xd0   : > { %v2919_v55 = vsel %vm2899_vm9, %v4774_v26, %v2388_v37  ;;  %2377 = vrot.lane.b32.xlu0 %v4008_v4, %s4069_s25  ;;  %v1808_v44 = vsel %vm4176_vm5, %v1803_v42, %v1807_v31  ;;  %v1637_v50 = vshll.u32 %v4824_v39, 16  ;;  %v1633_v60 = vrot.slane %v1631_v48, 4  ;;  %v4016_v48 = vld [vmem:[%s4122_s24 + $0x9c] sm:$0xff] }
  0xd1   : > { %v2952_v13 = vsel %vm2932_vm10, %v2919_v55, %v2468_v1  ;;  %v2517_v52 = vpack.c.b16 %v2490_v40, %v2489_v38  ;;  %v2680_v57 = vunpack.c.l.b16 %v1808_v44  ;;  %v1624_v25 = vor.u32 %v1623_v27, %v1620_v29 }
  0xd2   : > { %v2548_v26 = vpop.permute.xlu1 %2547  ;;  %v1639_v12 = vrot.slane %v1637_v50, 5  ;;  %v3582_v18 = vrot.slane %v688_v8, 9  ;;  %v781_v63 = vrot.slane %v4711_v14, 5  ;;  %v784_v24 = vrot.slane %v4718_v35, 5 }
  0xd3   : > { %v2985_v22 = vsel %vm2965_vm11, %v2952_v13, %v2548_v26  ;;  %v2644_v45 = vpop.permute.xlu2 %2643  ;;  %v2700_v59 = vpack.c.b16 %v2680_v57, %v2679_v15  ;;  %v1625_v58 = vrot.slane %v1624_v25, 4  ;;  %v1634_v1 = vor.u32 %v1633_v60, %v1629_v47  ;;  %v3734_v13 = vld [vmem:[%s4122_s24 + $0xa8] sm:$0xe] }
  0xd4   : > { %v4839_v34 = vsel %vm2998_vm12, %v2985_v22, %v2644_v45  ;;  %v3670_v30 = vrot.slane %v3654_v2, 9  ;;  %2297 = vrot.lane.b32.xlu1 %v2269_v56, %s4070_s26  ;;  %v782_v46 = vsel %vm4131_vm4, %v3582_v18, %v781_v63  ;;  %v783_v33 = vrot.slane %v781_v63, 4 }
  0xd5   : > { %v1446_v54 = vrot.slane %v4842_v7, 5  ;;  %v1449_v10 = vrot.slane %v4845_v61, 5  ;;  %2727 = vrot.lane.b32.xlu2 %v2700_v59, %s4075_s6  ;;  %v1630_v14 = vsel %vm4176_vm5, %v1625_v58, %v1629_v47  ;;  %v1635_v35 = vrot.slane %v1634_v1, 4  ;;  %v3699_v47 = vld [vmem:[%s4122_s24 + $0xac] sm:$0xf] }
  0xd6   : > { %v2233_v20 = vunpack.c.l.b16 %v782_v46  ;;  %v2665_v21 = vunpack.c.l.b16 %v1630_v14  ;;  %v785_v23 = vsel %vm4131_vm4, %v783_v33, %v784_v24  ;;  %v589_v37 = vshrl.u32 %v273_v17, 16 }
  0xd7   : > { %v2788_v6 = vpop.permute.xlu0 %2787  ;;  %v1447_v4 = vsel %vm4131_vm4, %v3670_v30, %v1446_v54  ;;  %v1448_v31 = vrot.slane %v1446_v54, 4  ;;  %v1640_v53 = vsel %vm4176_vm5, %v1635_v35, %v1639_v12  ;;  %v2234_v28 = vunpack.c.l.b16 %v785_v23  ;;  %v3698_v12 = vld [vmem:[%s4122_s24 + $0xa8] sm:$0xf] }
  0xd8   : > { %v3068_v56 = vsel %vm3064_vm14, %v4804_v3, %v2788_v6  ;;  %2537 = vrot.lane.b32.xlu0 %v2517_v52, %s4074_s30  ;;  %v2505_v32 = vunpack.c.l.b16 %v1447_v4  ;;  %v2666_v36 = vunpack.c.l.b16 %v1640_v53  ;;  %v592_v19 = vshll.u32 %v273_v17, 16  ;;  %v3718_v52 = vld [vmem:[%s4122_s24 + $0xb0] sm:$0x1] }
  0xd9   : > { %3955 = vmatmul.msk.bf16.gmra.mxu0 %vm3121_vm15, %v3068_v56  ;;  %v1450_v38 = vsel %vm4131_vm4, %v1448_v31, %v1449_v10  ;;  %v598_v55 = vshll.u32 %v4771_v62, 16  ;;  %v2261_v29 = vpack.c.b16 %v2234_v28, %v2233_v20  ;;  %v591_v42 = vrot.slane %v589_v37, 4 }
  0xda   : > { %v2804_v3 = vpop.permute.xlu1 %2803  ;;  %v2506_v43 = vunpack.c.l.b16 %v1450_v38  ;;  %v2693_v40 = vpack.c.b16 %v2666_v36, %v2665_v21  ;;  %v594_v15 = vrot.slane %v592_v19, 5  ;;  %v602_v27 = vshrl.u32 %v4771_v62, 16 }
  0xdb   : > { %v2198_v49 = vpop.permute.xlu2 %2197  ;;  %v600_v26 = vrot.slane %v598_v55, 5  ;;  %v608_v44 = vshll.u32 %v4778_v0, 16  ;;  %v3742_v22 = vrot.slane %v3726_v9, 9  ;;  %v1999_v45 = vrot.slane %v4813_v16, 5 }
  0xdc   : > { %v4874_v41 = vsel %vm2817_vm6, %v3990_v11, %v2198_v49  ;;  %v2525_v8 = vpack.c.b16 %v2506_v43, %v2505_v32  ;;  %2713 = vrot.lane.b32.xlu1 %v2693_v40, %s4075_s6  ;;  %v595_v2 = vor.u32 %v594_v15, %v591_v42  ;;  %v604_v57 = vrot.slane %v602_v27, 4  ;;  %v3618_v11 = vld [vmem:[%s4122_s24 + $0x9c] sm:$0xf] }
  0xdd   : > { %v2002_v25 = vrot.slane %v4824_v39, 5  ;;  %v3750_v60 = vrot.slane %v3734_v13, 9  ;;  %2281 = vrot.lane.b32.xlu2 %v2261_v29, %s4070_s26  ;;  %v610_v18 = vrot.slane %v608_v44, 5  ;;  %v2000_v0 = vsel %vm4131_vm4, %v3742_v22, %v1999_v45  ;;  %v689_v44 = vld [vmem:[%s4122_s24 + $0x3c] sm:$0xe] }
  0xde   : > { %v2001_v16 = vrot.slane %v1999_v45, 4  ;;  %v596_v63 = vrot.slane %v595_v2, 4  ;;  %v605_v24 = vor.u32 %v604_v57, %v600_v26  ;;  %v2745_v58 = vunpack.c.l.b16 %v2000_v0  ;;  %v4924_v57 = vld [vmem:[%s4122_s24 + $0x44] sm:$0x1] }
  0xdf   : > { %v2724_v50 = vpop.permute.xlu0 %2723  ;;  %v2058_v30 = vrot.slane %v3718_v52, 5  ;;  %v1810_v6 = vshrl.u32 %v3698_v12, 16  ;;  %v1813_v17 = vshll.u32 %v3698_v12, 16  ;;  %v1823_v32 = vshrl.u32 %v3699_v47, 16  ;;  %v3998_v12 = vld [vmem:[%s4122_s24 + $0x78] sm:$0xff] }
  0xe0   : > { %v3051_v62 = vsel %vm3031_vm13, %v4839_v34, %v2724_v50  ;;  %2393 = vrot.lane.b32.xlu0 %v4016_v48, %s4069_s25  ;;  %v2003_v1 = vsel %vm4131_vm4, %v2001_v16, %v2002_v25  ;;  %v2055_v34 = vrot.slane %v3699_v47, 5  ;;  %v601_v46 = vsel %vm4176_vm5, %v596_v63, %v600_v26 }
  0xe1   : > { %v3084_v59 = vsel %vm3064_vm14, %v3051_v62, %v2804_v3  ;;  %v606_v33 = vrot.slane %v605_v24, 4  ;;  %v2746_v10 = vunpack.c.l.b16 %v2003_v1  ;;  %v2169_v14 = vunpack.c.l.b16 %v601_v46 }
  0xe2   : > { %v2374_v39 = vpop.permute.xlu1 %2373  ;;  %3963 = vmatmul.msk.bf16.gmra.mxu2 %vm3121_vm15, %v3084_v59  ;;  %v2056_v35 = vsel %vm4131_vm4, %v3750_v60, %v2055_v34  ;;  %v2057_v20 = vrot.slane %v2055_v34, 4  ;;  %v1812_v56 = vrot.slane %v1810_v6, 4  ;;  %v1815_v31 = vrot.slane %v1813_v17, 5  ;;  %v3647_v59 = vld [vmem:[%s4122_s24 + $0x48] sm:$0xe] }
  0xe3   : > { %v2454_v54 = vpop.permute.xlu2 %2453  ;;  %v611_v21 = vsel %vm4176_vm5, %v606_v33, %v610_v18  ;;  %v2773_v23 = vpack.c.b16 %v2746_v10, %v2745_v58  ;;  %v2761_v4 = vunpack.c.l.b16 %v2056_v35  ;;  %v1819_v3 = vshll.u32 %v3699_v47, 16  ;;  %v4024_v58 = vld [vmem:[%s4122_s24 + $0x48] sm:$0xff]  ;;  %v4941_v10 = vld [vmem:[%s4122_s24 + $0x50] sm:$0x1] }
  0xe4   : > { %v2170_v53 = vunpack.c.l.b16 %v611_v21  ;;  %v2059_v28 = vsel %vm4131_vm4, %v2057_v20, %v2058_v30  ;;  %2553 = vrot.lane.b32.xlu1 %v2525_v8, %s4074_s30  ;;  %v1816_v49 = vor.u32 %v1815_v31, %v1812_v56  ;;  %v1829_v38 = vshll.u32 %v3718_v52, 16  ;;  %v275_v56 = vld [vmem:[%s4122_s24 + $0x9c] sm:$0xf] }
  0xe5   : > { %v2762_v37 = vunpack.c.l.b16 %v2059_v28  ;;  %v1201_v19 = vshrl.u32 %v3618_v11, 16  ;;  %v1821_v29 = vrot.slane %v1819_v3, 5  ;;  %v1825_v43 = vrot.slane %v1823_v32, 4 }
  0xe6   : > { %v2189_v55 = vpack.c.b16 %v2170_v53, %v2169_v14  ;;  %v1817_v40 = vrot.slane %v1816_v49, 4  ;;  %v1831_v15 = vrot.slane %v1829_v38, 5  ;;  %v1204_v8 = vshll.u32 %v3618_v11, 16 }
  0xe7   : > { %v2278_v36 = vpop.permute.xlu0 %2277  ;;  %v2781_v42 = vpack.c.b16 %v2762_v37, %v2761_v4  ;;  %v1826_v47 = vor.u32 %v1825_v43, %v1821_v29  ;;  %v1203_v48 = vrot.slane %v1201_v19, 4  ;;  %v1210_v50 = vshll.u32 %v4842_v7, 16  ;;  %v4954_v37 = vld [vmem:[%s4122_s24 + $0xa0] sm:$0xf] }
  0xe8   : > { %v2872_v9 = vsel %vm2866_vm7, %v4874_v41, %v2278_v36  ;;  %2217 = vrot.lane.b32.xlu2 %v2189_v55, %s4073_s29  ;;  %2793 = vrot.lane.b32.xlu0 %v2773_v23, %s4076_s7  ;;  %v4913_v41 = vld [vmem:[%s4122_s24 + $0x40] sm:$0xf]  ;;  %v1822_v52 = vsel %vm4176_vm5, %v1817_v40, %v1821_v29  ;;  %v1214_v2 = vshrl.u32 %v4842_v7, 16  ;;  %v1206_v62 = vrot.slane %v1204_v8, 5  ;;  %v4009_v36 = vld [vmem:[%s4122_s24 + $0x48] sm:$0xff] }
  0xe9   : > { %v2905_v13 = vsel %vm2899_vm9, %v2872_v9, %v2374_v39  ;;  %v1827_v25 = vrot.slane %v1826_v47, 4  ;;  %v2681_v60 = vunpack.c.l.b16 %v1822_v52  ;;  %v1220_v18 = vshll.u32 %v4845_v61, 16  ;;  %v4964_v9 = vld [vmem:[%s4122_s24 + $0xa4] sm:$0x1] }
  0xea   : > { %v2534_v26 = vpop.permute.xlu1 %2533  ;;  %v2938_v27 = vsel %vm2932_vm10, %v2905_v13, %v2454_v54  ;;  %v1212_v0 = vrot.slane %v1210_v50, 5  ;;  %v1216_v16 = vrot.slane %v1214_v2, 4  ;;  %v3583_v63 = vrot.slane %v689_v44, 9  ;;  %v4938_v54 = vld [vmem:[%s4122_s24 + $0x4c] sm:$0xf] }
  0xeb   : > { %v4917_v22 = vsel %vm2965_vm11, %v2938_v27, %v2534_v26  ;;  %v2294_v45 = vpop.permute.xlu2 %2293  ;;  %v788_v24 = vrot.slane %v4913_v41, 5  ;;  %v1832_v7 = vsel %vm4176_vm5, %v1827_v25, %v1831_v15  ;;  %v1207_v39 = vor.u32 %v1206_v62, %v1203_v48  ;;  %v259_v15 = vld [vmem:[%s4122_s24 + $0x3c] sm:$0xf] }
  0xec   : > { %v1222_v1 = vrot.slane %v1220_v18, 5  ;;  %v791_v34 = vrot.slane %v4924_v57, 5  ;;  %2809 = vrot.lane.b32.xlu1 %v2781_v42, %s4076_s7  ;;  %v2682_v61 = vunpack.c.l.b16 %v1832_v7  ;;  %v1217_v6 = vor.u32 %v1216_v16, %v1212_v0 }
  0xed   : > { %v789_v46 = vsel %vm4131_vm4, %v3583_v63, %v788_v24  ;;  %v790_v33 = vrot.slane %v788_v24, 4  ;;  %v1208_v14 = vrot.slane %v1207_v39, 4  ;;  %v3663_v20 = vrot.slane %v3647_v59, 9  ;;  %v3727_v63 = vld [vmem:[%s4122_s24 + $0x54] sm:$0xe] }
  0xee   : > { %v2235_v35 = vunpack.c.l.b16 %v789_v46  ;;  %v2701_v11 = vpack.c.b16 %v2682_v61, %v2681_v60  ;;  %v1218_v21 = vrot.slane %v1217_v6, 4  ;;  %v1397_v3 = vrot.slane %v4938_v54, 5  ;;  %v4980_v39 = vld [vmem:[%s4122_s24 + $0x58] sm:$0xf]  ;;  %v4986_v6 = vld [vmem:[%s4122_s24 + $0x5c] sm:$0x1] }
  0xef   : > { %v2214_v30 = vpop.permute.xlu0 %2213  ;;  %v792_v4 = vsel %vm4131_vm4, %v790_v33, %v791_v34  ;;  %v1213_v31 = vsel %vm4176_vm5, %v1208_v14, %v1212_v0  ;;  %v1400_v32 = vrot.slane %v4941_v10, 5  ;;  %v613_v29 = vshrl.u32 %v275_v56, 16 }
  0xf0   : > { %v2850_v17 = vsel %vm2817_vm6, %v3998_v12, %v2214_v30  ;;  %2633 = vrot.lane.b32.xlu2 %v4024_v58, %s4071_s27  ;;  %v2236_v28 = vunpack.c.l.b16 %v792_v4  ;;  %2729 = vrot.lane.b32.xlu0 %v2701_v11, %s4075_s6  ;;  %v1223_v49 = vsel %vm4176_vm5, %v1218_v21, %v1222_v1  ;;  %v2425_v38 = vunpack.c.l.b16 %v1213_v31 }
  0xf1   : > { %v2888_v23 = vsel %vm2866_vm7, %v2850_v17, %v2294_v45  ;;  %v2426_v43 = vunpack.c.l.b16 %v1223_v49  ;;  %v1398_v13 = vsel %vm4131_vm4, %v3663_v20, %v1397_v3  ;;  %v1399_v40 = vrot.slane %v1397_v3, 4 }
  0xf2   : > { %v2390_v53 = vpop.permute.xlu1 %2389  ;;  %v2262_v42 = vpack.c.b16 %v2236_v28, %v2235_v35  ;;  %v2491_v26 = vunpack.c.l.b16 %v1398_v13  ;;  %v615_v27 = vrot.slane %v613_v29, 4  ;;  %v616_v47 = vshll.u32 %v275_v56, 16  ;;  %v4032_v28 = vld [vmem:[%s4122_s24 + $0xa8] sm:$0xff] }
  0xf3   : > { %v4961_v19 = vsel %vm2899_vm9, %v2888_v23, %v2390_v53  ;;  %v2710_v55 = vpop.permute.xlu2 %2709  ;;  %v622_v48 = vshll.u32 %v4954_v37, 16  ;;  %v2445_v8 = vpack.c.b16 %v2426_v43, %v2425_v38  ;;  %v1401_v44 = vsel %vm4131_vm4, %v1399_v40, %v1400_v32  ;;  %v3604_v23 = vld [vmem:[%s4122_s24 + $0x48] sm:$0xf] }
  0xf4   : > { %v626_v45 = vshrl.u32 %v4954_v37, 16  ;;  %v632_v52 = vshll.u32 %v4964_v9, 16  ;;  %2379 = vrot.lane.b32.xlu1 %v4009_v36, %s4069_s25  ;;  %v2492_v50 = vunpack.c.l.b16 %v1401_v44  ;;  %v618_v25 = vrot.slane %v616_v47, 5 }
  0xf5   : > { %v624_v60 = vrot.slane %v622_v48, 5  ;;  %v421_v12 = vshrl.u32 %v259_v15, 16  ;;  %v424_v16 = vshll.u32 %v259_v15, 16  ;;  %v434_v30 = vshrl.u32 %v4913_v41, 16 }
  0xf6   : > { %v628_v18 = vrot.slane %v626_v45, 4  ;;  %v634_v0 = vrot.slane %v632_v52, 5  ;;  %v2518_v24 = vpack.c.b16 %v2492_v50, %v2491_v26  ;;  %v619_v58 = vor.u32 %v618_v25, %v615_v27  ;;  %v4017_v25 = vld [vmem:[%s4122_s24 + $0xa8] sm:$0xff] }
  0xf7   : > { %v2630_v2 = vpop.permute.xlu0 %2629  ;;  %v423_v7 = vrot.slane %v421_v12, 4  ;;  %v426_v61 = vrot.slane %v424_v16, 5  ;;  %v440_v17 = vshll.u32 %v4924_v57, 16  ;;  %v3743_v14 = vrot.slane %v3727_v63, 9 }
  0xf8   : > { %v3004_v62 = vsel %vm2998_vm12, %v4917_v22, %v2630_v2  ;;  %2473 = vrot.lane.b32.xlu2 %v2445_v8, %s4072_s28  ;;  %v629_v34 = vor.u32 %v628_v18, %v624_v60  ;;  %v430_v22 = vshll.u32 %v4913_v41, 16  ;;  %2283 = vrot.lane.b32.xlu0 %v2262_v42, %s4070_s26  ;;  %v620_v33 = vrot.slane %v619_v58, 4  ;;  %v3620_v8 = vld [vmem:[%s4122_s24 + $0xa8] sm:$0xf]  ;;  %v5015_v2 = vld [vmem:[%s4122_s24 + $0xac] sm:$0xf] }
  0xf9   : > { %v3037_v59 = vsel %vm3031_vm13, %v3004_v62, %v2710_v55  ;;  %v427_v56 = vor.u32 %v426_v61, %v423_v7  ;;  %v436_v21 = vrot.slane %v434_v30, 4  ;;  %v442_v4 = vrot.slane %v440_v17, 5 }
  0xfa   : > { %v2790_v1 = vpop.permute.xlu1 %2789  ;;  %v630_v20 = vrot.slane %v629_v34, 4  ;;  %v432_v11 = vrot.slane %v430_v22, 5  ;;  %v625_v41 = vsel %vm4176_vm5, %v620_v33, %v624_v60  ;;  %v2006_v31 = vrot.slane %v4980_v39, 5 }
  0xfb   : > { %v3070_v46 = vsel %vm3064_vm14, %v3037_v59, %v2790_v1  ;;  %v2550_v35 = vpop.permute.xlu2 %2549  ;;  %v2009_v53 = vrot.slane %v4986_v6, 5  ;;  %v2171_v3 = vunpack.c.l.b16 %v625_v41  ;;  %v428_v32 = vrot.slane %v427_v56, 4 }
  0xfc   : > { %3956 = vmatmul.msk.bf16.gmra.mxu0 %vm3121_vm15, %v3070_v46  ;;  %v635_v57 = vsel %vm4176_vm5, %v630_v20, %v634_v0  ;;  %v437_v36 = vor.u32 %v436_v21, %v432_v11  ;;  %2539 = vrot.lane.b32.xlu1 %v2518_v24, %s4074_s30  ;;  %v2007_v55 = vsel %vm4131_vm4, %v3743_v14, %v2006_v31  ;;  %v2008_v29 = vrot.slane %v2006_v31, 4  ;;  %v3700_v0 = vld [vmem:[%s4122_s24 + $0xb4] sm:$0xf]  ;;  %v5024_v24 = vld [vmem:[%s4122_s24 + $0xb0] sm:$0x1] }
  0xfd   : > { %v2172_v49 = vunpack.c.l.b16 %v635_v57  ;;  %v1033_v43 = vshrl.u32 %v3604_v23, 16  ;;  %v433_v13 = vsel %vm4176_vm5, %v428_v32, %v432_v11  ;;  %v2747_v15 = vunpack.c.l.b16 %v2007_v55  ;;  %v5034_v57 = vld [vmem:[%s4122_s24 + $0xb8] sm:$0xf] }
  0xfe   : > { %v438_v40 = vrot.slane %v437_v36, 4  ;;  %v2155_v27 = vunpack.c.l.b16 %v433_v13  ;;  %v2010_v47 = vsel %vm4131_vm4, %v2008_v29, %v2009_v53  ;;  %v1036_v50 = vshll.u32 %v3604_v23, 16 }
  0xff   : > { %v2470_v38 = vpop.permute.xlu0 %2469  ;;  %v2190_v26 = vpack.c.b16 %v2172_v49, %v2171_v3  ;;  %v2748_v45 = vunpack.c.l.b16 %v2010_v47  ;;  %v1035_v52 = vrot.slane %v1033_v43, 4  ;;  %v1042_v12 = vshll.u32 %v4938_v54, 16  ;;  %v5041_v49 = vld [vmem:[%s4122_s24 + $0xbc] sm:$0x1] }
 0x100   : > { %v2954_v42 = vsel %vm2932_vm10, %v4961_v19, %v2470_v38  ;;  %2649 = vrot.lane.b32.xlu2 %v4032_v28, %s4071_s27  ;;  %v443_v19 = vsel %vm4176_vm5, %v438_v40, %v442_v4  ;;  %v1046_v62 = vshrl.u32 %v4938_v54, 16  ;;  %v1052_v18 = vshll.u32 %v4941_v10, 16  ;;  %v4025_v10 = vld [vmem:[%s4122_s24 + $0x54] sm:$0xff]  ;;  %v697_v40 = vld [vmem:[%s4122_s24 + $0x9c] sm:$0xe] }
 0x101   : > { %v2987_v48 = vsel %vm2965_vm11, %v2954_v42, %v2550_v35  ;;  %2219 = vrot.lane.b32.xlu0 %v2190_v26, %s4073_s29  ;;  %v2156_v60 = vunpack.c.l.b16 %v443_v19  ;;  %v2774_v16 = vpack.c.b16 %v2748_v45, %v2747_v15  ;;  %v1038_v63 = vrot.slane %v1036_v50, 5 }
 0x102   : > { %v2726_v44 = vpop.permute.xlu1 %2725  ;;  %v1225_v59 = vshrl.u32 %v3620_v8, 16  ;;  %v1228_v58 = vshll.u32 %v3620_v8, 16  ;;  %v1044_v1 = vrot.slane %v1042_v12, 5  ;;  %v1048_v34 = vrot.slane %v1046_v62, 4 }
 0x103   : > { %v2182_v7 = vpack.c.b16 %v2156_v60, %v2155_v27  ;;  %v1054_v61 = vrot.slane %v1052_v18, 5  ;;  %v2806_v22 = vpop.permute.xlu2 %2805  ;;  %v1039_v30 = vor.u32 %v1038_v63, %v1035_v52  ;;  %v1234_v54 = vshll.u32 %v5015_v2, 16 }
 0x104   : > { %v1227_v46 = vrot.slane %v1225_v59, 4  ;;  %v1230_v33 = vrot.slane %v1228_v58, 5  ;;  %2395 = vrot.lane.b32.xlu1 %v4017_v25, %s4069_s25  ;;  %v1049_v14 = vor.u32 %v1048_v34, %v1044_v1  ;;  %v1238_v35 = vshrl.u32 %v5015_v2, 16  ;;  %v690_v58 = vld [vmem:[%s4122_s24 + $0x48] sm:$0xe] }
 0x105   : > { %v1244_v20 = vshll.u32 %v5024_v24, 16  ;;  %v1834_v56 = vshrl.u32 %v3700_v0, 16  ;;  %v1040_v21 = vrot.slane %v1039_v30, 4  ;;  %v1236_v41 = vrot.slane %v1234_v54, 5  ;;  %v5065_v30 = vld [vmem:[%s4122_s24 + $0x50] sm:$0x1] }
 0x106   : > { %v1231_v23 = vor.u32 %v1230_v33, %v1227_v46  ;;  %v1050_v4 = vrot.slane %v1049_v14, 4  ;;  %v1240_v53 = vrot.slane %v1238_v35, 4  ;;  %v1837_v13 = vshll.u32 %v3700_v0, 16  ;;  %v3684_v35 = vld [vmem:[%s4122_s24 + $0x54] sm:$0xf] }
 0x107   : > { %v2646_v17 = vpop.permute.xlu0 %2645  ;;  %v1246_v28 = vrot.slane %v1244_v20, 5  ;;  %v1045_v3 = vsel %vm4176_vm5, %v1040_v21, %v1044_v1  ;;  %v1836_v38 = vrot.slane %v1834_v56, 4  ;;  %v1843_v27 = vshll.u32 %v5034_v57, 16 }
 0x108   : > { %v3020_v11 = vsel %vm2998_vm12, %v2987_v48, %v2646_v17  ;;  %2203 = vrot.lane.b32.xlu2 %v2182_v7, %s4073_s29  ;;  %v1232_v36 = vrot.slane %v1231_v23, 4  ;;  %v1055_v55 = vsel %vm4176_vm5, %v1050_v4, %v1054_v61  ;;  %v2411_v29 = vunpack.c.l.b16 %v1045_v3  ;;  %v3991_v48 = vld [vmem:[%s4122_s24 + $0x24] sm:$0xff] }
 0x109   : > { %v3053_v31 = vsel %vm3031_vm13, %v3020_v11, %v2726_v44  ;;  %2635 = vrot.lane.b32.xlu0 %v4025_v10, %s4071_s27  ;;  %v1241_v42 = vor.u32 %v1240_v53, %v1236_v41  ;;  %v2412_v15 = vunpack.c.l.b16 %v1055_v55  ;;  %v1847_v47 = vshrl.u32 %v5034_v57, 16 }
 0x10a   : > { %v3086_v32 = vsel %vm3064_vm14, %v3053_v31, %v2806_v22  ;;  %v2280_v43 = vpop.permute.xlu1 %2279  ;;  %v1237_v26 = vsel %vm4176_vm5, %v1232_v36, %v1236_v41  ;;  %v1839_v44 = vrot.slane %v1837_v13, 5  ;;  %v1853_v45 = vshll.u32 %v5041_v49, 16  ;;  %v5062_v22 = vld [vmem:[%s4122_s24 + $0x4c] sm:$0xf]  ;;  %v3999_v36 = vld [vmem:[%s4122_s24 + $0x84] sm:$0xff] }
 0x10b   : > { %3964 = vmatmul.msk.bf16.gmra.mxu2 %vm3121_vm15, %v3086_v32  ;;  %v1242_v8 = vrot.slane %v1241_v42, 4  ;;  %v2427_v19 = vunpack.c.l.b16 %v1237_v26  ;;  %v2438_v52 = vpack.c.b16 %v2412_v15, %v2411_v29  ;;  %v2376_v50 = vpop.permute.xlu2 %2375  ;;  %v1845_v25 = vrot.slane %v1843_v27, 5  ;;  %v261_v42 = vld [vmem:[%s4122_s24 + $0x48] sm:$0xf]  ;;  %v4033_v27 = vld [vmem:[%s4122_s24 + $0xb4] sm:$0xff] }
 0x10c   : > { %v1849_v60 = vrot.slane %v1847_v47, 4  ;;  %v3591_v12 = vrot.slane %v697_v40, 9  ;;  %2795 = vrot.lane.b32.xlu1 %v2774_v16, %s4076_s7  ;;  %v1840_v18 = vor.u32 %v1839_v44, %v1836_v38  ;;  %v1855_v0 = vrot.slane %v1853_v45, 5 }
 0x10d   : > { %v1247_v62 = vsel %vm4176_vm5, %v1242_v8, %v1246_v28  ;;  %v844_v59 = vrot.slane %v4954_v37, 5  ;;  %v847_v61 = vrot.slane %v4964_v9, 5  ;;  %v3584_v14 = vrot.slane %v690_v58, 9 }
 0x10e   : > { %v2428_v7 = vunpack.c.l.b16 %v1247_v62  ;;  %v1850_v1 = vor.u32 %v1849_v60, %v1845_v25  ;;  %v1841_v16 = vrot.slane %v1840_v18, 4  ;;  %v795_v56 = vrot.slane %v5062_v22, 5  ;;  %v277_v18 = vld [vmem:[%s4122_s24 + $0xa8] sm:$0xf] }
 0x10f   : > { %v2200_v63 = vpop.permute.xlu0 %2199  ;;  %v845_v33 = vsel %vm4131_vm4, %v3591_v12, %v844_v59  ;;  %v846_v54 = vrot.slane %v844_v59, 4  ;;  %v798_v11 = vrot.slane %v5065_v30, 5  ;;  %v1642_v3 = vshrl.u32 %v3684_v35, 16 }
 0x110   : > { %v2829_v34 = vsel %vm2817_vm6, %v3991_v48, %v2200_v63  ;;  %2459 = vrot.lane.b32.xlu2 %v2438_v52, %s4072_s28  ;;  %v2446_v37 = vpack.c.b16 %v2428_v7, %v2427_v19  ;;  %v1851_v10 = vrot.slane %v1850_v1, 4  ;;  %v2251_v17 = vunpack.c.l.b16 %v845_v33  ;;  %v5102_v33 = vld [vmem:[%s4122_s24 + $0xac] sm:$0xf] }
 0x111   : > { %v2874_v46 = vsel %vm2866_vm7, %v2829_v34, %v2280_v43  ;;  %v1846_v9 = vsel %vm4176_vm5, %v1841_v16, %v1845_v25  ;;  %v848_v20 = vsel %vm4131_vm4, %v846_v54, %v847_v61  ;;  %v796_v53 = vsel %vm4131_vm4, %v3584_v14, %v795_v56 }
 0x112   : > { %2475 = vrot.lane.b32.xlu0 %v2446_v37, %s4072_s28  ;;  %v1856_v21 = vsel %vm4176_vm5, %v1851_v10, %v1855_v0  ;;  %v2683_v23 = vunpack.c.l.b16 %v1846_v9  ;;  %v2252_v41 = vunpack.c.l.b16 %v848_v20  ;;  %v797_v28 = vrot.slane %v795_v56, 4 }
 0x113   : > { %v2684_v4 = vunpack.c.l.b16 %v1856_v21  ;;  %v2536_v38 = vpop.permute.xlu2 %2535  ;;  %v2237_v55 = vunpack.c.l.b16 %v796_v53  ;;  %v2907_v29 = vsel %vm2899_vm9, %v2874_v46, %v2376_v50  ;;  %v1645_v43 = vshll.u32 %v3684_v35, 16  ;;  %v5108_v35 = vld [vmem:[%s4122_s24 + $0xb0] sm:$0x1] }
 0x114   : > { %v2216_v31 = vpop.permute.xlu1 %2215  ;;  %v2270_v32 = vpack.c.b16 %v2252_v41, %v2251_v17  ;;  %v799_v40 = vsel %vm4131_vm4, %v797_v28, %v798_v11  ;;  %v1644_v15 = vrot.slane %v1642_v3, 4  ;;  %v1651_v26 = vshll.u32 %v4980_v39, 16 }
 0x115   : > { %v2702_v13 = vpack.c.b16 %v2684_v4, %v2683_v23  ;;  %v2238_v47 = vunpack.c.l.b16 %v799_v40  ;;  %v1647_v48 = vrot.slane %v1645_v43, 5  ;;  %v1655_v8 = vshrl.u32 %v4980_v39, 16  ;;  %v3606_v43 = vld [vmem:[%s4122_s24 + $0x54] sm:$0xf] }
 0x116   : > { %v1661_v19 = vshll.u32 %v4986_v6, 16  ;;  %v1653_v44 = vrot.slane %v1651_v26, 5  ;;  %v445_v45 = vshrl.u32 %v261_v42, 16  ;;  %v448_v52 = vshll.u32 %v261_v42, 16 }
 0x117   : > { %2731 = vrot.lane.b32.xlu1 %v2702_v13, %s4075_s6  ;;  %v454_v50 = vshll.u32 %v5062_v22, 16  ;;  %v2853_v25 = vsel %vm2817_vm6, %v3999_v36, %v2216_v31  ;;  %v1648_v60 = vor.u32 %v1647_v48, %v1644_v15  ;;  %v1657_v12 = vrot.slane %v1655_v8, 4  ;;  %v3655_v31 = vld [vmem:[%s4122_s24 + $0xa8] sm:$0xe] }
 0x118   : > { %2299 = vrot.lane.b32.xlu2 %v2270_v32, %s4070_s26  ;;  %v1663_v62 = vrot.slane %v1661_v19, 5  ;;  %v447_v39 = vrot.slane %v445_v45, 4  ;;  %v450_v63 = vrot.slane %v448_v52, 5  ;;  %v458_v59 = vshrl.u32 %v5062_v22, 16  ;;  %v5124_v19 = vld [vmem:[%s4122_s24 + $0x58] sm:$0xf] }
 0x119   : > { %v456_v6 = vrot.slane %v454_v50, 5  ;;  %v1649_v7 = vrot.slane %v1648_v60, 4  ;;  %v1658_v1 = vor.u32 %v1657_v12, %v1653_v44  ;;  %v464_v34 = vshll.u32 %v5065_v30, 16 }
 0x11a   : > { %v2456_v0 = vpop.permute.xlu0 %2455  ;;  %2651 = vrot.lane.b32.xlu0 %v4033_v27, %s4071_s27  ;;  %v2263_v61 = vpack.c.b16 %v2238_v47, %v2237_v55  ;;  %v451_v16 = vor.u32 %v450_v63, %v447_v39  ;;  %v460_v46 = vrot.slane %v458_v59, 4  ;;  %v637_v54 = vshrl.u32 %v277_v18, 16 }
 0x11b   : > { %v2940_v58 = vsel %vm2932_vm10, %v2907_v29, %v2456_v0  ;;  %v1654_v37 = vsel %vm4176_vm5, %v1649_v7, %v1653_v44  ;;  %v1659_v22 = vrot.slane %v1658_v1, 4  ;;  %v2392_v17 = vpop.permute.xlu2 %2391  ;;  %v466_v14 = vrot.slane %v464_v34, 5  ;;  %v3735_v34 = vld [vmem:[%s4122_s24 + $0xb4] sm:$0xe] }
 0x11c   : > { %v2973_v10 = vsel %vm2965_vm11, %v2940_v58, %v2536_v38  ;;  %v2667_v9 = vunpack.c.l.b16 %v1654_v37  ;;  %v2632_v20 = vpop.permute.xlu1 %2631  ;;  %v452_v30 = vrot.slane %v451_v16, 4  ;;  %v461_v56 = vor.u32 %v460_v46, %v456_v6  ;;  %v5139_v58 = vld [vmem:[%s4122_s24 + $0x5c] sm:$0x1] }
 0x11d   : > { %v639_v11 = vrot.slane %v637_v54, 4  ;;  %v1664_v21 = vsel %vm4176_vm5, %v1659_v22, %v1663_v62  ;;  %v640_v23 = vshll.u32 %v277_v18, 16  ;;  %v646_v41 = vshll.u32 %v5102_v33, 16  ;;  %v5148_v22 = vld [vmem:[%s5681_s2] ss:$0 sm:$0xff] }
 0x11e   : > { %v650_v4 = vshrl.u32 %v5102_v33, 16  ;;  %v2668_v53 = vunpack.c.l.b16 %v1664_v21  ;;  %v457_v28 = vsel %vm4176_vm5, %v452_v30, %v456_v6  ;;  %v462_v3 = vrot.slane %v461_v56, 4 }
 0x11f   : > { %2285 = vrot.lane.b32.xlu1 %v2263_v61, %s4070_s26  ;;  %v656_v32 = vshll.u32 %v5108_v35, 16  ;;  %v2157_v36 = vunpack.c.l.b16 %v457_v28  ;;  %v642_v38 = vrot.slane %v640_v23, 5  ;;  %v648_v55 = vrot.slane %v646_v41, 5 }
 0x120   : > { %v652_v29 = vrot.slane %v650_v4, 4  ;;  %v2694_v42 = vpack.c.b16 %v2668_v53, %v2667_v9  ;;  %v467_v13 = vsel %vm4176_vm5, %v462_v3, %v466_v14  ;;  %v3671_v26 = vrot.slane %v3655_v31, 9  ;;  %v698_v53 = vld [vmem:[%s4122_s24 + $0xa8] sm:$0xe] }
 0x121   : > { %v658_v40 = vrot.slane %v656_v32, 5  ;;  %v2158_v27 = vunpack.c.l.b16 %v467_v13  ;;  %v643_v47 = vor.u32 %v642_v38, %v639_v11  ;;  %v1453_v44 = vrot.slane %v5015_v2, 5 }
 0x122   : > { %v2296_v15 = vpop.permute.xlu0 %2295  ;;  %v653_v48 = vor.u32 %v652_v29, %v648_v55  ;;  %2715 = vrot.lane.b32.xlu2 %v2694_v42, %s4075_s6  ;;  %v1456_v45 = vrot.slane %v5024_v24, 5  ;;  %v1057_v50 = vshrl.u32 %v3606_v43, 16  ;;  %v1060_v18 = vshll.u32 %v3606_v43, 16  ;;  %v3622_v43 = vld [vmem:[%s4122_s24 + $0xb4] sm:$0xf] }
 0x123   : > { %v2890_v8 = vsel %vm2866_vm7, %v2853_v25, %v2296_v15  ;;  %v2183_v60 = vpack.c.b16 %v2158_v27, %v2157_v36  ;;  %v644_v12 = vrot.slane %v643_v47, 4  ;;  %v1454_v25 = vsel %vm4131_vm4, %v3671_v26, %v1453_v44  ;;  %v2792_v59 = vpop.permute.xlu2 %2791  ;;  %v5170_v42 = vld [vmem:[%s4122_s24 + $0xb8] sm:$0xf] }
 0x124   : > { %v2923_v52 = vsel %vm2899_vm9, %v2890_v8, %v2392_v17  ;;  %v654_v62 = vrot.slane %v653_v48, 4  ;;  %v1455_v0 = vrot.slane %v1453_v44, 4  ;;  %v1059_v39 = vrot.slane %v1057_v50, 4  ;;  %v4026_v8 = vld [vmem:[%s4122_s24 + $0x60] sm:$0xff] }
 0x125   : > { %v1066_v63 = vshll.u32 %v5124_v19, 16  ;;  %2205 = vrot.lane.b32.xlu0 %v2183_v60, %s4073_s29  ;;  %v649_v2 = vsel %vm4176_vm5, %v644_v12, %v648_v55  ;;  %v2507_v6 = vunpack.c.l.b16 %v1454_v25  ;;  %v1062_v7 = vrot.slane %v1060_v18, 5 }
 0x126   : > { %v659_v24 = vsel %vm4176_vm5, %v654_v62, %v658_v40  ;;  %v3006_v61 = vsel %vm2998_vm12, %v2973_v10, %v2632_v20  ;;  %v2173_v16 = vunpack.c.l.b16 %v649_v2  ;;  %v1457_v54 = vsel %vm4131_vm4, %v1455_v0, %v1456_v45  ;;  %v2472_v37 = vpop.permute.xlu1 %2471  ;;  %v5187_v0 = vld [vmem:[%s4122_s24 + $0xbc] sm:$0x1] }
 0x127   : > { %v3167_v1 = vpop.f32.mrf.mxu0  ;;  %v2174_v46 = vunpack.c.l.b16 %v659_v24  ;;  %v2508_v17 = vunpack.c.l.b16 %v1457_v54  ;;  %v1063_v14 = vor.u32 %v1062_v7, %v1059_v39  ;;  %v1068_v9 = vrot.slane %v1066_v63, 5 }
 0x128   : > { %v1070_v30 = vshrl.u32 %v5124_v19, 16  ;;  %v5152_v10 = vsel %vm2932_vm10, %v2923_v52, %v2472_v37  ;;  %v1076_v20 = vshll.u32 %v5139_v58, 16  ;;  %v3751_v11 = vrot.slane %v3735_v34, 9 }
 0x129   : > { %v2191_v56 = vpack.c.b16 %v2174_v46, %v2173_v16  ;;  %v2526_v21 = vpack.c.b16 %v2508_v17, %v2507_v6  ;;  %v1064_v23 = vrot.slane %v1063_v14, 4  ;;  %v2062_v31 = vrot.slane %v5034_v57, 5  ;;  %v3295_v6 = vld [vmem:[%s5682_s3] sm:$0x3] }
 0x12a   : > { %v1072_v41 = vrot.slane %v1070_v30, 4  ;;  %v2712_v4 = vpop.permute.xlu0 %2711  ;;  %v1078_v28 = vrot.slane %v1076_v20, 5  ;;  %v5159_v3 = vadd.f32 %v5148_v22, %v3167_v1  ;;  %v2065_v36 = vrot.slane %v5041_v49, 5  ;;  %v3686_v17 = vld [vmem:[%s4122_s24 + $0x60] sm:$0xf] }
 0x12b   : > { %2221 = vrot.lane.b32.xlu1 %v2191_v56, %s4073_s29  ;;  %v3039_v32 = vsel %vm3031_vm13, %v3006_v61, %v2712_v4  ;;  %2555 = vrot.lane.b32.xlu2 %v2526_v21, %s4074_s30  ;;  %v1069_v38 = vsel %vm4176_vm5, %v1064_v23, %v1068_v9  ;;  %v2063_v57 = vsel %vm4131_vm4, %v3751_v11, %v2062_v31  ;;  %v2064_v29 = vrot.slane %v2062_v31, 4  ;;  %v5203_v20 = vld [vmem:[%s4122_s24 + $0x64] sm:$0xf]  ;;  %v5206_v11 = vld [vmem:[%s4122_s24 + $0x68] sm:$0x1] }
 0x12c   : > { %v1073_v55 = vor.u32 %v1072_v41, %v1068_v9  ;;  %v2413_v13 = vunpack.c.l.b16 %v1069_v38  ;;  %v2763_v40 = vunpack.c.l.b16 %v2063_v57  ;;  %v3072_v15 = vsel %vm3064_vm14, %v3039_v32, %v2792_v59  ;;  %v3992_v31 = vld [vmem:[%s4122_s24 + $0x30] sm:$0xff] }
 0x12d   : > { %v3592_v26 = vrot.slane %v698_v53, 9  ;;  %v2066_v27 = vsel %vm4131_vm4, %v2064_v29, %v2065_v36  ;;  %3957 = vmatmul.msk.bf16.gmra.mxu0 %vm3121_vm15, %v3072_v15  ;;  %v851_v47 = vrot.slane %v5102_v33, 5  ;;  %v854_v48 = vrot.slane %v5108_v35, 5  ;;  %v4010_v15 = vld [vmem:[%s4122_s24 + $0x54] sm:$0xff] }
 0x12e   : > { %v1074_v49 = vrot.slane %v1073_v55, 4  ;;  %v2764_v44 = vunpack.c.l.b16 %v2066_v27  ;;  %v2648_v45 = vpop.permute.xlu1 %2647  ;;  %v1249_v52 = vshrl.u32 %v3622_v43, 16  ;;  %v1252_v50 = vshll.u32 %v3622_v43, 16  ;;  %v3648_v43 = vld [vmem:[%s4122_s24 + $0x54] sm:$0xe] }
 0x12f   : > { %v1258_v60 = vshll.u32 %v5170_v42, 16  ;;  %v5182_v62 = vpop.permute.xlu2 %2727  ;;  %v852_v18 = vsel %vm4131_vm4, %v3592_v26, %v851_v47  ;;  %v853_v25 = vrot.slane %v851_v47, 4  ;;  %v1262_v33 = vshrl.u32 %v5170_v42, 16  ;;  %v3169_v35 = vpop.f32.mrf.mxu0 }
 0x130   : > { %v1079_v12 = vsel %vm4176_vm5, %v1074_v49, %v1078_v28  ;;  %v2782_v63 = vpack.c.b16 %v2764_v44, %v2763_v40  ;;  %v2253_v2 = vunpack.c.l.b16 %v852_v18  ;;  %v1251_v24 = vrot.slane %v1249_v52, 4  ;;  %v3656_v44 = vld [vmem:[%s4122_s24 + $0xb4] sm:$0xe] }
 0x131   : > { %v2414_v39 = vunpack.c.l.b16 %v1079_v12  ;;  %v855_v59 = vsel %vm4131_vm4, %v853_v25, %v854_v48  ;;  %v1254_v7 = vrot.slane %v1252_v50, 5  ;;  %v1260_v1 = vrot.slane %v1258_v60, 5 }
 0x132   : > { %v1264_v34 = vrot.slane %v1262_v33, 4  ;;  %v2552_v61 = vpop.permute.xlu0 %2551  ;;  %v2254_v46 = vunpack.c.l.b16 %v855_v59  ;;  %v1268_v54 = vshll.u32 %v5187_v0, 16  ;;  %v3170_v37 = vadd.f32 %v5148_v22, %v3169_v35  ;;  %v263_v59 = vld [vmem:[%s4122_s24 + $0x54] sm:$0xf] }
 0x133   : > { %v2439_v16 = vpack.c.b16 %v2414_v39, %v2413_v13  ;;  %2637 = vrot.lane.b32.xlu1 %v4026_v8, %s4071_s27  ;;  %v3247_v14 = vmax.f32 %v5159_v3, 0.0  ;;  %2811 = vrot.lane.b32.xlu2 %v2782_v63, %s4076_s7  ;;  %v1255_v9 = vor.u32 %v1254_v7, %v1251_v24  ;;  %v3377_v56 = vsel %vm3154_vm8, %v3295_v6, 0 }
 0x134   : > { %v1265_v30 = vor.u32 %v1264_v34, %v1260_v1  ;;  %v2271_v21 = vpack.c.b16 %v2254_v46, %v2253_v2  ;;  %v1270_v23 = vrot.slane %v1268_v54, 5  ;;  %v3248_v41 = vmax.f32 %v3170_v37, 0.0  ;;  %3386 = vmatpush.bf16.msra.mxu1 %v3377_v56  ;;  %4041 = vmatpush.bf16.msra.mxu3 %v3377_v56 }
 0x135   : > { %2461 = vrot.lane.b32.xlu0 %v2439_v16, %s4072_s28  ;;  %v2989_v4 = vsel %vm2965_vm11, %v5152_v10, %v2552_v61  ;;  %v1256_v53 = vrot.slane %v1255_v9, 4  ;;  %v1666_v3 = vshrl.u32 %v3686_v17, 16  ;;  %v1669_v32 = vshll.u32 %v3686_v17, 16 }
 0x136   : > { %v1266_v28 = vrot.slane %v1265_v30, 4  ;;  %v3279_v36 = vpack.c.bf16 %v3248_v41, %v3247_v14  ;;  %v2202_v38 = vpop.permute.xlu1 %2201  ;;  %v1675_v55 = vshll.u32 %v5203_v20, 16  ;;  %v1679_v57 = vshrl.u32 %v5203_v20, 16  ;;  %v5250_v14 = vld [vmem:[%s4122_s24 + $0x58] sm:$0xf] }
 0x137   : > { %v1685_v29 = vshll.u32 %v5206_v11, 16  ;;  %v1261_v10 = vsel %vm4176_vm5, %v1256_v53, %v1260_v1  ;;  %v3022_v40 = vsel %vm2998_vm12, %v2989_v4, %v2648_v45  ;;  %v2282_v26 = vpop.permute.xlu2 %2281  ;;  %v1668_v49 = vrot.slane %v1666_v3, 4  ;;  %v4034_v4 = vld [vmem:[%s4122_s24 + $0xc0] sm:$0xff] }
 0x138   : > { %v1271_v13 = vsel %vm4176_vm5, %v1266_v28, %v1270_v23  ;;  %v2429_v27 = vunpack.c.l.b16 %v1261_v10  ;;  %v2832_v48 = vsel %vm2817_vm6, %v3992_v31, %v2202_v38  ;;  %v1671_v8 = vrot.slane %v1669_v32, 5  ;;  %3970 = vmatmul.msk.bf16.vlgmr.msra.gmra.mxu1 %vm2817_vm6, %v3279_v36  ;;  %v5257_v23 = vld [vmem:[%s4122_s24 + $0x5c] sm:$0x1]  ;;  %v4000_v31 = vld [vmem:[%s4122_s24 + $0x90] sm:$0xff] }
 0x139   : > { %v2430_v47 = vunpack.c.l.b16 %v1271_v13  ;;  %v1677_v52 = vrot.slane %v1675_v55, 5  ;;  %v1681_v50 = vrot.slane %v1679_v57, 4  ;;  %v1687_v60 = vrot.slane %v1685_v29, 5  ;;  %v3736_v29 = vld [vmem:[%s4122_s24 + $0xc0] sm:$0xe] }
 0x13a   : > { %v2808_v12 = vpop.permute.xlu0 %2807  ;;  %v3664_v18 = vrot.slane %v3648_v43, 9  ;;  %v1672_v45 = vor.u32 %v1671_v8, %v1668_v49  ;;  %v1404_v35 = vrot.slane %v5124_v19, 5  ;;  %v1407_v39 = vrot.slane %v5139_v58, 5  ;;  %v3608_v49 = vld [vmem:[%s4122_s24 + $0x60] sm:$0xf] }
 0x13b   : > { %v2447_v33 = vpack.c.b16 %v2430_v47, %v2429_v27  ;;  %2381 = vrot.lane.b32.xlu2 %v4010_v15, %s4069_s25  ;;  %v1682_v63 = vor.u32 %v1681_v50, %v1677_v52  ;;  %v3055_v2 = vsel %vm3031_vm13, %v3022_v40, %v5182_v62  ;;  %v3672_v6 = vrot.slane %v3656_v44, 9  ;;  %v5274_v44 = vld [vmem:[%s4122_s24 + $0xc8] sm:$0x1] }
 0x13c   : > { %v3207_v25 = vpop.f32.mrf.mxu2  ;;  %v1673_v7 = vrot.slane %v1672_v45, 4  ;;  %v1405_v19 = vsel %vm4131_vm4, %v3664_v18, %v1404_v35  ;;  %v1406_v58 = vrot.slane %v1404_v35, 4  ;;  %v3088_v1 = vsel %vm3064_vm14, %v3055_v2, %v2808_v12  ;;  %v5284_v2 = vld [vmem:[%s4122_s24 + $0x64] sm:$0xf] }
 0x13d   : > { %v5231_v24 = vadd.f32 %v5148_v22, %v3207_v25  ;;  %2301 = vrot.lane.b32.xlu0 %v2271_v21, %s4070_s26  ;;  %2477 = vrot.lane.b32.xlu1 %v2447_v33, %s4072_s28  ;;  %v2876_v62 = vsel %vm2866_vm7, %v2832_v48, %v2282_v26  ;;  %v1683_v34 = vrot.slane %v1682_v63, 4  ;;  %v2493_v61 = vunpack.c.l.b16 %v1405_v19  ;;  %v5269_v26 = vld [vmem:[%s4122_s24 + $0xc4] sm:$0xf] }
 0x13e   : > { %3965 = vmatmul.msk.bf16.gmra.mxu2 %vm3121_vm15, %v3088_v1  ;;  %v1460_v16 = vrot.slane %v5170_v42, 5  ;;  %v1678_v46 = vsel %vm4176_vm5, %v1673_v7, %v1677_v52  ;;  %v1408_v54 = vsel %vm4131_vm4, %v1406_v58, %v1407_v39  ;;  %v5246_v37 = vpop.permute.xlu1 %2457  ;;  %v1463_v17 = vrot.slane %v5187_v0, 5  ;;  %v4018_v58 = vld [vmem:[%s4122_s24 + $0xb4] sm:$0xff] }
 0x13f   : > { %v469_v9 = vshrl.u32 %v263_v59, 16  ;;  %v1688_v30 = vsel %vm4176_vm5, %v1683_v34, %v1687_v60  ;;  %v2669_v56 = vunpack.c.l.b16 %v1678_v46  ;;  %v2494_v21 = vunpack.c.l.b16 %v1408_v54 }
 0x140   : > { %v1461_v42 = vsel %vm4131_vm4, %v3672_v6, %v1460_v16  ;;  %v2670_v41 = vunpack.c.l.b16 %v1688_v30  ;;  %v3263_v0 = vmax.f32 %v5231_v24, 0.0  ;;  %v1462_v53 = vrot.slane %v1460_v16, 4  ;;  %v5292_v16 = vld [vmem:[%s4122_s24 + $0x68] sm:$0x1] }
 0x141   : > { %v471_v28 = vrot.slane %v469_v9, 4  ;;  %v2519_v3 = vpack.c.b16 %v2494_v21, %v2493_v61  ;;  %v472_v36 = vshll.u32 %v263_v59, 16  ;;  %v478_v38 = vshll.u32 %v5250_v14, 16 }
 0x142   : > { %v2218_v32 = vpop.permute.xlu2 %2217  ;;  %v482_v55 = vshrl.u32 %v5250_v14, 16  ;;  %v2378_v57 = vpop.permute.xlu0 %2377  ;;  %v2695_v43 = vpack.c.b16 %v2670_v41, %v2669_v56  ;;  %v1464_v10 = vsel %vm4131_vm4, %v1462_v53, %v1463_v17  ;;  %v2509_v13 = vunpack.c.l.b16 %v1461_v42  ;;  %v3728_v42 = vld [vmem:[%s4122_s24 + $0x60] sm:$0xe] }
 0x143   : > { %v488_v40 = vshll.u32 %v5257_v23, 16  ;;  %2541 = vrot.lane.b32.xlu2 %v2519_v3, %s4074_s30  ;;  %v2510_v27 = vunpack.c.l.b16 %v1464_v10  ;;  %v474_v47 = vrot.slane %v472_v36, 5  ;;  %v480_v48 = vrot.slane %v478_v38, 5 }
 0x144   : > { %v3209_v15 = vpop.f32.mrf.mxu2  ;;  %v484_v8 = vrot.slane %v482_v55, 4  ;;  %v2856_v52 = vsel %vm2817_vm6, %v4000_v31, %v2218_v32  ;;  %v3752_v12 = vrot.slane %v3736_v29, 9  ;;  %v2909_v33 = vsel %vm2899_vm9, %v2876_v62, %v2378_v57  ;;  %v5309_v29 = vld [vmem:[%s4122_s24 + $0xb8] sm:$0xf] }
 0x145   : > { %2717 = vrot.lane.b32.xlu0 %v2695_v43, %s4075_s6  ;;  %2653 = vrot.lane.b32.xlu1 %v4034_v4, %s4071_s27  ;;  %v490_v50 = vrot.slane %v488_v40, 5  ;;  %v3210_v60 = vadd.f32 %v5148_v22, %v3209_v15  ;;  %v475_v18 = vor.u32 %v474_v47, %v471_v28  ;;  %v2069_v45 = vrot.slane %v5269_v26, 5  ;;  %v699_v43 = vld [vmem:[%s4122_s24 + $0xb4] sm:$0xe] }
 0x146   : > { %v485_v25 = vor.u32 %v484_v8, %v480_v48  ;;  %v2298_v35 = vpop.permute.xlu1 %2297  ;;  %v2072_v63 = vrot.slane %v5274_v44, 5  ;;  %v1081_v24 = vshrl.u32 %v3608_v49, 16  ;;  %v1084_v6 = vshll.u32 %v3608_v49, 16  ;;  %v5318_v8 = vld [vmem:[%s4122_s24 + $0xbc] sm:$0x1] }
 0x147   : > { %v3264_v39 = vmax.f32 %v3210_v60, 0.0  ;;  %v2527_v59 = vpack.c.b16 %v2510_v27, %v2509_v13  ;;  %v476_v7 = vrot.slane %v475_v18, 4  ;;  %v2070_v1 = vsel %vm4131_vm4, %v3752_v12, %v2069_v45 }
 0x148   : > { %v486_v19 = vrot.slane %v485_v25, 4  ;;  %v2071_v34 = vrot.slane %v2069_v45, 4  ;;  %v2765_v61 = vunpack.c.l.b16 %v2070_v1  ;;  %v1083_v46 = vrot.slane %v1081_v24, 4 }
 0x149   : > { %v5289_v62 = vpack.c.bf16 %v3264_v39, %v3263_v0  ;;  %v481_v54 = vsel %vm4176_vm5, %v476_v7, %v480_v48  ;;  %v1086_v30 = vrot.slane %v1084_v6, 5  ;;  %v1090_v56 = vshll.u32 %v5284_v2, 16 }
 0x14a   : > { %v491_v17 = vsel %vm4176_vm5, %v486_v19, %v490_v50  ;;  %v2634_v9 = vpop.permute.xlu2 %2633  ;;  %v2538_v21 = vpop.permute.xlu0 %2537  ;;  %v2159_v41 = vunpack.c.l.b16 %v481_v54  ;;  %v2073_v31 = vsel %vm4131_vm4, %v2071_v34, %v2072_v63  ;;  %v1094_v0 = vshrl.u32 %v5284_v2, 16 }
 0x14b   : > { %v2160_v4 = vunpack.c.l.b16 %v491_v17  ;;  %2397 = vrot.lane.b32.xlu2 %v4018_v58, %s4069_s25  ;;  %v2766_v53 = vunpack.c.l.b16 %v2073_v31  ;;  %v1087_v28 = vor.u32 %v1086_v30, %v1083_v46  ;;  %v1092_v3 = vrot.slane %v1090_v56, 5 }
 0x14c   : > { %v1100_v32 = vshll.u32 %v5292_v16, 16  ;;  %v1096_v38 = vrot.slane %v1094_v0, 4  ;;  %v2942_v55 = vsel %vm2932_vm10, %v2909_v33, %v5246_v37  ;;  %v3744_v57 = vrot.slane %v3728_v42, 9 }
 0x14d   : > { %2557 = vrot.lane.b32.xlu0 %v2527_v59, %s4074_s30  ;;  %v2184_v36 = vpack.c.b16 %v2160_v4, %v2159_v41  ;;  %v2892_v10 = vsel %vm2866_vm7, %v2856_v52, %v2298_v35  ;;  %v2783_v13 = vpack.c.b16 %v2766_v53, %v2765_v61  ;;  %v1088_v40 = vrot.slane %v1087_v28, 4 }
 0x14e   : > { %v2975_v15 = vsel %vm2965_vm11, %v2942_v55, %v2538_v21  ;;  %v1097_v49 = vor.u32 %v1096_v38, %v1092_v3  ;;  %v1102_v27 = vrot.slane %v1100_v32, 5  ;;  %v2013_v47 = vrot.slane %v5203_v20, 5  ;;  %v2714_v37 = vpop.permute.xlu1 %2713  ;;  %v3702_v20 = vld [vmem:[%s4122_s24 + $0xc0] sm:$0xf] }
 0x14f   : > { %2207 = vrot.lane.b32.xlu1 %v2184_v36, %s4073_s29  ;;  %v2016_v48 = vrot.slane %v5206_v11, 5  ;;  %v1093_v50 = vsel %vm4176_vm5, %v1088_v40, %v1092_v3  ;;  %v3008_v52 = vsel %vm2998_vm12, %v2975_v15, %v2634_v9  ;;  %v3593_v60 = vrot.slane %v699_v43, 9  ;;  %v3649_v21 = vld [vmem:[%s4122_s24 + $0x60] sm:$0xe]  ;;  %v3688_v36 = vld [vmem:[%s4122_s24 + $0x6c] sm:$0xf] }
 0x150   : > { %v858_v12 = vrot.slane %v5309_v29, 5  ;;  %v1098_v18 = vrot.slane %v1097_v49, 4  ;;  %v2415_v25 = vunpack.c.l.b16 %v1093_v50  ;;  %v2014_v33 = vsel %vm4131_vm4, %v3744_v57, %v2013_v47  ;;  %v4011_v43 = vld [vmem:[%s4122_s24 + $0x60] sm:$0xff] }
 0x151   : > { %v2015_v45 = vrot.slane %v2013_v47, 4  ;;  %v2749_v35 = vunpack.c.l.b16 %v2014_v33  ;;  %v861_v24 = vrot.slane %v5318_v8, 5  ;;  %v1858_v46 = vshrl.u32 %v3702_v20, 16 }
 0x152   : > { %v2474_v11 = vpop.permute.xlu2 %2473  ;;  %v859_v39 = vsel %vm4131_vm4, %v3593_v60, %v858_v12  ;;  %v860_v63 = vrot.slane %v858_v12, 4  ;;  %v2394_v6 = vpop.permute.xlu0 %2393  ;;  %v1103_v59 = vsel %vm4176_vm5, %v1098_v18, %v1102_v27  ;;  %v1861_v9 = vshll.u32 %v3702_v20, 16  ;;  %v691_v20 = vld [vmem:[%s4122_s24 + $0x54] sm:$0xe] }
 0x153   : > { %v2017_v7 = vsel %vm4131_vm4, %v2015_v45, %v2016_v48  ;;  %v2255_v19 = vunpack.c.l.b16 %v859_v39  ;;  %v2925_v58 = vsel %vm2899_vm9, %v2892_v10, %v2394_v6  ;;  %v2416_v1 = vunpack.c.l.b16 %v1103_v59  ;;  %v5354_v48 = vld [vmem:[%s4122_s24 + $0x70] sm:$0xf] }
 0x154   : > { %v2750_v34 = vunpack.c.l.b16 %v2017_v7  ;;  %v862_v61 = vsel %vm4131_vm4, %v860_v63, %v861_v24  ;;  %v1867_v30 = vshll.u32 %v5269_v26, 16  ;;  %v1871_v56 = vshrl.u32 %v5269_v26, 16 }
 0x155   : > { %2813 = vrot.lane.b32.xlu0 %v2783_v13, %s4076_s7  ;;  %v2256_v17 = vunpack.c.l.b16 %v862_v61  ;;  %v2440_v42 = vpack.c.b16 %v2416_v1, %v2415_v25  ;;  %v1860_v4 = vrot.slane %v1858_v46, 4  ;;  %v1877_v31 = vshll.u32 %v5274_v44, 16  ;;  %v5363_v25 = vld [vmem:[%s4122_s24 + $0x74] sm:$0x1] }
 0x156   : > { %v3172_v54 = vpop.f32.mrf.mxu0  ;;  %v2775_v41 = vpack.c.b16 %v2750_v34, %v2749_v35  ;;  %v3041_v0 = vsel %vm3031_vm13, %v3008_v52, %v2714_v37  ;;  %v1863_v53 = vrot.slane %v1861_v9, 5  ;;  %v1869_v28 = vrot.slane %v1867_v30, 5  ;;  %v2554_v32 = vpop.permute.xlu1 %2553 }
 0x157   : > { %v1873_v3 = vrot.slane %v1871_v56, 4  ;;  %2463 = vrot.lane.b32.xlu1 %v2440_v42, %s4072_s28  ;;  %v1879_v26 = vrot.slane %v1877_v31, 5  ;;  %v2958_v38 = vsel %vm2932_vm10, %v2925_v58, %v2474_v11  ;;  %v3665_v55 = vrot.slane %v3649_v21, 9  ;;  %v3657_v56 = vld [vmem:[%s4122_s24 + $0xc0] sm:$0xe] }
 0x158   : > { %2797 = vrot.lane.b32.xlu2 %v2775_v41, %s4076_s7  ;;  %v1411_v57 = vrot.slane %v5284_v2, 5  ;;  %v1864_v44 = vor.u32 %v1863_v53, %v1860_v4  ;;  %v2991_v13 = vsel %vm2965_vm11, %v2958_v38, %v2554_v32  ;;  %v1414_v40 = vrot.slane %v5292_v16, 5  ;;  %v5383_v31 = vld [vmem:[%s4122_s24 + $0xc4] sm:$0xf] }
 0x159   : > { %v1874_v10 = vor.u32 %v1873_v3, %v1869_v28  ;;  %v2272_v15 = vpack.c.b16 %v2256_v17, %v2255_v19  ;;  %v1690_v37 = vshrl.u32 %v3688_v36, 16  ;;  %v3173_v12 = vadd.f32 %v5148_v22, %v3172_v54 }
 0x15a   : > { %v2650_v49 = vpop.permute.xlu2 %2649  ;;  %v1412_v27 = vsel %vm4131_vm4, %v3665_v55, %v1411_v57  ;;  %v1413_v47 = vrot.slane %v1411_v57, 4  ;;  %v2794_v50 = vpop.permute.xlu0 %2793  ;;  %v1865_v2 = vrot.slane %v1864_v44, 4  ;;  %v1693_v45 = vshll.u32 %v3688_v36, 16 }
 0x15b   : > { %v1875_v52 = vrot.slane %v1874_v10, 4  ;;  %v2495_v60 = vunpack.c.l.b16 %v1412_v27  ;;  %v5358_v18 = vsel %vm2998_vm12, %v2991_v13, %v2650_v49  ;;  %v1692_v33 = vrot.slane %v1690_v37, 4 }
 0x15c   : > { %v1415_v16 = vsel %vm4131_vm4, %v1413_v47, %v1414_v40  ;;  %v1870_v35 = vsel %vm4176_vm5, %v1865_v2, %v1869_v28  ;;  %v1699_v63 = vshll.u32 %v5354_v48, 16  ;;  %v1695_v59 = vrot.slane %v1693_v45, 5  ;;  %v279_v40 = vld [vmem:[%s4122_s24 + $0xb4] sm:$0xf] }
 0x15d   : > { %2383 = vrot.lane.b32.xlu0 %v4011_v43, %s4069_s25  ;;  %v1880_v11 = vsel %vm4176_vm5, %v1875_v52, %v1879_v26  ;;  %v2496_v39 = vunpack.c.l.b16 %v1415_v16  ;;  %v2685_v24 = vunpack.c.l.b16 %v1870_v35  ;;  %v1703_v7 = vshrl.u32 %v5354_v48, 16 }
 0x15e   : > { %v2686_v6 = vunpack.c.l.b16 %v1880_v11  ;;  %v3174_v19 = vpop.f32.mrf.mxu0  ;;  %v1701_v1 = vrot.slane %v1699_v63, 5  ;;  %v1709_v34 = vshll.u32 %v5363_v25, 16  ;;  %v3585_v61 = vrot.slane %v691_v20, 9  ;;  %v5374_v46 = vpop.permute.xlu1 %2809 }
 0x15f   : > { %v2520_v58 = vpack.c.b16 %v2496_v39, %v2495_v60  ;;  %2303 = vrot.lane.b32.xlu1 %v2272_v15, %s4070_s26  ;;  %v1696_v17 = vor.u32 %v1695_v59, %v1692_v33  ;;  %v1705_v9 = vrot.slane %v1703_v7, 4  ;;  %v802_v30 = vrot.slane %v5250_v14, 5  ;;  %v3993_v14 = vld [vmem:[%s4122_s24 + $0x3c] sm:$0xff] }
 0x160   : > { %v2703_v54 = vpack.c.b16 %v2686_v6, %v2685_v24  ;;  %v1711_v21 = vrot.slane %v1709_v34, 5  ;;  %v805_v42 = vrot.slane %v5257_v23, 5  ;;  %v3074_v41 = vsel %vm3064_vm14, %v3041_v0, %v2794_v50  ;;  %v5391_v23 = vld [vmem:[%s4122_s24 + $0xc8] sm:$0x1]  ;;  %v3729_v24 = vld [vmem:[%s4122_s24 + $0x6c] sm:$0xe] }
 0x161   : > { %v3175_v4 = vadd.f32 %v5148_v22, %v3174_v19  ;;  %v1697_v53 = vrot.slane %v1696_v17, 4  ;;  %v1706_v28 = vor.u32 %v1705_v9, %v1701_v1  ;;  %v803_v3 = vsel %vm4131_vm4, %v3585_v61, %v802_v30  ;;  %3958 = vmatmul.msk.bf16.gmra.mxu0 %vm3121_vm15, %v3074_v41  ;;  %v4019_v59 = vld [vmem:[%s4122_s24 + $0xc0] sm:$0xff]  ;;  %v3704_v17 = vld [vmem:[%s4122_s24 + $0xcc] sm:$0xf] }
 0x162   : > { %2733 = vrot.lane.b32.xlu2 %v2703_v54, %s4075_s6  ;;  %v804_v32 = vrot.slane %v802_v30, 4  ;;  %v2204_v36 = vpop.permute.xlu2 %2203  ;;  %v3249_v0 = vmax.f32 %v3173_v12, 0.0  ;;  %v2239_v26 = vunpack.c.l.b16 %v803_v3  ;;  %v3673_v55 = vrot.slane %v3657_v56, 9  ;;  %v2730_v57 = vpop.permute.xlu0 %2729 }
 0x163   : > { %v3250_v38 = vmax.f32 %v3175_v4, 0.0  ;;  %v1702_v43 = vsel %vm4176_vm5, %v1697_v53, %v1701_v1  ;;  %v1707_v44 = vrot.slane %v1706_v28, 4  ;;  %v1467_v13 = vrot.slane %v5383_v31, 5 }
 0x164   : > { %v806_v10 = vsel %vm4131_vm4, %v804_v32, %v805_v42  ;;  %v2671_v15 = vunpack.c.l.b16 %v1702_v43  ;;  %v1470_v47 = vrot.slane %v5391_v23, 5  ;;  %v2835_v50 = vsel %vm2817_vm6, %v3993_v14, %v2204_v36 }
 0x165   : > { %2543 = vrot.lane.b32.xlu0 %v2520_v58, %s4074_s30  ;;  %v2240_v49 = vunpack.c.l.b16 %v806_v10  ;;  %v3280_v27 = vpack.c.bf16 %v3250_v38, %v3249_v0  ;;  %v1712_v37 = vsel %vm4176_vm5, %v1707_v44, %v1711_v21  ;;  %v1468_v2 = vsel %vm4131_vm4, %v3673_v55, %v1467_v13  ;;  %v3212_v60 = vpop.f32.mrf.mxu2  ;;  %v3721_v38 = vld [vmem:[%s4122_s24 + $0xd4] sm:$0x1] }
 0x166   : > { %v1469_v52 = vrot.slane %v1467_v13, 4  ;;  %v2672_v12 = vunpack.c.l.b16 %v1712_v37  ;;  %v3057_v33 = vsel %vm3031_vm13, %v5358_v18, %v2730_v57  ;;  %v661_v45 = vshrl.u32 %v279_v40, 16  ;;  %v2380_v20 = vpop.permute.xlu1 %2379 }
 0x167   : > { %v2264_v16 = vpack.c.b16 %v2240_v49, %v2239_v26  ;;  %3971 = vmatmul.msk.bf16.gmra.mxu1 %vm2817_vm6, %v3280_v27  ;;  %v664_v11 = vshll.u32 %v279_v40, 16  ;;  %v670_v39 = vshll.u32 %v5309_v29, 16  ;;  %v674_v63 = vshrl.u32 %v5309_v29, 16  ;;  %v3705_v26 = vld [vmem:[%s4122_s24 + $0xd0] sm:$0xf] }
 0x168   : > { %v1471_v35 = vsel %vm4131_vm4, %v1469_v52, %v1470_v47  ;;  %v2696_v6 = vpack.c.b16 %v2672_v12, %v2671_v15  ;;  %v2511_v7 = vunpack.c.l.b16 %v1468_v2  ;;  %v663_v19 = vrot.slane %v661_v45, 4  ;;  %v3737_v15 = vld [vmem:[%s4122_s24 + $0xcc] sm:$0xe] }
 0x169   : > { %v680_v18 = vshll.u32 %v5318_v8, 16  ;;  %v666_v58 = vrot.slane %v664_v11, 5  ;;  %v672_v1 = vrot.slane %v670_v39, 5  ;;  %v676_v34 = vrot.slane %v674_v63, 4  ;;  %v3624_v39 = vld [vmem:[%s4122_s24 + $0xc0] sm:$0xf] }
 0x16a   : > { %2287 = vrot.lane.b32.xlu2 %v2264_v16, %s4070_s26  ;;  %v2460_v61 = vpop.permute.xlu2 %2459  ;;  %v3090_v54 = vsel %vm3064_vm14, %v3057_v33, %v5374_v46  ;;  %2719 = vrot.lane.b32.xlu1 %v2696_v6, %s4075_s6  ;;  %v2512_v29 = vunpack.c.l.b16 %v1471_v35  ;;  %v3745_v30 = vrot.slane %v3729_v24, 9  ;;  %v2020_v56 = vrot.slane %v5354_v48, 5  ;;  %v2284_v8 = vpop.permute.xlu0 %2283 }
 0x16b   : > { %v682_v9 = vrot.slane %v680_v18, 5  ;;  %3966 = vmatmul.msk.bf16.gmra.mxu2 %vm3121_vm15, %v3090_v54  ;;  %v667_v21 = vor.u32 %v666_v58, %v663_v19  ;;  %v677_v42 = vor.u32 %v676_v34, %v672_v1  ;;  %v2023_v41 = vrot.slane %v5363_v25, 5 }
 0x16c   : > { %v3213_v4 = vadd.f32 %v5148_v22, %v3212_v60  ;;  %v2021_v46 = vsel %vm4131_vm4, %v3745_v30, %v2020_v56  ;;  %v2022_v53 = vrot.slane %v2020_v56, 4  ;;  %v1882_v28 = vshrl.u32 %v3704_v17, 16 }
 0x16d   : > { %2399 = vrot.lane.b32.xlu0 %v4019_v59, %s4069_s25  ;;  %v668_v3 = vrot.slane %v667_v21, 4  ;;  %v678_v32 = vrot.slane %v677_v42, 4  ;;  %v2751_v48 = vunpack.c.l.b16 %v2021_v46  ;;  %v2878_v14 = vsel %vm2866_vm7, %v2835_v50, %v2284_v8  ;;  %v3214_v40 = vpop.f32.mrf.mxu2 }
 0x16e   : > { %v2528_v36 = vpack.c.b16 %v2512_v29, %v2511_v7  ;;  %v2024_v0 = vsel %vm4131_vm4, %v2022_v53, %v2023_v41  ;;  %v2540_v25 = vpop.permute.xlu1 %2539  ;;  %v1884_v55 = vrot.slane %v1882_v28, 4  ;;  %v1885_v57 = vshll.u32 %v3704_v17, 16 }
 0x16f   : > { %v673_v43 = vsel %vm4176_vm5, %v668_v3, %v672_v1  ;;  %v683_v44 = vsel %vm4176_vm5, %v678_v32, %v682_v9  ;;  %v2752_v10 = vunpack.c.l.b16 %v2024_v0  ;;  %v3265_v13 = vmax.f32 %v3213_v4, 0.0  ;;  %v4027_v4 = vld [vmem:[%s4122_s24 + $0x6c] sm:$0xff] }
 0x170   : > { %v2175_v49 = vunpack.c.l.b16 %v673_v43  ;;  %v2176_v27 = vunpack.c.l.b16 %v683_v44  ;;  %v2911_v47 = vsel %vm2899_vm9, %v2878_v14, %v2380_v20  ;;  %v1887_v37 = vrot.slane %v1885_v57, 5  ;;  %v4001_v44 = vld [vmem:[%s4122_s24 + $0x9c] sm:$0xff] }
 0x171   : > { %v2776_v50 = vpack.c.b16 %v2752_v10, %v2751_v48  ;;  %v1891_v2 = vshll.u32 %v3705_v26, 16  ;;  %v1895_v52 = vshrl.u32 %v3705_v26, 16  ;;  %v1901_v60 = vshll.u32 %v3721_v38, 16 }
 0x172   : > { %2559 = vrot.lane.b32.xlu1 %v2528_v36, %s4074_s30  ;;  %v2192_v12 = vpack.c.b16 %v2176_v27, %v2175_v49  ;;  %v5440_v16 = vpop.permute.xlu2 %2299  ;;  %v1888_v33 = vor.u32 %v1887_v37, %v1884_v55  ;;  %v3215_v45 = vadd.f32 %v5148_v22, %v3214_v40  ;;  %v3753_v35 = vrot.slane %v3737_v15, 9 }
 0x173   : > { %v2220_v11 = vpop.permute.xlu0 %2219  ;;  %v2944_v63 = vsel %vm2932_vm10, %v2911_v47, %v2460_v61  ;;  %v1893_v24 = vrot.slane %v1891_v2, 5  ;;  %v1897_v20 = vrot.slane %v1895_v52, 4  ;;  %v2076_v6 = vrot.slane %v3705_v26, 5 }
 0x174   : > { %2223 = vrot.lane.b32.xlu2 %v2192_v12, %s4073_s29  ;;  %v1889_v59 = vrot.slane %v1888_v33, 4  ;;  %v1903_v7 = vrot.slane %v1901_v60, 5  ;;  %v3266_v19 = vmax.f32 %v3215_v45, 0.0  ;;  %v2079_v18 = vrot.slane %v3721_v38, 5  ;;  %s5516_s29 = scalar_lea.vmem %s5684_s5, %s3575_s21 }
 0x175   : > { %2799 = vrot.lane.b32.xlu0 %v2776_v50, %s4076_s7  ;;  %v1898_v58 = vor.u32 %v1897_v20, %v1893_v24  ;;  %v2077_v1 = vsel %vm4131_vm4, %v3753_v35, %v2076_v6  ;;  %v2078_v34 = vrot.slane %v2076_v6, 4  ;;  %v1273_v54 = vshrl.u32 %v3624_v39, 16 }
 0x176   : > { %v1894_v61 = vsel %vm4176_vm5, %v1889_v59, %v1893_v24  ;;  %v3288_v17 = vpack.c.bf16 %v3266_v19, %v3265_v13  ;;  %v2767_v29 = vunpack.c.l.b16 %v2077_v1  ;;  %v1276_v9 = vshll.u32 %v3624_v39, 16  ;;  %v2396_v30 = vpop.permute.xlu1 %2395  ;;  %v4035_v59 = vld [vmem:[%s4122_s24 + $0xcc] sm:$0xff] }
 0x177   : > { %v1899_v8 = vrot.slane %v1898_v58, 4  ;;  %v2687_v21 = vunpack.c.l.b16 %v1894_v61  ;;  %v2080_v42 = vsel %vm4131_vm4, %v2078_v34, %v2079_v18  ;;  %v1275_v41 = vrot.slane %v1273_v54, 4 }
 0x178   : > { %v2768_v46 = vunpack.c.l.b16 %v2080_v42  ;;  %v1278_v53 = vrot.slane %v1276_v9, 5  ;;  %v1282_v28 = vshll.u32 %v5383_v31, 16  ;;  %v1286_v3 = vshrl.u32 %v5383_v31, 16  ;;  %3979 = vmatmul.msk.bf16.vlgmr.msra.gmra.mxu3 %vm2817_vm6, %v3288_v17 }
 0x179   : > { %v3177_v56 = vpop.f32.mrf.mxu0  ;;  %v2977_v32 = vsel %vm2965_vm11, %v2944_v63, %v2540_v25  ;;  %v1904_v48 = vsel %vm4176_vm5, %v1899_v8, %v1903_v7  ;;  %v1292_v14 = vshll.u32 %v5391_v23, 16  ;;  %v2859_v52 = vsel %vm2817_vm6, %v4001_v44, %v2220_v11 }
 0x17a   : > { %v2688_v5 = vunpack.c.l.b16 %v1904_v48  ;;  %v2784_v36 = vpack.c.b16 %v2768_v46, %v2767_v29  ;;  %v1279_v0 = vor.u32 %v1278_v53, %v1275_v41  ;;  %v1284_v26 = vrot.slane %v1282_v28, 5  ;;  %v3994_v46 = vld [vmem:[%s4122_s24 + $0x48] sm:$0xff] }
 0x17b   : > { %v2636_v38 = vpop.permute.xlu0 %2635  ;;  %v1288_v55 = vrot.slane %v1286_v3, 4  ;;  %v1294_v13 = vrot.slane %v1292_v14, 5  ;;  %v3178_v23 = vadd.f32 %v5148_v22, %v3177_v56  ;;  %v2894_v24 = vsel %vm2866_vm7, %v2859_v52, %v5440_v16 }
 0x17c   : > { %v3010_v57 = vsel %vm2998_vm12, %v2977_v32, %v2636_v38  ;;  %2639 = vrot.lane.b32.xlu2 %v4027_v4, %s4071_s27  ;;  %v2704_v31 = vpack.c.b16 %v2688_v5, %v2687_v21  ;;  %2815 = vrot.lane.b32.xlu1 %v2784_v36, %s4076_s7  ;;  %v1280_v43 = vrot.slane %v1279_v0, 4  ;;  %v2716_v25 = vpop.permute.xlu2 %2715  ;;  %v2927_v6 = vsel %vm2899_vm9, %v2894_v24, %v2396_v30 }
 0x17d   : > { %v1289_v10 = vor.u32 %v1288_v55, %v1284_v26  ;;  %v3043_v40 = vsel %vm3031_vm13, %v3010_v57, %v2716_v25  ;;  %v3251_v12 = vmax.f32 %v3178_v23, 0.0  ;;  %v4002_v25 = vld [vmem:[%s4122_s24 + $0xa8] sm:$0xff] }
 0x17e   : > { %2735 = vrot.lane.b32.xlu0 %v2704_v31, %s4075_s6  ;;  %v1285_v15 = vsel %vm4176_vm5, %v1280_v43, %v1284_v26  ;;  %v2796_v49 = vpop.permute.xlu1 %2795  ;;  %v5506_v26 = vld [vmem:[%s5681_s2] ss:$0 sm:$0xff] }
 0x17f   : > { %v1290_v47 = vrot.slane %v1289_v10, 4  ;;  %v3076_v37 = vsel %vm3064_vm14, %v3043_v40, %v2796_v49  ;;  %v2431_v2 = vunpack.c.l.b16 %v1285_v15  ;;  %v3296_v43 = vld [vmem:[%s5501_s23] sm:$0xff] }
 0x180   : > { %3959 = vmatmul.msk.bf16.gmra.mxu0 %vm3121_vm15, %v3076_v37 }
 0x181   : > { %v3179_v27 = vpop.f32.mrf.mxu0  ;;  %v1295_v60 = vsel %vm4176_vm5, %v1290_v47, %v1294_v13 }
 0x182   : > { %v3180_v50 = vadd.f32 %v5148_v22, %v3179_v27  ;;  %v2432_v45 = vunpack.c.l.b16 %v1295_v60  ;;  %v3297_v60 = vld [vmem:[%s5501_s23 + $0x8] sm:$0xff] }
 0x184   : > { %v3252_v33 = vmax.f32 %v3180_v50, 0.0  ;;  %v2476_v35 = vpop.permute.xlu0 %2475  ;;  %v2448_v63 = vpack.c.b16 %v2432_v45, %v2431_v2 }
 0x185   : > { %v2556_v20 = vpop.permute.xlu2 %2555  ;;  %v2960_v11 = vsel %vm2932_vm10, %v2927_v6, %v2476_v35 }
 0x186   : > { %v3281_v39 = vpack.c.bf16 %v3252_v33, %v3251_v12  ;;  %2479 = vrot.lane.b32.xlu2 %v2448_v63, %s4072_s28  ;;  %v2993_v7 = vsel %vm2965_vm11, %v2960_v11, %v2556_v20 }
 0x188   : > { %3972 = vmatmul.msk.bf16.gmra.mxu1 %vm2817_vm6, %v3281_v39 }
 0x189   : > { %v2732_v51 = vpop.permute.xlu1 %2731 }
 0x18c   : > { %v2652_v19 = vpop.permute.xlu0 %2651 }
 0x18d   : > { %v3026_v58 = vsel %vm2998_vm12, %v2993_v7, %v2652_v19  ;;  %v2812_v1 = vpop.permute.xlu2 %2811 }
 0x18e   : > { %v3217_v18 = vpop.f32.mrf.mxu2  ;;  %v3059_v16 = vsel %vm3031_vm13, %v3026_v58, %v2732_v51  ;;  %2655 = vrot.lane.b32.xlu2 %v4035_v59, %s4071_s27 }
 0x18f   : > { %v3092_v34 = vsel %vm3064_vm14, %v3059_v16, %v2812_v1  ;;  %v3218_v61 = vadd.f32 %v5148_v22, %v3217_v18 }
 0x190   : > { %3967 = vmatmul.msk.bf16.gmra.mxu2 %vm3121_vm15, %v3092_v34 }
 0x191   : > { %v2286_v54 = vpop.permute.xlu1 %2285  ;;  %v3267_v30 = vmax.f32 %v3218_v61, 0.0 }
 0x195   : > { %v2382_v9 = vpop.permute.xlu2 %2381 }
 0x196   : > { %v3219_v17 = vpop.f32.mrf.mxu2 }
 0x197   : > { %v3220_v29 = vadd.f32 %v5148_v22, %v3219_v17  ;;  %v2206_v21 = vpop.permute.xlu0 %2205 }
 0x198   : > { %v2838_v3 = vsel %vm2817_vm6, %v3994_v46, %v2206_v21 }
 0x199   : > { %v3268_v56 = vmax.f32 %v3220_v29, 0.0  ;;  %v2880_v32 = vsel %vm2866_vm7, %v2838_v3, %v2286_v54 }
 0x19a   : > { %v2913_v5 = vsel %vm2899_vm9, %v2880_v32, %v2382_v9  ;;  %v3995_v9 = vld [vmem:[%s4122_s24 + $0x54] sm:$0xff] }
 0x19b   : > { %v3289_v8 = vpack.c.bf16 %v3268_v56, %v3267_v30 }
 0x19d   : > { %3980 = vmatmul.msk.bf16.gmra.mxu3 %vm2817_vm6, %v3289_v8  ;;  %v2222_v42 = vpop.permute.xlu1 %2221  ;;  %v2542_v41 = vpop.permute.xlu2 %2541 }
 0x19e   : > { %v2862_v37 = vsel %vm2817_vm6, %v4002_v25, %v2222_v42 }
 0x1a5   : > { %v2638_v4 = vpop.permute.xlu1 %2637  ;;  %v2398_v28 = vpop.permute.xlu2 %2397 }
 0x1a7   : > { %v2462_v53 = vpop.permute.xlu0 %2461 }
 0x1a8   : > { %v2946_v36 = vsel %vm2932_vm10, %v2913_v5, %v2462_v53  ;;  %v4003_v53 = vld [vmem:[%s4122_s24 + $0xb4] sm:$0xff] }
 0x1a9   : > { %v2979_v57 = vsel %vm2965_vm11, %v2946_v36, %v2542_v41 }
 0x1aa   : > { %v3182_v22 = vpop.f32.mrf.mxu0  ;;  %v3012_v23 = vsel %vm2998_vm12, %v2979_v57, %v2638_v4 }
 0x1ab   : > { %v3183_v38 = vadd.f32 %v5506_v26, %v3182_v22  ;;  %v3298_v22 = vld [vmem:[%s5501_s23 + $0x10] sm:$0xff] }
 0x1ad   : > { %v3253_v44 = vmax.f32 %v3183_v38, 0.0 }
 0x1af   : > { %v2302_v48 = vpop.permute.xlu0 %2301  ;;  %v2478_v14 = vpop.permute.xlu1 %2477 }
 0x1b0   : > { %v2896_v2 = vsel %vm2866_vm7, %v2862_v37, %v2302_v48 }
 0x1b1   : > { %v2929_v12 = vsel %vm2899_vm9, %v2896_v2, %v2398_v28 }
 0x1b2   : > { %v2798_v0 = vpop.permute.xlu2 %2797  ;;  %v3184_v55 = vpop.f32.mrf.mxu0  ;;  %v2962_v39 = vsel %vm2932_vm10, %v2929_v12, %v2478_v14 }
 0x1b3   : > { %v3185_v31 = vadd.f32 %v5506_v26, %v3184_v55 }
 0x1b5   : > { %v3254_v10 = vmax.f32 %v3185_v31, 0.0  ;;  %v3388_v13 = vpop.f32.mrf.mxu1 }
 0x1b6   : > { %v3389_v49 = vadd.f32 %v3388_v13, %v3296_v43 }
 0x1b7   : > { %v2718_v40 = vpop.permute.xlu0 %2717  ;;  %v2654_v15 = vpop.permute.xlu1 %2653  ;;  %v3282_v47 = vpack.c.bf16 %v3254_v10, %v3253_v44 }
 0x1b8   : > { %v3045_v27 = vsel %vm3031_vm13, %v3012_v23, %v2718_v40  ;;  %3468 = vst.msk [vmem:[%s5516_s29] sm:$0xff] %vm2932_vm10, %v3389_v49  ;;  %v3299_v40 = vld [vmem:[%s5501_s23 + $0x18] sm:$0xff] }
 0x1b9   : > { %v3078_v50 = vsel %vm3064_vm14, %v3045_v27, %v2798_v0  ;;  %3973 = vmatmul.msk.bf16.gmra.mxu1 %vm2817_vm6, %v3282_v47 }
 0x1ba   : > { %3960 = vmatmul.msk.bf16.gmra.mxu0 %vm3121_vm15, %v3078_v50 }
 0x1bc   : > { %v2734_v52 = vpop.permute.xlu2 %2733 }
 0x1bd   : > { %v3390_v33 = vpop.f32.mrf.mxu1 }
 0x1be   : > { %v3391_v35 = vadd.f32 %v3390_v33, %v3297_v60 }
 0x1bf   : > { %v2558_v45 = vpop.permute.xlu0 %2557 }
 0x1c0   : > { %v2995_v63 = vsel %vm2965_vm11, %v2962_v39, %v2558_v45  ;;  %3469 = vst.msk [vmem:[%s5516_s29 + $0x8] sm:$0xff] %vm2932_vm10, %v3391_v35 }
 0x1c1   : > { %v2208_v24 = vpop.permute.xlu1 %2207  ;;  %v3222_v20 = vpop.f32.mrf.mxu2  ;;  %v3028_v6 = vsel %vm2998_vm12, %v2995_v63, %v2654_v15 }
 0x1c2   : > { %v3061_v59 = vsel %vm3031_vm13, %v3028_v6, %v2734_v52  ;;  %v3223_v19 = vadd.f32 %v5506_v26, %v3222_v20  ;;  %v2841_v56 = vsel %vm2817_vm6, %v3995_v9, %v2208_v24  ;;  %v3314_v6 = vld [vmem:[%s5501_s23 + $0x90] sm:$0xff] }
 0x1c4   : > { %v2288_v11 = vpop.permute.xlu2 %2287  ;;  %v3269_v16 = vmax.f32 %v3223_v19, 0.0  ;;  %v3300_v19 = vld [vmem:[%s5501_s23 + $0x20] sm:$0xff] }
 0x1c5   : > { %v2882_v21 = vsel %vm2866_vm7, %v2841_v56, %v2288_v11 }
 0x1c7   : > { %v2814_v51 = vpop.permute.xlu0 %2813 }
 0x1c8   : > { %v3094_v7 = vsel %vm3064_vm14, %v3061_v59, %v2814_v51 }
 0x1c9   : > { %3968 = vmatmul.msk.bf16.gmra.mxu2 %vm3121_vm15, %v3094_v7  ;;  %v3224_v18 = vpop.f32.mrf.mxu2  ;;  %v2464_v58 = vpop.permute.xlu1 %2463 }
 0x1ca   : > { %v3225_v1 = vadd.f32 %v5506_v26, %v3224_v18  ;;  %v3315_v18 = vld [vmem:[%s5501_s23 + $0x98] sm:$0xff] }
 0x1cc   : > { %v3270_v34 = vmax.f32 %v3225_v1, 0.0 }
 0x1ce   : > { %v3290_v54 = vpack.c.bf16 %v3270_v34, %v3269_v16  ;;  %v2224_v17 = vpop.permute.xlu2 %2223 }
 0x1cf   : > { %v2384_v61 = vpop.permute.xlu0 %2383  ;;  %v2865_v32 = vsel %vm2817_vm6, %v4003_v53, %v2224_v17  ;;  %v3316_v53 = vld [vmem:[%s5501_s23 + $0xa0] sm:$0xff] }
 0x1d0   : > { %3981 = vmatmul.msk.bf16.gmra.mxu3 %vm2817_vm6, %v3290_v54  ;;  %v2915_v42 = vsel %vm2899_vm9, %v2882_v21, %v2384_v61 }
 0x1d1   : > { %v2304_v29 = vpop.permute.xlu1 %2303  ;;  %v2948_v28 = vsel %vm2932_vm10, %v2915_v42, %v2464_v58 }
 0x1d2   : > { %v2898_v38 = vsel %vm2866_vm7, %v2865_v32, %v2304_v29 }
 0x1d6   : > { %v2640_v8 = vpop.permute.xlu2 %2639 }
 0x1d7   : > { %v2544_v30 = vpop.permute.xlu0 %2543 }
 0x1d8   : > { %v2981_v3 = vsel %vm2965_vm11, %v2948_v28, %v2544_v30  ;;  %v3301_v30 = vld [vmem:[%s5501_s23 + $0x28] sm:$0xff] }
 0x1d9   : > { %v3014_v48 = vsel %vm2998_vm12, %v2981_v3, %v2640_v8 }
 0x1dc   : > { %v2720_v41 = vpop.permute.xlu1 %2719 }
 0x1dd   : > { %v3047_v55 = vsel %vm3031_vm13, %v3014_v48, %v2720_v41 }
 0x1de   : > { %v3187_v46 = vpop.f32.mrf.mxu0 }
 0x1df   : > { %v2400_v4 = vpop.permute.xlu0 %2399  ;;  %v3188_v0 = vadd.f32 %v5506_v26, %v3187_v46 }
 0x1e0   : > { %v2480_v14 = vpop.permute.xlu2 %2479  ;;  %v2931_v43 = vsel %vm2899_vm9, %v2898_v38, %v2400_v4 }
 0x1e1   : > { %v3255_v13 = vmax.f32 %v3188_v0, 0.0  ;;  %v2964_v15 = vsel %vm2932_vm10, %v2931_v43, %v2480_v14  ;;  %v3317_v14 = vld [vmem:[%s5501_s23 + $0xa8] sm:$0xff]  ;;  %v3302_v0 = vld [vmem:[%s5501_s23 + $0x30] sm:$0xff] }
 0x1e4   : > { %v3393_v5 = vpop.f32.mrf.mxu1  ;;  %v2560_v25 = vpop.permute.xlu1 %2559 }
 0x1e5   : > { %v3394_v36 = vadd.f32 %v3393_v5, %v3298_v22  ;;  %v2997_v37 = vsel %vm2965_vm11, %v2964_v15, %v2560_v25 }
 0x1e6   : > { %v3189_v31 = vpop.f32.mrf.mxu0 }
 0x1e7   : > { %v2800_v57 = vpop.permute.xlu0 %2799  ;;  %3470 = vst.msk [vmem:[%s5516_s29 + $0x10] sm:$0xff] %vm2932_vm10, %v3394_v36  ;;  %v3190_v10 = vadd.f32 %v5506_v26, %v3189_v31  ;;  %v3303_v31 = vld [vmem:[%s5501_s23 + $0x38] sm:$0xff] }
 0x1e8   : > { %v3080_v44 = vsel %vm3064_vm14, %v3047_v55, %v2800_v57  ;;  %v2656_v50 = vpop.permute.xlu2 %2655 }
 0x1e9   : > { %3961 = vmatmul.msk.bf16.gmra.mxu0 %vm3121_vm15, %v3080_v44  ;;  %v3256_v23 = vmax.f32 %v3190_v10, 0.0  ;;  %v3030_v60 = vsel %vm2998_vm12, %v2997_v37, %v2656_v50 }
 0x1eb   : > { %v3283_v49 = vpack.c.bf16 %v3256_v23, %v3255_v13 }
 0x1ec   : > { %v3395_v27 = vpop.f32.mrf.mxu1 }
 0x1ed   : > { %v3396_v47 = vadd.f32 %v3395_v27, %v3299_v40  ;;  %3974 = vmatmul.msk.bf16.gmra.mxu1 %vm2817_vm6, %v3283_v49  ;;  %v3318_v27 = vld [vmem:[%s5501_s23 + $0xb0] sm:$0xff] }
 0x1ee   : > { %v3227_v2 = vpop.f32.mrf.mxu2  ;;  %v2816_v52 = vpop.permute.xlu1 %2815 }
 0x1ef   : > { %3471 = vst.msk [vmem:[%s5516_s29 + $0x18] sm:$0xff] %vm2932_vm10, %v3396_v47  ;;  %v3228_v35 = vadd.f32 %v5506_v26, %v3227_v2 }
 0x1f0   : > { %v2736_v12 = vpop.permute.xlu0 %2735 }
 0x1f1   : > { %v3063_v33 = vsel %vm3031_vm13, %v3030_v60, %v2736_v12  ;;  %v3271_v24 = vmax.f32 %v3228_v35, 0.0 }
 0x1f2   : > { %v3096_v45 = vsel %vm3064_vm14, %v3063_v33, %v2816_v52 }
 0x1f3   : > { %3969 = vmatmul.msk.bf16.gmra.mxu2 %vm3121_vm15, %v3096_v45  ;;  %v3319_v45 = vld [vmem:[%s5501_s23 + $0xb8] sm:$0xff] }
 0x1f6   : > { %v3229_v39 = vpop.f32.mrf.mxu2 }
 0x1f7   : > { %v3230_v63 = vadd.f32 %v5506_v26, %v3229_v39 }
 0x1f9   : > { %v3272_v20 = vmax.f32 %v3230_v63, 0.0 }
 0x1fb   : > { %v3291_v11 = vpack.c.bf16 %v3272_v20, %v3271_v24  ;;  %v3433_v51 = vpop.f32.mrf.mxu3  ;;  %v3304_v24 = vld [vmem:[%s5501_s23 + $0x40] sm:$0xff] }
 0x1fc   : > { %v3434_v59 = vadd.f32 %v3433_v51, %v3314_v6 }
 0x1fd   : > { %3982 = vmatmul.msk.bf16.gmra.mxu3 %vm2817_vm6, %v3291_v11  ;;  %v3192_v7 = vpop.f32.mrf.mxu0 }
 0x1fe   : > { %3486 = vst.msk [vmem:[%s5516_s29 + $0x90] sm:$0xff] %vm2932_vm10, %v3434_v59  ;;  %v3193_v34 = vadd.f32 %v5506_v26, %v3192_v7 }
 0x200   : > { %v3257_v29 = vmax.f32 %v3193_v34, 0.0 }
 0x203   : > { %v3435_v1 = vpop.f32.mrf.mxu3 }
 0x204   : > { %v3436_v54 = vadd.f32 %v3435_v1, %v3315_v18  ;;  %v3305_v18 = vld [vmem:[%s5501_s23 + $0x48] sm:$0xff] }
 0x205   : > { %v3398_v58 = vpop.f32.mrf.mxu1  ;;  %v3194_v61 = vpop.f32.mrf.mxu0 }
 0x206   : > { %v3399_v16 = vadd.f32 %v3398_v58, %v3300_v19  ;;  %3487 = vst.msk [vmem:[%s5516_s29 + $0x98] sm:$0xff] %vm2932_vm10, %v3436_v54  ;;  %v3195_v17 = vadd.f32 %v5506_v26, %v3194_v61  ;;  %v3320_v61 = vld [vmem:[%s5501_s23 + $0xc0] sm:$0xff] }
 0x208   : > { %3472 = vst.msk [vmem:[%s5516_s29 + $0x20] sm:$0xff] %vm2932_vm10, %v3399_v16  ;;  %v3258_v9 = vmax.f32 %v3195_v17, 0.0 }
 0x20a   : > { %v3284_v56 = vpack.c.bf16 %v3258_v9, %v3257_v29 }
 0x20c   : > { %3975 = vmatmul.msk.bf16.gmra.mxu1 %vm2817_vm6, %v3284_v56 }
 0x20d   : > { %v3400_v8 = vpop.f32.mrf.mxu1 }
 0x20e   : > { %v3401_v21 = vadd.f32 %v3400_v8, %v3301_v30 }
 0x210   : > { %3473 = vst.msk [vmem:[%s5516_s29 + $0x28] sm:$0xff] %vm2932_vm10, %v3401_v21 }
 0x213   : > { %v3232_v42 = vpop.f32.mrf.mxu2 }
 0x214   : > { %v3233_v41 = vadd.f32 %v5506_v26, %v3232_v42  ;;  %v3321_v42 = vld [vmem:[%s5501_s23 + $0xc8] sm:$0xff] }
 0x216   : > { %v3273_v28 = vmax.f32 %v3233_v41, 0.0  ;;  %v3306_v41 = vld [vmem:[%s5501_s23 + $0x50] sm:$0xff] }
 0x21b   : > { %v3234_v4 = vpop.f32.mrf.mxu2 }
 0x21c   : > { %v3235_v46 = vadd.f32 %v5506_v26, %v3234_v4 }
 0x21e   : > { %v3274_v3 = vmax.f32 %v3235_v46, 0.0 }
 0x220   : > { %v3438_v22 = vpop.f32.mrf.mxu3  ;;  %v3292_v48 = vpack.c.bf16 %v3274_v3, %v3273_v28  ;;  %v3307_v28 = vld [vmem:[%s5501_s23 + $0x58] sm:$0xff] }
 0x221   : > { %v3439_v32 = vadd.f32 %v3438_v22, %v3316_v53  ;;  %v3322_v22 = vld [vmem:[%s5501_s23 + $0xd0] sm:$0xff] }
 0x222   : > { %3983 = vmatmul.msk.bf16.gmra.mxu3 %vm2817_vm6, %v3292_v48 }
 0x223   : > { %3488 = vst.msk [vmem:[%s5516_s29 + $0xa0] sm:$0xff] %vm2932_vm10, %v3439_v32 }
 0x228   : > { %v3440_v5 = vpop.f32.mrf.mxu3 }
 0x229   : > { %v3441_v36 = vadd.f32 %v3440_v5, %v3317_v14  ;;  %v3323_v14 = vld [vmem:[%s5501_s23 + $0xd8] sm:$0xff] }
 0x22b   : > { %3489 = vst.msk [vmem:[%s5516_s29 + $0xa8] sm:$0xff] %vm2932_vm10, %v3441_v36 }
 0x236   : > { %v3403_v55 = vpop.f32.mrf.mxu1 }
 0x237   : > { %v3197_v38 = vpop.f32.mrf.mxu0  ;;  %v3404_v57 = vadd.f32 %v3403_v55, %v3302_v0  ;;  %v3308_v0 = vld [vmem:[%s5501_s23 + $0x60] sm:$0xff] }
 0x238   : > { %v3198_v43 = vadd.f32 %v5506_v26, %v3197_v38 }
 0x239   : > { %3474 = vst.msk [vmem:[%s5516_s29 + $0x30] sm:$0xff] %vm2932_vm10, %v3404_v57  ;;  %v3309_v57 = vld [vmem:[%s5501_s23 + $0x68] sm:$0xff] }
 0x23a   : > { %v3259_v23 = vmax.f32 %v3198_v43, 0.0 }
 0x23e   : > { %v3405_v44 = vpop.f32.mrf.mxu1 }
 0x23f   : > { %v3199_v25 = vpop.f32.mrf.mxu0  ;;  %v3406_v13 = vadd.f32 %v3405_v44, %v3303_v31 }
 0x240   : > { %v3200_v10 = vadd.f32 %v5506_v26, %v3199_v25  ;;  %v3324_v25 = vld [vmem:[%s5501_s23 + $0xe0] sm:$0xff] }
 0x241   : > { %3475 = vst.msk [vmem:[%s5516_s29 + $0x38] sm:$0xff] %vm2932_vm10, %v3406_v13  ;;  %v3325_v13 = vld [vmem:[%s5501_s23 + $0xe8] sm:$0xff] }
 0x242   : > { %v3260_v40 = vmax.f32 %v3200_v10, 0.0 }
 0x244   : > { %v3285_v15 = vpack.c.bf16 %v3260_v40, %v3259_v23 }
 0x246   : > { %3976 = vmatmul.msk.bf16.gmra.mxu1 %vm2817_vm6, %v3285_v15  ;;  %v3310_v15 = vld [vmem:[%s5501_s23 + $0x70] sm:$0xff] }
 0x24c   : > { %v3237_v49 = vpop.f32.mrf.mxu2 }
 0x24d   : > { %v3238_v47 = vadd.f32 %v5506_v26, %v3237_v49 }
 0x24f   : > { %v3275_v60 = vmax.f32 %v3238_v47, 0.0  ;;  %v3311_v47 = vld [vmem:[%s5501_s23 + $0x78] sm:$0xff] }
 0x253   : > { %v3443_v37 = vpop.f32.mrf.mxu3 }
 0x254   : > { %v3239_v50 = vpop.f32.mrf.mxu2  ;;  %v3444_v2 = vadd.f32 %v3443_v37, %v3318_v27 }
 0x255   : > { %v3240_v52 = vadd.f32 %v5506_v26, %v3239_v50 }
 0x256   : > { %3490 = vst.msk [vmem:[%s5516_s29 + $0xb0] sm:$0xff] %vm2932_vm10, %v3444_v2  ;;  %v3312_v2 = vld [vmem:[%s5501_s23 + $0x80] sm:$0xff] }
 0x257   : > { %v3276_v12 = vmax.f32 %v3240_v52, 0.0 }
 0x259   : > { %v3293_v33 = vpack.c.bf16 %v3276_v12, %v3275_v60  ;;  %v3326_v12 = vld [vmem:[%s5501_s23 + $0xf0] sm:$0xff] }
 0x25b   : > { %3984 = vmatmul.msk.bf16.gmra.mxu3 %vm2817_vm6, %v3293_v33  ;;  %v3445_v35 = vpop.f32.mrf.mxu3  ;;  %v3313_v33 = vld [vmem:[%s5501_s23 + $0x88] sm:$0xff] }
 0x25c   : > { %v3446_v39 = vadd.f32 %v3445_v35, %v3319_v45 }
 0x25e   : > { %3491 = vst.msk [vmem:[%s5516_s29 + $0xb8] sm:$0xff] %vm2932_vm10, %v3446_v39 }
 0x266   : > { %v3202_v63 = vpop.f32.mrf.mxu0 }
 0x267   : > { %v3203_v11 = vadd.f32 %v5506_v26, %v3202_v63 }
 0x269   : > { %v3261_v7 = vmax.f32 %v3203_v11, 0.0 }
 0x26a   : > { %v3408_v20 = vpop.f32.mrf.mxu1 }
 0x26b   : > { %v3409_v6 = vadd.f32 %v3408_v20, %v3304_v24  ;;  %v3327_v24 = vld [vmem:[%s5501_s23 + $0xf8] sm:$0xff] }
 0x26d   : > { %3476 = vst.msk [vmem:[%s5516_s29 + $0x40] sm:$0xff] %vm2932_vm10, %v3409_v6 }
 0x26e   : > { %v3204_v51 = vpop.f32.mrf.mxu0 }
 0x26f   : > { %v3205_v59 = vadd.f32 %v5506_v26, %v3204_v51 }
 0x271   : > { %v3262_v19 = vmax.f32 %v3205_v59, 0.0 }
 0x272   : > { %v3410_v1 = vpop.f32.mrf.mxu1 }
 0x273   : > { %v3286_v58 = vpack.c.bf16 %v3262_v19, %v3261_v7  ;;  %v3411_v16 = vadd.f32 %v3410_v1, %v3305_v18 }
 0x275   : > { %3977 = vmatmul.msk.bf16.gmra.mxu1 %vm2817_vm6, %v3286_v58  ;;  %3477 = vst.msk [vmem:[%s5516_s29 + $0x48] sm:$0xff] %vm2932_vm10, %v3411_v16 }
 0x276   : > { %v3242_v34 = vpop.f32.mrf.mxu2 }
 0x277   : > { %v3243_v54 = vadd.f32 %v5506_v26, %v3242_v34 }
 0x279   : > { %v3277_v56 = vmax.f32 %v3243_v54, 0.0 }
 0x27e   : > { %v3244_v17 = vpop.f32.mrf.mxu2 }
 0x27f   : > { %v3245_v29 = vadd.f32 %v5506_v26, %v3244_v17 }
 0x280   : > { %v3448_v9 = vpop.f32.mrf.mxu3 }
 0x281   : > { %v3449_v30 = vadd.f32 %v3448_v9, %v3320_v61  ;;  %v3278_v8 = vmax.f32 %v3245_v29, 0.0 }
 0x283   : > { %3492 = vst.msk [vmem:[%s5516_s29 + $0xc0] sm:$0xff] %vm2932_vm10, %v3449_v30  ;;  %v3294_v21 = vpack.c.bf16 %v3278_v8, %v3277_v56 }
 0x285   : > { %3978 = vmatmul.msk.bf16.gmra.mxu1 %vm2817_vm6, %v5289_v62  ;;  %3985 = vmatmul.msk.bf16.gmra.mxu3 %vm2817_vm6, %v3294_v21 }
 0x288   : > { %v3450_v26 = vpop.f32.mrf.mxu3 }
 0x289   : > { %v3451_v4 = vadd.f32 %v3450_v26, %v3321_v42  ;;  %v3413_v46 = vpop.f32.mrf.mxu1 }
 0x28a   : > { %v3414_v53 = vadd.f32 %v3413_v46, %v3306_v41 }
 0x28b   : > { %3493 = vst.msk [vmem:[%s5516_s29 + $0xc8] sm:$0xff] %vm2932_vm10, %v3451_v4 }
 0x28c   : > { %3478 = vst.msk [vmem:[%s5516_s29 + $0x50] sm:$0xff] %vm2932_vm10, %v3414_v53 }
 0x291   : > { %v3415_v62 = vpop.f32.mrf.mxu1 }
 0x292   : > { %v3416_v3 = vadd.f32 %v3415_v62, %v3307_v28 }
 0x294   : > { %3479 = vst.msk [vmem:[%s5516_s29 + $0x58] sm:$0xff] %vm2932_vm10, %v3416_v3 }
 0x2a5   : > { %v3453_v32 = vpop.f32.mrf.mxu3 }
 0x2a6   : > { %v3454_v48 = vadd.f32 %v3453_v32, %v3322_v22 }
 0x2a8   : > { %3494 = vst.msk [vmem:[%s5516_s29 + $0xd0] sm:$0xff] %vm2932_vm10, %v3454_v48 }
 0x2ad   : > { %v3455_v5 = vpop.f32.mrf.mxu3 }
 0x2ae   : > { %v3456_v36 = vadd.f32 %v3455_v5, %v3323_v14 }
 0x2b0   : > { %3495 = vst.msk [vmem:[%s5516_s29 + $0xd8] sm:$0xff] %vm2932_vm10, %v3456_v36 }
 0x2c3   : > { %v3418_v38 = vpop.f32.mrf.mxu1 }
 0x2c4   : > { %v3419_v55 = vadd.f32 %v3418_v38, %v3308_v0 }
 0x2c6   : > { %3480 = vst.msk [vmem:[%s5516_s29 + $0x60] sm:$0xff] %vm2932_vm10, %v3419_v55 }
 0x2cb   : > { %v3420_v31 = vpop.f32.mrf.mxu1 }
 0x2cc   : > { %v3421_v43 = vadd.f32 %v3420_v31, %v3309_v57 }
 0x2ce   : > { %3481 = vst.msk [vmem:[%s5516_s29 + $0x68] sm:$0xff] %vm2932_vm10, %v3421_v43 }
 0x2de   : > { %v3458_v44 = vpop.f32.mrf.mxu3 }
 0x2df   : > { %v3459_v10 = vadd.f32 %v3458_v44, %v3324_v25 }
 0x2e1   : > { %3496 = vst.msk [vmem:[%s5516_s29 + $0xe0] sm:$0xff] %vm2932_vm10, %v3459_v10 }
 0x2e6   : > { %v3460_v23 = vpop.f32.mrf.mxu3 }
 0x2e7   : > { %v3461_v40 = vadd.f32 %v3460_v23, %v3325_v13 }
 0x2e9   : > { %3497 = vst.msk [vmem:[%s5516_s29 + $0xe8] sm:$0xff] %vm2932_vm10, %v3461_v40 }
 0x2f2   : > { %v3423_v49 = vpop.f32.mrf.mxu1 }
 0x2f3   : > { %v3424_v27 = vadd.f32 %v3423_v49, %v3310_v15 }
 0x2f5   : > { %3482 = vst.msk [vmem:[%s5516_s29 + $0x70] sm:$0xff] %vm2932_vm10, %v3424_v27 }
 0x2fa   : > { %v3425_v37 = vpop.f32.mrf.mxu1 }
 0x2fb   : > { %v3426_v50 = vadd.f32 %v3425_v37, %v3311_v47 }
 0x2fd   : > { %3483 = vst.msk [vmem:[%s5516_s29 + $0x78] sm:$0xff] %vm2932_vm10, %v3426_v50 }
 0x302   : > { %v3428_v52 = vpop.f32.mrf.mxu1 }
 0x303   : > { %v3429_v60 = vadd.f32 %v3428_v52, %v3312_v2 }
 0x305   : > { %3484 = vst.msk [vmem:[%s5516_s29 + $0x80] sm:$0xff] %vm2932_vm10, %v3429_v60 }
 0x308   : > { %v3463_v45 = vpop.f32.mrf.mxu3 }
 0x309   : > { %v3464_v35 = vadd.f32 %v3463_v45, %v3326_v12 }
 0x30a   : > { %v3430_v39 = vpop.f32.mrf.mxu1 }
 0x30b   : > { %v3431_v63 = vadd.f32 %v3430_v39, %v3313_v33  ;;  %3498 = vst.msk [vmem:[%s5516_s29 + $0xf0] sm:$0xff] %vm2932_vm10, %v3464_v35 }
 0x30d   : > { %3485 = vst.msk [vmem:[%s5516_s29 + $0x88] sm:$0xff] %vm2932_vm10, %v3431_v63 }
 0x310   : > { %v3465_v20 = vpop.f32.mrf.mxu3 }
 0x311   : > { %v3466_v6 = vadd.f32 %v3465_v20, %v3327_v24 }
 0x313   : > { %3499 = vst.msk [vmem:[%s5516_s29 + $0xf8] sm:$0xff] %vm2932_vm10, %v3466_v6 }
 0x314 PF: > { %s15_s18 = sadd.s32 1, %s4067_s18  }
 0x315   : > { %p12_p5 = scmp.ge.s32.totalorder %s15_s18, 4  }
 0x317   :  { %14 = sbr.rel (!%p12_p5) target bundleno = 1 (0x1), region = 75 }

</bundles_post_ra>
